<compile_context>
chip_gen: v7x
topology: tpu7x:2x2x1
jax: 0.10.0
libtpu: 0.0.40
codegen_flags: <defaults>
</compile_context>

<pallas_src>
import jax
import jax.numpy as jnp
from jax.experimental import pallas as pl
from jax.experimental.pallas import tpu as pltpu


def _round_up(x, m):
    return ((x + m - 1) // m) * m


# ----------------------------------------------------------------------------
# Kernel
# ----------------------------------------------------------------------------
def pointnet_kernel(x_ref, w1_ref, b1_ref, w2_ref, b2_ref, w3_ref, b3_ref, o_ref):
    # Shapes (H = hidden (sublane-aligned), tm = point tile, D = input_dim):
    #   x_ref : [D, tm]     w1_ref: [H, D]   b1_ref: [H, 1]
    #   w2_ref: [H, H]      b2_ref: [H, 1]
    #   w3_ref: [H, 1]      b3_ref: [1, 1]
    #   o_ref : [1, tm]
    d_in = x_ref.shape[0]

    x = x_ref[...].astype(jnp.float32)            # [D, tm]
    w1 = w1_ref[...].astype(jnp.float32)          # [H, D]

    # ---- fc1 on the VPU: K = D (=3) is far too small to feed the MXU. ----
    # (Plain slice+broadcast; a stride-0 sublane-broadcast load was evaluated
    #  but the 3 broadcasts per step are negligible next to DMA/step overhead.)
    acc1 = w1[:, 0:1] * x[0:1, :]                 # [H, 1] * [1, tm] -> [H, tm]
    for k in range(1, d_in):                      # static, tiny loop
        acc1 = acc1 + w1[:, k:k + 1] * x[k:k + 1, :]
    h1 = jnp.maximum(acc1 + b1_ref[...].astype(jnp.float32), 0.0)   # ReLU, f32

    # ---- fc2 on the MXU: dense [H,H] @ [H,tm], f32 accumulation. ----
    h2 = jnp.dot(w2_ref[...], h1.astype(w2_ref.dtype),
                 preferred_element_type=jnp.float32)                # [H, tm]
    h2 = jnp.maximum(h2 + b2_ref[...].astype(jnp.float32), 0.0)     # ReLU, f32

    # ---- fc3 on VPU + XLU: multiply by w3 column, reduce over sublanes. ----
    z = jnp.sum(h2 * w3_ref[...].astype(jnp.float32), axis=0, keepdims=True)  # [1, tm]
    z = z + b3_ref[...].astype(jnp.float32)
    o_ref[...] = jax.nn.sigmoid(z).astype(o_ref.dtype)              # lane-dense store


# ----------------------------------------------------------------------------
# One-time preprocessing (hoisted out of the per-forward hot path)
# ----------------------------------------------------------------------------
def prepare_params(params, compute_dtype=jnp.float32):
    """Pad/transpose PyTorch-layout params once.  W: [out,in], b: [out]."""
    w1, b1, w2, b2, w3, b3 = params
    H, d_in = w1.shape
    # Sublane alignment only: 8 rows for f32, 16 for bf16 (H=64 already aligned).
    sub = 16 if jnp.dtype(compute_dtype).itemsize < 4 else 8
    h_pad = _round_up(H, sub)

    f32 = jnp.float32
    w1p = jnp.zeros((h_pad, d_in), compute_dtype).at[:H, :].set(w1.astype(compute_dtype))
    b1p = jnp.zeros((h_pad, 1), f32).at[:H, 0].set(b1.astype(f32))
    w2p = jnp.zeros((h_pad, h_pad), compute_dtype).at[:H, :H].set(w2.astype(compute_dtype))
    b2p = jnp.zeros((h_pad, 1), f32).at[:H, 0].set(b2.astype(f32))
    w3p = jnp.zeros((h_pad, 1), f32).at[:H, 0].set(w3[0].astype(f32))   # fc3.weight [1,H] -> [H,1]
    b3p = b3.reshape(1, 1).astype(f32)
    return (w1p, b1p, w2p, b2p, w3p, b3p)


def points_to_soa(x, tm, compute_dtype=jnp.float32):
    """[N, D] AoS -> lane-dense, tile-padded [D, N_pad] SoA.  Do this once
    (or keep point clouds in SoA upstream); it moves more HBM bytes than the
    kernel's own x read, so it must not be rebuilt per forward."""
    N, d_in = x.shape
    n_pad = _round_up(N, tm)
    return jnp.zeros((d_in, n_pad), compute_dtype).at[:, :N].set(x.T.astype(compute_dtype))


# ----------------------------------------------------------------------------
# Hot path
# ----------------------------------------------------------------------------
def pointnet_apply(x_t, prepared, *, tm=2048):
    """x_t: [D, N_pad] (N_pad % tm == 0); prepared: output of prepare_params.
    Returns sigmoid logits [1, N_pad] (f32)."""
    assert tm % 128 == 0, "tile must be a multiple of the 128-lane width"
    d_in, n_pad = x_t.shape
    assert n_pad % tm == 0, "x_t must be padded to a multiple of tm (points_to_soa)"
    w1p, b1p, w2p, b2p, w3p, b3p = prepared
    h_pad = w1p.shape[0]

    # Explicit VMEM budget: double-buffered x/out tiles + resident params
    # + f32 [H, tm] intermediates, with 2x margin.  Always >= 32 MiB (never
    # below any generation's scoped default) and <= 48 MiB (headroom under
    # v7x's 64 MiB physical VMEM; v5e/v6e have 128 MiB).
    in_b = jnp.dtype(x_t.dtype).itemsize
    w_b = jnp.dtype(w1p.dtype).itemsize
    vmem_est = (2 * d_in * tm * in_b                      # x tiles (double-buffered)
                + 2 * tm * 4                              # out tiles (double-buffered)
                + 2 * ((h_pad * d_in + h_pad * h_pad) * w_b + (3 * h_pad + 1) * 4)
                + 3 * h_pad * tm * 4)                     # h1/h2/acc intermediates
    vmem_limit = int(min(max(2 * vmem_est + (1 << 20), 32 << 20), 48 << 20))

    def resident(a):
        # Constant index_map -> DMA'd once, stays VMEM-resident across the grid.
        return pl.BlockSpec(a.shape, lambda i, _nd=a.ndim: (0,) * _nd)

    return pl.pallas_call(
        pointnet_kernel,
        out_shape=jax.ShapeDtypeStruct((1, n_pad), jnp.float32),
        grid=(n_pad // tm,),
        in_specs=[
            pl.BlockSpec((d_in, tm), lambda i: (0, i)),   # x tile: N on lanes
            resident(w1p), resident(b1p),
            resident(w2p), resident(b2p),
            resident(w3p), resident(b3p),
        ],
        out_specs=pl.BlockSpec((1, tm), lambda i: (0, i)),  # lane-dense [1, tm]
        compiler_params=pltpu.CompilerParams(
            dimension_semantics=("parallel",),            # shard N across TCs on v7x
            vmem_limit_bytes=vmem_limit,
        ),
    )(x_t, w1p, b1p, w2p, b2p, w3p, b3p)


def pointnet_forward(x, params, *, tm=2048, compute_dtype=jnp.float32, prepared=None):
    """Convenience wrapper matching the PyTorch forward: x [N, D] -> [N, 1].
    For repeated calls, pass `prepared=prepare_params(...)` and keep x in SoA
    layout upstream (call pointnet_apply directly) to avoid re-doing the
    per-call transpose/padding."""
    N = x.shape[0]
    if prepared is None:
        prepared = prepare_params(params, compute_dtype)
    x_t = points_to_soa(x, tm, compute_dtype)
    out = pointnet_apply(x_t, prepared, tm=tm)
    return out[0, :N].reshape(N, 1)


# ----------------------------------------------------------------------------
# Reference + init
# ----------------------------------------------------------------------------
def init_params(key, input_dim=3, hidden_dim=64):
    """Deterministic init matching nn.Linear layout/scale: W [out,in], b [out]."""
    ks = jax.random.split(key, 6)

    def lin(kw, kb, fan_in, fan_out):
        bound = 1.0 / (fan_in ** 0.5)
        w = jax.random.uniform(kw, (fan_out, fan_in), jnp.float32, -bound, bound)
        b = jax.random.uniform(kb, (fan_out,), jnp.float32, -bound, bound)
        return w, b

    w1, b1 = lin(ks[0], ks[1], input_dim, hidden_dim)
    w2, b2 = lin(ks[2], ks[3], hidden_dim, hidden_dim)
    w3, b3 = lin(ks[4], ks[5], hidden_dim, 1)
    return w1, b1, w2, b2, w3, b3


def pointnet_reference(x, params):
    w1, b1, w2, b2, w3, b3 = params
    h1 = jnp.maximum(x @ w1.T + b1, 0.0)
    h2 = jnp.maximum(h1 @ w2.T + b2, 0.0)
    return jax.nn.sigmoid(h2 @ w3.T + b3)


if __name__ == "__main__":
    key = jax.random.PRNGKey(0)
    k_x, k_p = jax.random.split(key)

    N, input_dim, hidden_dim = 200, 3, 64
    x = jax.random.normal(k_x, (N, input_dim), jnp.float32)
    params = init_params(k_p, input_dim=input_dim, hidden_dim=hidden_dim)
    ref = pointnet_reference(x, params)

    # 1) Production path: params prepared once, x converted to SoA once,
    #    large default tile (tm=2048; single grid step at this small N).
    prep_f32 = prepare_params(params, jnp.float32)
    x_soa = points_to_soa(x, 2048, jnp.float32)
    out = pointnet_apply(x_soa, prep_f32, tm=2048)[0, :N].reshape(N, 1)
    jax.block_until_ready(out)
    assert out.shape == (N, 1)
    assert jnp.allclose(out, ref, atol=1e-5), "f32 kernel mismatch vs reference"

    # 2) Grid-coverage check (small tile so N=200 spans 2 grid steps); not a
    #    performance configuration.
    out_multi = pointnet_forward(x, params, tm=128, compute_dtype=jnp.float32)
    jax.block_until_ready(out_multi)
    assert jnp.allclose(out_multi, ref, atol=1e-5), "multi-tile f32 mismatch vs reference"

    # 3) bf16 MXU-operand path -- valid on v5e as well (MXU is natively bf16);
    #    accumulation and the sigmoid epilogue stay f32.
    out_bf16 = pointnet_forward(x, params, tm=256, compute_dtype=jnp.bfloat16)
    jax.block_until_ready(out_bf16)
    assert jnp.allclose(out_bf16, ref, atol=3e-2), "bf16 kernel mismatch vs reference"

    print("KERNEL_OK")
</pallas_src>

<mosaic_0001>
module attributes {stable_mosaic.version = 11 : i64} {
  func.func @pointnet_kernel(%arg0: i32, %arg1: memref<3x2048xf32, #tpu.memory_space<vmem>>, %arg2: memref<64x3xf32, #tpu.memory_space<vmem>>, %arg3: memref<64x1xf32, #tpu.memory_space<vmem>>, %arg4: memref<64x64xf32, #tpu.memory_space<vmem>>, %arg5: memref<64x1xf32, #tpu.memory_space<vmem>>, %arg6: memref<64x1xf32, #tpu.memory_space<vmem>>, %arg7: memref<1x1xf32, #tpu.memory_space<vmem>>, %arg8: memref<1x2048xf32, #tpu.memory_space<vmem>>) attributes {dimension_semantics = [#tpu.dimension_semantics<parallel>], iteration_bounds = array<i64: 1>, scalar_prefetch = 0 : i64, scratch_operands = 0 : i64, tpu.core_type = #tpu.core_type<tc>, window_params = [{transform_indices = @transform_0, window_bounds = array<i64: 3, 2048>}, {pipeline_mode = #tpu.pipeline_mode<synchronous>, transform_indices = @transform_1, window_bounds = array<i64: 64, 3>}, {pipeline_mode = #tpu.pipeline_mode<synchronous>, transform_indices = @transform_2, window_bounds = array<i64: 64, 1>}, {pipeline_mode = #tpu.pipeline_mode<synchronous>, transform_indices = @transform_3, window_bounds = array<i64: 64, 64>}, {pipeline_mode = #tpu.pipeline_mode<synchronous>, transform_indices = @transform_4, window_bounds = array<i64: 64, 1>}, {pipeline_mode = #tpu.pipeline_mode<synchronous>, transform_indices = @transform_5, window_bounds = array<i64: 64, 1>}, {pipeline_mode = #tpu.pipeline_mode<synchronous>, transform_indices = @transform_6, window_bounds = array<i64: 1, 1>}, {transform_indices = @transform_7, window_bounds = array<i64: 1, 2048>}]} {
    %c0 = arith.constant 0 : index
    %c0_0 = arith.constant 0 : index
    %0 = vector.load %arg1[%c0, %c0_0] : memref<3x2048xf32, #tpu.memory_space<vmem>>, vector<3x2048xf32>
    %c0_1 = arith.constant 0 : index
    %c0_2 = arith.constant 0 : index
    %1 = vector.load %arg2[%c0_1, %c0_2] : memref<64x3xf32, #tpu.memory_space<vmem>>, vector<64x3xf32>
    %2 = vector.extract_strided_slice %1 {offsets = [0, 0], sizes = [64, 1], strides = [1, 1]} : vector<64x3xf32> to vector<64x1xf32>
    %3 = vector.extract_strided_slice %0 {offsets = [0, 0], sizes = [1, 2048], strides = [1, 1]} : vector<3x2048xf32> to vector<1x2048xf32>
    %4 = vector.broadcast %2 : vector<64x1xf32> to vector<64x2048xf32>
    %5 = vector.broadcast %3 : vector<1x2048xf32> to vector<64x2048xf32>
    %6 = arith.mulf %4, %5 : vector<64x2048xf32>
    %7 = vector.extract_strided_slice %1 {offsets = [0, 1], sizes = [64, 1], strides = [1, 1]} : vector<64x3xf32> to vector<64x1xf32>
    %8 = vector.extract_strided_slice %0 {offsets = [1, 0], sizes = [1, 2048], strides = [1, 1]} : vector<3x2048xf32> to vector<1x2048xf32>
    %9 = vector.broadcast %7 : vector<64x1xf32> to vector<64x2048xf32>
    %10 = vector.broadcast %8 : vector<1x2048xf32> to vector<64x2048xf32>
    %11 = arith.mulf %9, %10 : vector<64x2048xf32>
    %12 = arith.addf %6, %11 : vector<64x2048xf32>
    %13 = vector.extract_strided_slice %1 {offsets = [0, 2], sizes = [64, 1], strides = [1, 1]} : vector<64x3xf32> to vector<64x1xf32>
    %14 = vector.extract_strided_slice %0 {offsets = [2, 0], sizes = [1, 2048], strides = [1, 1]} : vector<3x2048xf32> to vector<1x2048xf32>
    %15 = vector.broadcast %13 : vector<64x1xf32> to vector<64x2048xf32>
    %16 = vector.broadcast %14 : vector<1x2048xf32> to vector<64x2048xf32>
    %17 = arith.mulf %15, %16 : vector<64x2048xf32>
    %18 = arith.addf %12, %17 : vector<64x2048xf32>
    %c0_3 = arith.constant 0 : index
    %c0_4 = arith.constant 0 : index
    %19 = vector.load %arg3[%c0_3, %c0_4] : memref<64x1xf32, #tpu.memory_space<vmem>>, vector<64x1xf32>
    %20 = vector.broadcast %19 : vector<64x1xf32> to vector<64x2048xf32>
    %21 = arith.addf %18, %20 : vector<64x2048xf32>
    %cst = arith.constant 0.000000e+00 : f32
    %22 = vector.broadcast %cst : f32 to vector<64x2048xf32>
    %23 = arith.maximumf %21, %22 : vector<64x2048xf32>
    %c0_5 = arith.constant 0 : index
    %c0_6 = arith.constant 0 : index
    %24 = vector.load %arg4[%c0_5, %c0_6] : memref<64x64xf32, #tpu.memory_space<vmem>>, vector<64x64xf32>
    %cst_7 = arith.constant dense<0.000000e+00> : vector<64x2048xf32>
    %25 = tpu.matmul %24, %23, %cst_7 {dimension_numbers = #tpu.dot_dimension_numbers<[1], [0], [0], [1], [0, 0, 1, 1], [], []>} : vector<64x64xf32>, vector<64x2048xf32>, vector<64x2048xf32> -> vector<64x2048xf32>
    %c0_8 = arith.constant 0 : index
    %c0_9 = arith.constant 0 : index
    %26 = vector.load %arg5[%c0_8, %c0_9] : memref<64x1xf32, #tpu.memory_space<vmem>>, vector<64x1xf32>
    %27 = vector.broadcast %26 : vector<64x1xf32> to vector<64x2048xf32>
    %28 = arith.addf %25, %27 : vector<64x2048xf32>
    %cst_10 = arith.constant 0.000000e+00 : f32
    %29 = vector.broadcast %cst_10 : f32 to vector<64x2048xf32>
    %30 = arith.maximumf %28, %29 : vector<64x2048xf32>
    %c0_11 = arith.constant 0 : index
    %c0_12 = arith.constant 0 : index
    %31 = vector.load %arg6[%c0_11, %c0_12] : memref<64x1xf32, #tpu.memory_space<vmem>>, vector<64x1xf32>
    %32 = vector.broadcast %31 : vector<64x1xf32> to vector<64x2048xf32>
    %33 = arith.mulf %30, %32 : vector<64x2048xf32>
    %cst_13 = arith.constant dense<0.000000e+00> : vector<2048xf32>
    %34 = vector.multi_reduction <add>, %33, %cst_13 [0] : vector<64x2048xf32> to vector<2048xf32>
    %35 = vector.shape_cast %34 : vector<2048xf32> to vector<1x2048xf32>
    %c0_14 = arith.constant 0 : index
    %c0_15 = arith.constant 0 : index
    %36 = vector.load %arg7[%c0_14, %c0_15] : memref<1x1xf32, #tpu.memory_space<vmem>>, vector<1x1xf32>
    %37 = vector.broadcast %36 : vector<1x1xf32> to vector<1x2048xf32>
    %38 = arith.addf %35, %37 : vector<1x2048xf32>
    %39 = arith.negf %38 : vector<1x2048xf32>
    %40 = math.exp %39 : vector<1x2048xf32>
    %cst_16 = arith.constant 1.000000e+00 : f32
    %41 = vector.broadcast %cst_16 : f32 to vector<1x2048xf32>
    %42 = arith.addf %41, %40 : vector<1x2048xf32>
    %43 = arith.divf %41, %42 : vector<1x2048xf32>
    %c0_17 = arith.constant 0 : index
    %c0_18 = arith.constant 0 : index
    %44 = vector.load %arg8[%c0_17, %c0_18] : memref<1x2048xf32, #tpu.memory_space<vmem>>, vector<1x2048xf32>
    tpu.vector_store %arg8[%c0_17, %c0_18], %43 {strides = array<i32>} : memref<1x2048xf32, #tpu.memory_space<vmem>>, vector<1x2048xf32>,
    return
  }
  func.func @transform_0(%arg0: i32) -> (i32, i32) {
    %c0_i32 = arith.constant 0 : i32
    %c0_i32_0 = arith.constant 0 : i32
    return %c0_i32, %arg0 : i32, i32
  }
  func.func @transform_1(%arg0: i32) -> (i32, i32) {
    %c0_i32 = arith.constant 0 : i32
    %c0_i32_0 = arith.constant 0 : i32
    %c0_i32_1 = arith.constant 0 : i32
    return %c0_i32, %c0_i32_0 : i32, i32
  }
  func.func @transform_2(%arg0: i32) -> (i32, i32) {
    %c0_i32 = arith.constant 0 : i32
    %c0_i32_0 = arith.constant 0 : i32
    %c0_i32_1 = arith.constant 0 : i32
    return %c0_i32, %c0_i32_0 : i32, i32
  }
  func.func @transform_3(%arg0: i32) -> (i32, i32) {
    %c0_i32 = arith.constant 0 : i32
    %c0_i32_0 = arith.constant 0 : i32
    %c0_i32_1 = arith.constant 0 : i32
    return %c0_i32, %c0_i32_0 : i32, i32
  }
  func.func @transform_4(%arg0: i32) -> (i32, i32) {
    %c0_i32 = arith.constant 0 : i32
    %c0_i32_0 = arith.constant 0 : i32
    %c0_i32_1 = arith.constant 0 : i32
    return %c0_i32, %c0_i32_0 : i32, i32
  }
  func.func @transform_5(%arg0: i32) -> (i32, i32) {
    %c0_i32 = arith.constant 0 : i32
    %c0_i32_0 = arith.constant 0 : i32
    %c0_i32_1 = arith.constant 0 : i32
    return %c0_i32, %c0_i32_0 : i32, i32
  }
  func.func @transform_6(%arg0: i32) -> (i32, i32) {
    %c0_i32 = arith.constant 0 : i32
    %c0_i32_0 = arith.constant 0 : i32
    %c0_i32_1 = arith.constant 0 : i32
    return %c0_i32, %c0_i32_0 : i32, i32
  }
  func.func @transform_7(%arg0: i32) -> (i32, i32) {
    %c0_i32 = arith.constant 0 : i32
    %c0_i32_0 = arith.constant 0 : i32
    return %c0_i32, %arg0 : i32, i32
  }
}

</mosaic_0001>

<bundles_post_ra>
// kernel: tpu_custom_call.1
= control target key start
LH: loop header
LB: loop body
LE: loop exit
PB: predicated region body
PF: predicated region fallthrough
CT: control target
= control target key end

     0   :  { %s5936_s0 = inlined_call_operand.vmem [shape: f32[3,2048], index: 0, kind: input, shape index: {}]   ;;  %s5937_s1 = inlined_call_operand.vmem [shape: f32[64,3], index: 1, kind: input, shape index: {}]   ;;  %s5938_s2 = inlined_call_operand.vmem [shape: f32[64,1], index: 2, kind: input, shape index: {}]   ;;  %s5939_s3 = inlined_call_operand.vmem [shape: f32[64,64], index: 3, kind: input, shape index: {}]   ;;  %s5940_s4 = inlined_call_operand.vmem [shape: f32[64,1], index: 4, kind: input, shape index: {}]   ;;  %s5941_s5 = inlined_call_operand.vmem [shape: f32[64,1], index: 5, kind: input, shape index: {}]   ;;  %s5942_s6 = inlined_call_operand.<no memory space> [shape: f32[1,1], index: 6, kind: input, shape index: {}]   ;;  %s5943_s7 = inlined_call_operand.hbm [shape: f32[1,2048], index: 7, kind: output, shape index: {}]  }
   0x1   :  { %v12_v0 = vstv %s5942_s6 }
   0x2   :  { %13 = vst [vmem:[#allocation2] sm:$0x1] %v12_v0 }
   0x3   :  { %v37_v1 = vld [vmem:[%s5937_s1] sm:$0xff]  ;;  %v3611_v2 = vmov 2   ;;  %v3612_v3 = vmov 1   ;;  %v39_v4 = vld [vmem:[%s5937_s1 + $0x10] sm:$0xff]  ;;  %v38_v5 = vld [vmem:[%s5937_s1 + $0x8] sm:$0xff] }
   0x4   :  { %3499 = vset.pattern.permute.xlu0 %v3611_v2  ;;  %3498 = vset.pattern.permute.xlu1 %v3612_v3  ;;  %v42_v6 = vld [vmem:[%s5937_s1 + $0x28] sm:$0xff]  ;;  %v41_v7 = vld [vmem:[%s5937_s1 + $0x20] sm:$0xff] }
   0x5   :  { %798 = vperm.xlu0 %3499, %v37_v1   ;;  %366 = vperm.xlu1 %3498, %v37_v1  }
   0x9   :  { %806 = vperm.xlu0 %3499, %v39_v4   ;;  %370 = vperm.xlu1 %3498, %v38_v5  }
   0xd   :  { %818 = vperm.xlu0 %3499, %v42_v6   ;;  %3500 = vset.pattern.permute.xlu1 %v3611_v2 }
   0xe   :  { %802 = vperm.xlu1 %3500, %v38_v5  }
   0xf   :  { %14 = vsyncpa [#allocation4], 0  ;;  %v3613_v8 = vmov 0   ;;  %v44_v9 = vld [vmem:[%s5937_s1 + $0x38] sm:$0xff]  ;;  %v1229_v11 = vld [vmem:[%s5938_s2] sm:$0xff]  ;;  %v5944_v31 = vmov 0.0   ;;  %v93_v33 = vlaneseq }
  0x10   :  { %v40_v10 = vld [vmem:[%s5937_s1 + $0x18] sm:$0xff]  ;;  %v1230_v12 = vld [vmem:[%s5938_s2 + $0x8] sm:$0xff]  ;;  %v43_v13 = vld [vmem:[%s5937_s1 + $0x30] sm:$0xff]  ;;  %1678 = vmatprep.mubr.f32.mxu0 %v5944_v31  ;;  %1791 = vmatprep.mubr.f32.mxu1 %v5944_v31  ;;  %vm1589_vm0 = vcmask 523264  }
  0x11   :  { %3507 = vset.pattern.permute.xlu0 %v3612_v3  ;;  %v1233_v14 = vld [vmem:[%s5938_s2 + $0x20] sm:$0xff]  ;;  %v1236_v15 = vld [vmem:[%s5938_s2 + $0x38] sm:$0xff]  ;;  %v1542_v16 = vld [vmem:[%s5940_s4 + $0x8] sm:$0xff]  ;;  %v3759_v35 = vshrl.u32 %v93_v33, 7 }
  0x12   :  { %382 = vperm.xlu0 %3507, %v41_v7   ;;  %3501 = vset.pattern.permute.xlu1 %v3613_v8  ;;  %v1544_v17 = vld [vmem:[%s5940_s4 + $0x18] sm:$0xff]  ;;  %v1231_v18 = vld [vmem:[%s5938_s2 + $0x10] sm:$0xff]  ;;  %v2647_v19 = vld [vmem:[%s5941_s5 + $0x8] sm:$0xff] }
  0x13   :  { %57 = vperm.xlu1 %3501, %v39_v4   ;;  %v1232_v20 = vld [vmem:[%s5938_s2 + $0x18] sm:$0xff]  ;;  %v2648_v21 = vld [vmem:[%s5941_s5 + $0x10] sm:$0xff]  ;;  %v2650_v23 = vld [vmem:[%s5941_s5 + $0x20] sm:$0xff]  ;;  %6066 = vst [vmem:[#allocation6_spill] sm:$0xff] %v3759_v35  ;;  %v3765_v37 = vsub.s32 4, %v3759_v35  ;;  %v3768_v38 = vsub.s32 5, %v3759_v35 }
  0x14   :  { %v2649_v22 = vld [vmem:[%s5941_s5 + $0x18] sm:$0xff]  ;;  %v2651_v24 = vld [vmem:[%s5941_s5 + $0x28] sm:$0xff]  ;;  %v1235_v27 = vld [vmem:[%s5938_s2 + $0x30] sm:$0xff]  ;;  %v3774_v40 = vsub.s32 6, %v3759_v35  ;;  %v3777_v41 = vsub.s32 0, %v3759_v35  ;;  %v3780_v42 = vsub.s32 1, %v3759_v35 }
  0x15   :  { %v2653_v25 = vld [vmem:[%s5941_s5 + $0x38] sm:$0xff]  ;;  %v1234_v26 = vld [vmem:[%s5938_s2 + $0x28] sm:$0xff]  ;;  %v1541_v28 = vld [vmem:[%s5940_s4] sm:$0xff]  ;;  %6067 = vst [vmem:[#allocation7_spill] sm:$0xff] %v3765_v37  ;;  %v3783_v43 = vsub.s32 2, %v3759_v35 }
  0x16   :  { %394 = vperm.xlu0 %3507, %v44_v9   ;;  %v1543_v29 = vld [vmem:[%s5940_s4 + $0x10] sm:$0xff]  ;;  %v2646_v30 = vld [vmem:[%s5941_s5] sm:$0xff]  ;;  %v1546_v34 = vld [vmem:[%s5940_s4 + $0x28] sm:$0xff]  ;;  %6068 = vst [vmem:[#allocation8_spill] sm:$0xff] %v3768_v38 }
  0x17   :  { %3502 = vset.pattern.permute.xlu1 %v3612_v3  ;;  %v1545_v32 = vld [vmem:[%s5940_s4 + $0x20] sm:$0xff]  ;;  %v1547_v36 = vld [vmem:[%s5940_s4 + $0x30] sm:$0xff]  ;;  %6069 = vst [vmem:[#allocation9_spill] sm:$0xff] %v3774_v40  ;;  %6070 = vst [vmem:[#allocation10_spill] sm:$0xff] %v3777_v41 }
  0x18   :  { %374 = vperm.xlu1 %3502, %v39_v4   ;;  %v29_v39 = vld [vmem:[%s5936_s0] sm:$0x77]  ;;  %6071 = vst [vmem:[#allocation11_spill] sm:$0xff] %v3780_v42  ;;  %6072 = vst [vmem:[#allocation12_spill] sm:$0xff] %v3783_v43  ;;  %v30_v44 = vld [vmem:[%s5936_s0 + $0x8] sm:$0x77] }
  0x19   :  { %v1548_v45 = vld [vmem:[%s5940_s4 + $0x38] sm:$0xff]  ;;  %v100_v46 = vrot.slane %v29_v39, %v3765_v37  ;;  %v404_v47 = vrot.slane %v29_v39, %v3768_v38  ;;  %v31_v48 = vld [vmem:[%s5936_s0 + $0x10] sm:$0x77]  ;;  %v836_v49 = vrot.slane %v29_v39, %v3774_v40  ;;  %v108_v50 = vrot.slane %v30_v44, %v3765_v37 }
  0x1a   :  { %3510 = vset.pattern.permute.xlu0 %v3613_v8  ;;  %v412_v51 = vrot.slane %v30_v44, %v3768_v38  ;;  %v844_v52 = vrot.slane %v30_v44, %v3774_v40  ;;  %v96_v53 = vrot.slane %v29_v39, %v3777_v41  ;;  %v400_v54 = vrot.slane %v29_v39, %v3780_v42  ;;  %v2652_v61 = vld [vmem:[%s5941_s5 + $0x30] sm:$0xff]  ;;  %v32_v4 = vld [vmem:[%s5936_s0 + $0x18] sm:$0x77] }
  0x1b   :  { %47 = vperm.xlu0 %3510, %v37_v1   ;;  %v832_v55 = vrot.slane %v29_v39, %v3783_v43  ;;  %v104_v56 = vrot.slane %v30_v44, %v3777_v41  ;;  %v408_v57 = vrot.slane %v30_v44, %v3780_v42  ;;  %v840_v58 = vrot.slane %v30_v44, %v3783_v43 }
  0x1c   :  { %378 = vperm.xlu1 %3502, %v40_v10   ;;  %v116_v59 = vrot.slane %v31_v48, %v3765_v37  ;;  %v420_v60 = vrot.slane %v31_v48, %v3768_v38  ;;  %v3812_v62 = vrot.slane %v100_v46, %v3777_v41  ;;  %v3815_v63 = vrot.slane %v404_v47, %v3780_v42 }
  0x1d   :  { %v3818_v0 = vrot.slane %v836_v49, %v3783_v43  ;;  %v3821_v1 = vrot.slane %v108_v50, %v3777_v41 }
  0x1f   :  { %52 = vperm.xlu0 %3510, %v38_v5   ;;  %v3833_v5 = vrot.slane %v96_v53, %v3777_v41 }
  0x20   :  { %3503 = vset.pattern.permute.xlu1 %v3611_v2 }
  0x21   :  { %810 = vperm.xlu1 %3503, %v40_v10  }
  0x23   :  { %62 = vperm.xlu0 %3510, %v40_v10   ;;  %v3848_v10 = vrot.slane %v840_v58, %v3783_v43 }
  0x25   :  { %3504 = vset.pattern.permute.xlu1 %v3613_v8 }
  0x26   :  { %1239 = vperm.xlu1 %3504, %v1229_v11   ;;  %v3851_v11 = vrot.slane %v116_v59, %v3777_v41 }
  0x27   :  { %1244 = vperm.xlu0 %3510, %v1230_v12   ;;  %v3854_v12 = vrot.slane %v420_v60, %v3780_v42 }
  0x29   :  { %6073 = vst [vmem:[#allocation13_spill] sm:$0xff] %v3854_v12 }
  0x2a   :  { %67 = vperm.xlu1 %3504, %v41_v7  }
  0x2b   :  { %77 = vperm.xlu0 %3510, %v43_v13  }
  0x2e   :  { %72 = vperm.xlu1 %3504, %v42_v6  }
  0x2f   :  { %1259 = vperm.xlu0 %3510, %v1233_v14   ;;  %v3030_v14 = vld [vmem:[#allocation2] sm:$0x1] }
  0x32   :  { %3505 = vset.pattern.permute.xlu1 %v3612_v3 }
  0x33   :  { %1274 = vperm.xlu0 %3510, %v1236_v15   ;;  %386 = vperm.xlu1 %3505, %v42_v6   ;;  %v3836_v6 = vrot.slane %v400_v54, %v3780_v42  ;;  %v852_v15 = vrot.slane %v31_v48, %v3774_v40 }
  0x35   :  { %v3883_v33 = vrot.slane %v852_v15, %v3783_v43 }
  0x37   :  { %1556 = vperm.xlu0 %3510, %v1542_v16   ;;  %3506 = vset.pattern.permute.xlu1 %v3611_v2  ;;  %v428_v16 = vrot.slane %v32_v4, %v3768_v38  ;;  %6075 = vst [vmem:[#allocation15_spill] sm:$0xff] %v3883_v33 }
  0x38   :  { %814 = vperm.xlu1 %3506, %v41_v7   ;;  %v3839_v7 = vrot.slane %v832_v55, %v3783_v43 }
  0x3b   :  { %1566 = vperm.xlu0 %3510, %v1544_v17   ;;  %v860_v17 = vrot.slane %v32_v4, %v3774_v40 }
  0x3c   :  { %3508 = vset.pattern.permute.xlu1 %v3613_v8 }
  0x3d   :  { %1249 = vperm.xlu1 %3508, %v1231_v18   ;;  %v416_v18 = vrot.slane %v31_v48, %v3780_v42 }
  0x3f   :  { %2661 = vperm.xlu0 %3510, %v2647_v19   ;;  %v3866_v19 = vld [vmem:[%s5936_s0 + $0x28] sm:$0x77]  ;;  %v3892_v39 = vrot.slane %v416_v18, %v3780_v42 }
  0x40   :  { %6074 = vst [vmem:[#allocation14_spill] sm:$0xff] %v3866_v19 }
  0x41   :  { %1254 = vperm.xlu1 %3508, %v1232_v20   ;;  %v124_v20 = vrot.slane %v32_v4, %v3765_v37  ;;  %6078 = vst [vmem:[#allocation18_spill] sm:$0xff] %v3892_v39 }
  0x43   :  { %2666 = vperm.xlu0 %3510, %v2648_v21   ;;  %v112_v21 = vrot.slane %v31_v48, %v3777_v41  ;;  %v3895_v44 = vrot.slane %v124_v20, %v3777_v41 }
  0x45   :  { %82 = vperm.xlu1 %3508, %v44_v9   ;;  %6079 = vst [vmem:[#allocation19_spill] sm:$0xff] %v3895_v44 }
  0x47   :  { %2671 = vperm.xlu0 %3510, %v2649_v22   ;;  %v848_v22 = vrot.slane %v31_v48, %v3783_v43 }
  0x49   :  { %3509 = vset.pattern.permute.xlu1 %v3612_v3  ;;  %v3827_v3 = vrot.slane %v844_v52, %v3783_v43  ;;  %v3901_v46 = vrot.slane %v848_v22, %v3783_v43 }
  0x4a   :  { %390 = vperm.xlu1 %3509, %v43_v13  }
  0x4b   :  { %2676 = vperm.xlu0 %3510, %v2650_v23   ;;  %v424_v23 = vrot.slane %v32_v4, %v3780_v42  ;;  %6081 = vst [vmem:[#allocation21_spill] sm:$0xff] %v3901_v46 }
  0x4d   :  { %v3904_v47 = vrot.slane %v424_v23, %v3780_v42 }
  0x4e   :  { %3511 = vset.pattern.permute.xlu1 %v3611_v2  ;;  %v3824_v2 = vrot.slane %v412_v51, %v3780_v42 }
  0x4f   :  { %2681 = vperm.xlu0 %3510, %v2651_v24   ;;  %822 = vperm.xlu1 %3511, %v43_v13   ;;  %v33_v13 = vld [vmem:[%s5936_s0 + $0x20] sm:$0x77]  ;;  %v120_v24 = vrot.slane %v32_v4, %v3777_v41  ;;  %6082 = vst [vmem:[#allocation22_spill] sm:$0xff] %v3904_v47 }
  0x51   :  { %v3907_v48 = vrot.slane %v120_v24, %v3777_v41 }
  0x53   :  { %2691 = vperm.xlu0 %3510, %v2653_v25   ;;  %826 = vperm.xlu1 %3511, %v44_v9   ;;  %v3845_v9 = vrot.slane %v408_v57, %v3780_v42  ;;  %v856_v25 = vrot.slane %v32_v4, %v3783_v43  ;;  %6083 = vst [vmem:[#allocation23_spill] sm:$0xff] %v3907_v48 }
  0x55   :  { %v3910_v49 = vrot.slane %v856_v25, %v3783_v43 }
  0x57   :  { %3512 = vset.pattern.permute.xlu1 %v3613_v8  ;;  %v3842_v8 = vrot.slane %v104_v56, %v3777_v41  ;;  %6084 = vst [vmem:[#allocation24_spill] sm:$0xff] %v3910_v49 }
  0x58   :  { %1264 = vperm.xlu1 %3512, %v1234_v26   ;;  %v132_v26 = vrot.slane %v33_v13, %v3765_v37 }
  0x5a   :  { %v3913_v50 = vrot.slane %v132_v26, %v3777_v41 }
  0x5c   :  { %1269 = vperm.xlu1 %3512, %v1235_v27   ;;  %v436_v27 = vrot.slane %v33_v13, %v3768_v38  ;;  %6085 = vst [vmem:[#allocation25_spill] sm:$0xff] %v3913_v50 }
  0x5e   :  { %v3916_v51 = vrot.slane %v436_v27, %v3780_v42 }
  0x60   :  { %1551 = vperm.xlu1 %3512, %v1541_v28   ;;  %v868_v28 = vrot.slane %v33_v13, %v3774_v40  ;;  %6086 = vst [vmem:[#allocation26_spill] sm:$0xff] %v3916_v51 }
  0x62   :  { %v3923_v54 = vrot.slane %v868_v28, %v3783_v43 }
  0x64   :  { %1561 = vperm.xlu1 %3512, %v1543_v29   ;;  %v140_v29 = vrot.slane %v3866_v19, %v3765_v37  ;;  %6089 = vst [vmem:[#allocation29_spill] sm:$0xff] %v3923_v54 }
  0x66   :  { %v3926_v55 = vrot.slane %v140_v29, %v3777_v41 }
  0x68   :  { %2656 = vperm.xlu1 %3512, %v2646_v30   ;;  %v444_v30 = vrot.slane %v3866_v19, %v3768_v38  ;;  %6090 = vst [vmem:[#allocation30_spill] sm:$0xff] %v3926_v55 }
  0x6a   :  { %v3929_v56 = vrot.slane %v444_v30, %v3780_v42 }
  0x6c   :  { %1571 = vperm.xlu1 %3512, %v1545_v32   ;;  %v432_v32 = vrot.slane %v33_v13, %v3780_v42  ;;  %6091 = vst [vmem:[#allocation31_spill] sm:$0xff] %v3929_v56 }
  0x6e   :  { %v3932_v57 = vrot.slane %v432_v32, %v3780_v42 }
  0x70   :  { %1576 = vperm.xlu1 %3512, %v1546_v34   ;;  %v3886_v34 = vrot.slane %v428_v16, %v3780_v42  ;;  %6092 = vst [vmem:[#allocation32_spill] sm:$0xff] %v3932_v57 }
  0x72   :  { %6076 = vst [vmem:[#allocation16_spill] sm:$0xff] %v3886_v34 }
  0x74   :  { %1581 = vperm.xlu1 %3512, %v1547_v36   ;;  %v3889_v36 = vrot.slane %v860_v17, %v3783_v43 }
  0x76   :  { %6077 = vst [vmem:[#allocation17_spill] sm:$0xff] %v3889_v36 }
  0x78   :  { %1586 = vperm.xlu1 %3512, %v1548_v45   ;;  %v3898_v45 = vrot.slane %v112_v21, %v3777_v41 }
  0x7a   :  { %6080 = vst [vmem:[#allocation20_spill] sm:$0xff] %v3898_v45 }
  0x7c   :  { %2686 = vperm.xlu1 %3512, %v2652_v61  }
  0x80   :  { %3033 = vperm.xlu1 %3512, %v3030_v14  }
  0x84   :  { %v3918_v52 = vpop.permute.xlu1 %366  ;;  %v3920_v53 = vpop.permute.xlu0 %798 }
  0x85   :  { %6087 = vst [vmem:[#allocation27_spill] sm:$0xff] %v3918_v52  ;;  %6088 = vst [vmem:[#allocation28_spill] sm:$0xff] %v3920_v53  ;;  %v3936_v58 = vmul.f32 %v3815_v63, %v3918_v52  ;;  %v3940_v59 = vmul.f32 %v3818_v0, %v3920_v53  ;;  %v3944_v60 = vmul.f32 %v3824_v2, %v3918_v52 }
  0x86   :  { %v3950_v4 = vmul.f32 %v3827_v3, %v3920_v53  ;;  %v3954_v13 = vmul.f32 %v3836_v6, %v3918_v52  ;;  %v3958_v14 = vmul.f32 %v3839_v7, %v3920_v53  ;;  %v3962_v15 = vmul.f32 %v3845_v9, %v3918_v52 }
  0x87   :  { %v3966_v16 = vmul.f32 %v3848_v10, %v3920_v53  ;;  %v3970_v17 = vmul.f32 %v3854_v12, %v3918_v52  ;;  %v3974_v18 = vmul.f32 %v3883_v33, %v3920_v53  ;;  %v3978_v20 = vmul.f32 %v3886_v34, %v3918_v52 }
  0x88   :  { %v3980_v21 = vpop.permute.xlu1 %370  ;;  %v3982_v22 = vpop.permute.xlu0 %806  ;;  %v3986_v23 = vmul.f32 %v3889_v36, %v3920_v53  ;;  %v3990_v24 = vmul.f32 %v3892_v39, %v3918_v52  ;;  %v3994_v25 = vmul.f32 %v3901_v46, %v3920_v53  ;;  %v3998_v26 = vmul.f32 %v3904_v47, %v3918_v52 }
  0x89   :  { %6093 = vst [vmem:[#allocation33_spill] sm:$0xff] %v3974_v18  ;;  %6094 = vst [vmem:[#allocation34_spill] sm:$0xff] %v3978_v20  ;;  %v4002_v27 = vmul.f32 %v3815_v63, %v3980_v21  ;;  %v4006_v28 = vmul.f32 %v3824_v2, %v3980_v21  ;;  %v4010_v29 = vmul.f32 %v3836_v6, %v3980_v21 }
  0x8a   :  { %6095 = vst [vmem:[#allocation35_spill] sm:$0xff] %v3980_v21  ;;  %6096 = vst [vmem:[#allocation36_spill] sm:$0xff] %v3982_v22  ;;  %v4014_v30 = vmul.f32 %v3910_v49, %v3920_v53  ;;  %v4018_v32 = vmul.f32 %v3845_v9, %v3980_v21  ;;  %v4022_v61 = vmul.f32 %v3818_v0, %v3982_v22 }
  0x8b   :  { %6097 = vst [vmem:[#allocation37_spill] sm:$0xff] %v3986_v23  ;;  %6098 = vst [vmem:[#allocation38_spill] sm:$0xff] %v3990_v24  ;;  %v4026_v31 = vmul.f32 %v3827_v3, %v3982_v22  ;;  %v4030_v35 = vmul.f32 %v3839_v7, %v3982_v22  ;;  %v4034_v38 = vmul.f32 %v3848_v10, %v3982_v22 }
  0x8c   :  { %6099 = vst [vmem:[#allocation39_spill] sm:$0xff] %v3994_v25  ;;  %6100 = vst [vmem:[#allocation40_spill] sm:$0xff] %v3998_v26  ;;  %v4038_v37 = vmul.f32 %v3854_v12, %v3980_v21  ;;  %v4042_v57 = vmul.f32 %v3886_v34, %v3980_v21  ;;  %v4046_v41 = vmul.f32 %v3892_v39, %v3980_v21  ;;  %v4048_v43 = vpop.permute.xlu0 %818 }
  0x8d   :  { %6101 = vst [vmem:[#allocation41_spill] sm:$0xff] %v4014_v30  ;;  %6104 = vst [vmem:[#allocation44_spill] sm:$0xff] %v4048_v43  ;;  %v4052_v19 = vmul.f32 %v3904_v47, %v3980_v21  ;;  %v4056_v42 = vmul.f32 %v3883_v33, %v3982_v22  ;;  %v4060_v40 = vmul.f32 %v3889_v36, %v3982_v22  ;;  %v4066_v55 = vpop.permute.xlu1 %802 }
  0x8e   :  { %6102 = vst [vmem:[#allocation42_spill] sm:$0xff] %v4042_v57  ;;  %6103 = vst [vmem:[#allocation43_spill] sm:$0xff] %v4046_v41  ;;  %v4064_v56 = vmul.f32 %v3901_v46, %v3982_v22  ;;  %v4070_v50 = vmul.f32 %v3818_v0, %v4048_v43  ;;  %v4074_v30 = vmul.f32 %v3827_v3, %v4048_v43 }
  0x8f   :  { %6105 = vst [vmem:[#allocation45_spill] sm:$0xff] %v4052_v19  ;;  %6106 = vst [vmem:[#allocation46_spill] sm:$0xff] %v4056_v42  ;;  %v4078_v42 = vmul.f32 %v3839_v7, %v4048_v43  ;;  %v4090_v19 = vmul.f32 %v3827_v3, %v4066_v55  ;;  %v4094_v26 = vmul.f32 %v3839_v7, %v4066_v55 }
  0x90   :  { %6107 = vst [vmem:[#allocation47_spill] sm:$0xff] %v4060_v40  ;;  %6108 = vst [vmem:[#allocation48_spill] sm:$0xff] %v4064_v56  ;;  %v4082_v40 = vmul.f32 %v3910_v49, %v3982_v22  ;;  %v4086_v56 = vmul.f32 %v3818_v0, %v4066_v55  ;;  %v4098_v25 = vmul.f32 %v3848_v10, %v4048_v43 }
  0x91   :  { %6109 = vst [vmem:[#allocation49_spill] sm:$0xff] %v4066_v55  ;;  %6110 = vst [vmem:[#allocation50_spill] sm:$0xff] %v4070_v50  ;;  %v4102_v22 = vmul.f32 %v3848_v10, %v4066_v55  ;;  %v4110_v41 = vmul.f32 %v3889_v36, %v4066_v55  ;;  %v4114_v24 = vmul.f32 %v3901_v46, %v4066_v55 }
  0x92   :  { %6111 = vst [vmem:[#allocation51_spill] sm:$0xff] %v4074_v30  ;;  %6112 = vst [vmem:[#allocation52_spill] sm:$0xff] %v4078_v42  ;;  %v4118_v42 = vmul.f32 %v3910_v49, %v4066_v55  ;;  %v4126_v30 = vmul.f32 %v3889_v36, %v4048_v43  ;;  %v4130_v50 = vmul.f32 %v3901_v46, %v4048_v43  ;;  %v4150_v46 = vpop.permute.xlu1 %57 }
  0x93   :  { %6113 = vst [vmem:[#allocation53_spill] sm:$0xff] %v4082_v40  ;;  %6114 = vst [vmem:[#allocation54_spill] sm:$0xff] %v4098_v25  ;;  %v4106_v40 = vmul.f32 %v3883_v33, %v4066_v55  ;;  %v4122_v25 = vmul.f32 %v3883_v33, %v4048_v43 }
  0x94   :  { %6116 = vst [vmem:[#allocation56_spill] sm:$0xff] %v4110_v41  ;;  %6117 = vst [vmem:[#allocation57_spill] sm:$0xff] %v4114_v24  ;;  %v4132_v41 = vpop.permute.xlu0 %382  ;;  %v4136_v24 = vmul.f32 %v3910_v49, %v4048_v43  ;;  %v4196_v49 = vmul.f32 %v3907_v48, %v4150_v46 }
  0x95   :  { %6115 = vst [vmem:[#allocation55_spill] sm:$0xff] %v4106_v40  ;;  %6118 = vst [vmem:[#allocation58_spill] sm:$0xff] %v4118_v42  ;;  %v4140_v42 = vmul.f32 %v3916_v51, %v3918_v52  ;;  %v4158_v43 = vmul.f32 %v3824_v2, %v4132_v41  ;;  %v4162_v52 = vmul.f32 %v3836_v6, %v4132_v41 }
  0x96   :  { %6119 = vst [vmem:[#allocation59_spill] sm:$0xff] %v4122_v25  ;;  %6120 = vst [vmem:[#allocation60_spill] sm:$0xff] %v4126_v30  ;;  %v4144_v25 = vmul.f32 %v3916_v51, %v3980_v21  ;;  %v4148_v30 = vmul.f32 %v3923_v54, %v3920_v53  ;;  %v4166_v51 = vmul.f32 %v3923_v54, %v4066_v55 }
  0x97   :  { %6121 = vst [vmem:[#allocation61_spill] sm:$0xff] %v4130_v50  ;;  %6122 = vst [vmem:[#allocation62_spill] sm:$0xff] %v4132_v41  ;;  %v4154_v50 = vmul.f32 %v3815_v63, %v4132_v41  ;;  %v270_v53 = vmul.f32 %v3812_v62, %v4150_v46  ;;  %v272_v21 = vmul.f32 %v3821_v1, %v4150_v46 }
  0x98   :  { %6123 = vst [vmem:[#allocation63_spill] sm:$0xff] %v4136_v24  ;;  %6124 = vst [vmem:[#allocation64_spill] sm:$0xff] %v4140_v42  ;;  %v271_v42 = vmul.f32 %v3842_v8, %v4150_v46  ;;  %v4182_v54 = vmul.f32 %v3851_v11, %v4150_v46  ;;  %v4186_v55 = vmul.f32 %v3895_v44, %v4150_v46  ;;  %v4192_v24 = vpop.permute.xlu0 %394 }
  0x99   :  { %6125 = vst [vmem:[#allocation65_spill] sm:$0xff] %v4144_v25  ;;  %6126 = vst [vmem:[#allocation66_spill] sm:$0xff] %v4148_v30  ;;  %v269_v30 = vmul.f32 %v3833_v5, %v4150_v46  ;;  %v4176_v25 = vmul.f32 %v3845_v9, %v4132_v41  ;;  %v4200_v36 = vmul.f32 %v3854_v12, %v4132_v41 }
  0x9a   :  { %6127 = vst [vmem:[#allocation67_spill] sm:$0xff] %v4150_v46  ;;  %6128 = vst [vmem:[#allocation68_spill] sm:$0xff] %v4166_v51  ;;  %v4190_v51 = vmul.f32 %v3898_v45, %v4150_v46  ;;  %v4204_v33 = vmul.f32 %v3886_v34, %v4132_v41  ;;  %v4216_v46 = vmul.f32 %v3824_v2, %v4192_v24 }
  0x9b   :  { %6129 = vst [vmem:[#allocation69_spill] sm:$0xff] %v4182_v54  ;;  %6130 = vst [vmem:[#allocation70_spill] sm:$0xff] %v4186_v55  ;;  %v4208_v55 = vmul.f32 %v3892_v39, %v4132_v41  ;;  %v4234_v54 = vmul.f32 %v3854_v12, %v4192_v24  ;;  %v4266_v23 = vmul.f32 %v3904_v47, %v4192_v24 }
  0x9c   :  { %6131 = vst [vmem:[#allocation71_spill] sm:$0xff] %v4190_v51  ;;  %6132 = vst [vmem:[#allocation72_spill] sm:$0xff] %v4192_v24  ;;  %v4212_v51 = vmul.f32 %v3815_v63, %v4192_v24  ;;  %v4268_v57 = vpop.permute.xlu0 %47 }
  0x9d   :  { %6133 = vst [vmem:[#allocation73_spill] sm:$0xff] %v4196_v49  ;;  %6134 = vst [vmem:[#allocation74_spill] sm:$0xff] %v4200_v36  ;;  %v4220_v49 = vmul.f32 %v3836_v6, %v4192_v24  ;;  %v4224_v36 = vmul.f32 %v3904_v47, %v4132_v41 }
  0x9e   :  { %6135 = vst [vmem:[#allocation75_spill] sm:$0xff] %v4204_v33  ;;  %6136 = vst [vmem:[#allocation76_spill] sm:$0xff] %v4208_v55  ;;  %v4226_v33 = vpop.permute.xlu1 %374  ;;  %v4230_v55 = vmul.f32 %v3845_v9, %v4192_v24 }
  0x9f   :  { %6137 = vst [vmem:[#allocation77_spill] sm:$0xff] %v4212_v51  ;;  %6138 = vst [vmem:[#allocation78_spill] sm:$0xff] %v4216_v46  ;;  %v4238_v46 = vmul.f32 %v3886_v34, %v4192_v24  ;;  %v574_v41 = vmul.f32 %v3815_v63, %v4226_v33  ;;  %v4254_v51 = vmul.f32 %v3854_v12, %v4226_v33 }
  0xa0   :  { %6139 = vst [vmem:[#allocation79_spill] sm:$0xff] %v4220_v49  ;;  %6140 = vst [vmem:[#allocation80_spill] sm:$0xff] %v4224_v36  ;;  %v4242_v49 = vmul.f32 %v3892_v39, %v4192_v24  ;;  %v576_v36 = vmul.f32 %v3824_v2, %v4226_v33  ;;  %v239_v24 = vmul.f32 %v3842_v8, %v4268_v57 }
  0xa1   :  { %6141 = vst [vmem:[#allocation81_spill] sm:$0xff] %v4226_v33  ;;  %6142 = vst [vmem:[#allocation82_spill] sm:$0xff] %v4230_v55  ;;  %v573_v55 = vmul.f32 %v3836_v6, %v4226_v33  ;;  %v702_v20 = vadd.f32 %v574_v41, %v270_v53  ;;  %v4289_v53 = vmul.f32 %v3904_v47, %v4226_v33 }
  0xa2   :  { %6143 = vst [vmem:[#allocation83_spill] sm:$0xff] %v4234_v54  ;;  %6144 = vst [vmem:[#allocation84_spill] sm:$0xff] %v4238_v46  ;;  %v575_v54 = vmul.f32 %v3845_v9, %v4226_v33  ;;  %v4258_v46 = vmul.f32 %v3886_v34, %v4226_v33  ;;  %v704_v40 = vadd.f32 %v576_v36, %v272_v21  ;;  %v4270_v12 = vpop.permute.xlu1 %378 }
  0xa3   :  { %6145 = vst [vmem:[#allocation85_spill] sm:$0xff] %v4242_v49  ;;  %6146 = vst [vmem:[#allocation86_spill] sm:$0xff] %v4254_v51  ;;  %v4262_v49 = vmul.f32 %v3892_v39, %v4226_v33  ;;  %v701_v18 = vadd.f32 %v573_v55, %v269_v30  ;;  %v238_v34 = vmul.f32 %v3812_v62, %v4268_v57 }
  0xa4   :  { %6147 = vst [vmem:[#allocation87_spill] sm:$0xff] %v4258_v46  ;;  %6149 = vst [vmem:[#allocation89_spill] sm:$0xff] %v4266_v23  ;;  %v703_v48 = vadd.f32 %v575_v54, %v271_v42  ;;  %v240_v46 = vmul.f32 %v3821_v1, %v4268_v57  ;;  %v590_v41 = vmul.f32 %v3815_v63, %v4270_v12  ;;  %v4295_v23 = vpop.permute.xlu0 %52 }
  0xa5   :  { %6148 = vst [vmem:[#allocation88_spill] sm:$0xff] %v4262_v49  ;;  %6150 = vst [vmem:[#allocation90_spill] sm:$0xff] %v4268_v57  ;;  %v237_v49 = vmul.f32 %v3833_v5, %v4268_v57  ;;  %v4283_v36 = vadd.f32 %v4022_v61, %v702_v20  ;;  %v592_v42 = vmul.f32 %v3824_v2, %v4270_v12 }
  0xa6   :  { %6151 = vst [vmem:[#allocation91_spill] sm:$0xff] %v4270_v12  ;;  %6152 = vst [vmem:[#allocation92_spill] sm:$0xff] %v4289_v53  ;;  %v670_v54 = vadd.f32 %v3936_v58, %v238_v34  ;;  %v672_v55 = vadd.f32 %v3944_v60, %v240_v46  ;;  %v671_v30 = vadd.f32 %v3962_v15, %v239_v24 }
  0xa7   :  { %v669_v21 = vadd.f32 %v3954_v13, %v237_v49  ;;  %6153 = vst [vmem:[#allocation93_spill] sm:$0xff] %v4295_v23  ;;  %v4298_v61 = vadd.f32 %v4026_v31, %v704_v40  ;;  %v589_v20 = vmul.f32 %v3836_v6, %v4270_v12  ;;  %v4303_v39 = vadd.f32 %v4030_v35, %v701_v18  ;;  %v4315_v40 = vpop.permute.xlu1 %810 }
  0xa8   :  { %v591_v34 = vmul.f32 %v3845_v9, %v4270_v12  ;;  %v254_v46 = vmul.f32 %v3812_v62, %v4295_v23  ;;  %v1102_v49 = vadd.f32 %v3940_v59, %v670_v54  ;;  %v256_v58 = vmul.f32 %v3821_v1, %v4295_v23  ;;  %6154 = vst [vmem:[#allocation94_spill] sm:$0xff] %v4315_v40 }
  0xa9   :  { %v4313_v31 = vadd.f32 %v4034_v38, %v703_v48  ;;  %v1104_v60 = vadd.f32 %v3950_v4, %v672_v55  ;;  %v253_v35 = vmul.f32 %v3833_v5, %v4295_v23  ;;  %v1101_v13 = vadd.f32 %v3958_v14, %v669_v21  ;;  %v4328_v48 = vpop.permute.xlu0 %62 }
  0xaa   :  { %v255_v15 = vmul.f32 %v3842_v8, %v4295_v23  ;;  %v686_v59 = vadd.f32 %v4002_v27, %v254_v46  ;;  %v688_v18 = vadd.f32 %v4006_v28, %v256_v58  ;;  %v1103_v24 = vadd.f32 %v3966_v16, %v671_v30  ;;  %6155 = vst [vmem:[#allocation95_spill] sm:$0xff] %v4328_v48 }
  0xab   :  { %v1022_v38 = vmul.f32 %v3818_v0, %v4315_v40  ;;  %v685_v4 = vadd.f32 %v4010_v29, %v253_v35  ;;  %v1024_v14 = vmul.f32 %v3827_v3, %v4315_v40  ;;  %v1021_v55 = vmul.f32 %v3839_v7, %v4315_v40  ;;  %v4348_v58 = vpop.permute.xlu1 %1239 }
  0xac   :  { %v687_v54 = vadd.f32 %v4018_v32, %v255_v15  ;;  %v1118_v27 = vadd.f32 %v4086_v56, %v686_v59  ;;  %v286_v16 = vmul.f32 %v3812_v62, %v4328_v48  ;;  %v288_v28 = vmul.f32 %v3821_v1, %v4328_v48  ;;  %6156 = vst [vmem:[#allocation96_spill] sm:$0xff] %v4348_v58 }
  0xad   :  { %v1023_v21 = vmul.f32 %v3848_v10, %v4315_v40  ;;  %v1120_v29 = vadd.f32 %v4090_v19, %v688_v18  ;;  %v1117_v32 = vadd.f32 %v4094_v26, %v685_v4  ;;  %v285_v46 = vmul.f32 %v3833_v5, %v4328_v48  ;;  %v4354_v33 = vpop.permute.xlu0 %1244 }
  0xae   :  { %v1119_v30 = vadd.f32 %v4102_v22, %v687_v54  ;;  %v718_v56 = vadd.f32 %v590_v41, %v286_v16  ;;  %v720_v35 = vadd.f32 %v592_v42, %v288_v28  ;;  %v287_v15 = vmul.f32 %v3842_v8, %v4328_v48  ;;  %6157 = vst [vmem:[#allocation97_spill] sm:$0xff] %v4354_v33 }
  0xaf   :  { %v242_v59 = vmul.f32 %v3851_v11, %v4268_v57  ;;  %v1278_v19 = vadd.f32 %v4348_v58, %v1102_v49  ;;  %v1280_v26 = vadd.f32 %v4348_v58, %v1104_v60  ;;  %v1277_v22 = vadd.f32 %v4348_v58, %v1101_v13  ;;  %v4364_v40 = vpop.permute.xlu1 %67 }
  0xb0   :  { %v1279_v18 = vadd.f32 %v4348_v58, %v1103_v24  ;;  %v1294_v4 = vadd.f32 %v4354_v33, %v1118_v27  ;;  %v1296_v41 = vadd.f32 %v4354_v33, %v1120_v29  ;;  %v1293_v42 = vadd.f32 %v4354_v33, %v1117_v32  ;;  %6158 = vst [vmem:[#allocation98_spill] sm:$0xff] %v4364_v40 }
  0xb1   :  { %v1295_v54 = vadd.f32 %v4354_v33, %v1119_v30  ;;  %v1406_v16 = vmax.f32 %v1278_v19, 0.0  ;;  %v1408_v28 = vmax.f32 %v1280_v26, 0.0  ;;  %v1405_v53 = vmax.f32 %v1277_v22, 0.0 }
  0xb2   :  { %v1407_v47 = vmax.f32 %v1279_v18, 0.0  ;;  %v1422_v49 = vmax.f32 %v1294_v4, 0.0  ;;  %v1424_v60 = vmax.f32 %v1296_v41, 0.0  ;;  %v1421_v51 = vmax.f32 %v1293_v42, 0.0 }
  0xb3   :  { %v1423_v13 = vmax.f32 %v1295_v54, 0.0  ;;  %v4366_v12 = vadd.f32 %v1022_v38, %v718_v56  ;;  %v717_v24 = vadd.f32 %v589_v20, %v285_v46  ;;  %v719_v27 = vadd.f32 %v591_v34, %v287_v15  ;;  %v4378_v56 = vpop.permute.xlu0 %77  ;;  %v4380_v20 = vpop.permute.xlu1 %72 }
  0xb4   :  { %v258_v29 = vmul.f32 %v3851_v11, %v4295_v23  ;;  %v3364_v32 = vpack.c.bf16 %v1422_v49, %v1406_v16  ;;  %v3380_v48 = vpack.c.bf16 %v1424_v60, %v1408_v28  ;;  %v3366_v30 = vpack.c.bf16 %v1421_v51, %v1405_v53  ;;  %6159 = vst [vmem:[#allocation99_spill] sm:$0xff] %v4378_v56 }
  0xb5   :  { %v3382_v19 = vpack.c.bf16 %v1423_v13, %v1407_v47  ;;  %v4370_v26 = vadd.f32 %v1024_v14, %v720_v35  ;;  %v4372_v22 = vadd.f32 %v1021_v55, %v717_v24  ;;  %v302_v18 = vmul.f32 %v3812_v62, %v4364_v40  ;;  %6160 = vst [vmem:[#allocation100_spill] sm:$0xff] %v4380_v20 }
  0xb6   :  { %v304_v38 = vmul.f32 %v3821_v1, %v4364_v40  ;;  %3365 = vmatprep.subr.bf16.mxu0 %v3364_v32  ;;  %3381 = vmatprep.subr.bf16.mxu1 %v3380_v48  ;;  %v4382_v34 = vadd.f32 %v1023_v21, %v719_v27  ;;  %v301_v47 = vmul.f32 %v3833_v5, %v4364_v40  ;;  %v6164_v27 = vld [vmem:[#allocation33_spill] sm:$0xff]  ;;  %v6165_v32 = vld [vmem:[#allocation55_spill] sm:$0xff] }
  0xb7   :  { %v303_v51 = vmul.f32 %v3842_v8, %v4364_v40  ;;  %3367 = vmatpush1.bf16.msra.mxu0 %v3366_v30  ;;  %3383 = vmatpush1.bf16.msra.mxu1 %v3382_v19  ;;  %v318_v53 = vmul.f32 %v3812_v62, %v4380_v20  ;;  %v734_v14 = vadd.f32 %v4154_v50, %v302_v18  ;;  %v4418_v16 = vpop.permute.xlu1 %386  ;;  %v6166_v19 = vld [vmem:[#allocation34_spill] sm:$0xff] }
  0xb8   :  { %v4393_v55 = vmul.f32 %v3812_v62, %v4378_v56  ;;  %v320_v48 = vmul.f32 %v3821_v1, %v4380_v20  ;;  %v736_v21 = vadd.f32 %v4158_v43, %v304_v38  ;;  %v317_v46 = vmul.f32 %v3833_v5, %v4380_v20  ;;  %6161 = vst [vmem:[#allocation101_spill] sm:$0xff] %v4418_v16  ;;  %v6167_v38 = vld [vmem:[#allocation42_spill] sm:$0xff] }
  0xb9   :  { %v733_v35 = vadd.f32 %v4162_v52, %v301_v47  ;;  %v319_v15 = vmul.f32 %v3842_v8, %v4380_v20  ;;  %v735_v4 = vadd.f32 %v4176_v25, %v303_v51  ;;  %v4406_v50 = vmul.f32 %v3821_v1, %v4378_v56 }
  0xba   :  { %v4410_v41 = vmul.f32 %v3833_v5, %v4378_v56  ;;  %v674_v43 = vadd.f32 %v3970_v17, %v242_v59  ;;  %v690_v42 = vadd.f32 %v4038_v37, %v258_v29  ;;  %v244_v52 = vmul.f32 %v3895_v44, %v4268_v57  ;;  %v6163_v37 = vld [vmem:[#allocation23_spill] sm:$0xff] }
  0xbb   :  { %v260_v54 = vmul.f32 %v3895_v44, %v4295_v23  ;;  %v4422_v25 = vmul.f32 %v3842_v8, %v4378_v56  ;;  %v241_v28 = vmul.f32 %v3898_v45, %v4268_v57  ;;  %v257_v17 = vmul.f32 %v3898_v45, %v4295_v23 }
  0xbc   :  { %v243_v59 = vmul.f32 %v6163_v37, %v4268_v57  ;;  %v622_v49 = vmul.f32 %v3815_v63, %v4418_v16  ;;  %v624_v60 = vmul.f32 %v3824_v2, %v4418_v16  ;;  %v621_v13 = vmul.f32 %v3836_v6, %v4418_v16 }
  0xbd   :  { %6162 = vst [vmem:[#allocation102_spill] sm:$0xff] %v4422_v25  ;;  %v623_v24 = vmul.f32 %v3845_v9, %v4418_v16  ;;  %v1106_v29 = vadd.f32 %v6164_v27, %v674_v43  ;;  %v1122_v30 = vadd.f32 %v6165_v32, %v690_v42  ;;  %v676_v18 = vadd.f32 %v6166_v19, %v244_v52  ;;  %v6168_v16 = vld [vmem:[#allocation37_spill] sm:$0xff]  ;;  %v4447_v43 = vpop.permute.xlu1 %814  ;;  %v6169_v42 = vld [vmem:[#allocation50_spill] sm:$0xff]  ;;  %v6170_v52 = vld [vmem:[#allocation51_spill] sm:$0xff] }
  0xbe   :  { %v692_v47 = vadd.f32 %v6167_v38, %v260_v54  ;;  %v750_v51 = vadd.f32 %v622_v49, %v318_v53  ;;  %v752_v57 = vadd.f32 %v624_v60, %v320_v48  ;;  %v749_v56 = vadd.f32 %v621_v13, %v317_v46  ;;  %v6171_v53 = vld [vmem:[#allocation52_spill] sm:$0xff]  ;;  %v4469_v38 = vpop.permute.xlu0 %1259 }
  0xbf   :  { %v259_v20 = vmul.f32 %v6163_v37, %v4295_v23  ;;  %v751_v40 = vadd.f32 %v623_v24, %v319_v15  ;;  %v1282_v45 = vadd.f32 %v4348_v58, %v1106_v29  ;;  %v1298_v44 = vadd.f32 %v4354_v33, %v1122_v30  ;;  %v6172_v46 = vld [vmem:[#allocation56_spill] sm:$0xff]  ;;  %6173 = vst [vmem:[#allocation23_spill] sm:$0xff] %v4469_v38 }
  0xc0   :  { %v1108_v25 = vadd.f32 %v6168_v16, %v676_v18  ;;  %v4450_v27 = vadd.f32 %v6169_v42, %v750_v51  ;;  %v4453_v54 = vadd.f32 %v6170_v52, %v752_v57  ;;  %v4456_v48 = vadd.f32 %v6171_v53, %v749_v56 }
  0xc1   :  { %v1124_v49 = vadd.f32 %v6172_v46, %v692_v47  ;;  %v1038_v15 = vmul.f32 %v3818_v0, %v4447_v43  ;;  %v1040_v60 = vmul.f32 %v3827_v3, %v4447_v43  ;;  %v1037_v16 = vmul.f32 %v3839_v7, %v4447_v43  ;;  %v6174_v47 = vld [vmem:[#allocation54_spill] sm:$0xff]  ;;  %v4476_v46 = vpop.permute.xlu1 %1249 }
  0xc2   :  { %v1039_v13 = vmul.f32 %v3848_v10, %v4447_v43  ;;  %v1410_v24 = vmax.f32 %v1282_v45, 0.0  ;;  %v1426_v57 = vmax.f32 %v1298_v44, 0.0  ;;  %v1284_v29 = vadd.f32 %v4348_v58, %v1108_v25 }
  0xc3   :  { %v1300_v56 = vadd.f32 %v4354_v33, %v1124_v49  ;;  %v1166_v32 = vadd.f32 %v1038_v15, %v734_v14  ;;  %v1168_v30 = vadd.f32 %v1040_v60, %v736_v21  ;;  %v1165_v19 = vadd.f32 %v1037_v16, %v733_v35  ;;  %v6175_v21 = vld [vmem:[#allocation38_spill] sm:$0xff] }
  0xc4   :  { %v1167_v18 = vadd.f32 %v1039_v13, %v735_v4  ;;  %v4472_v51 = vadd.f32 %v6174_v47, %v751_v40  ;;  %v4474_v42 = vpack.c.bf16 %v1426_v57, %v1410_v24  ;;  %v1412_v52 = vmax.f32 %v1284_v29, 0.0  ;;  %v6183_v16 = vld [vmem:[#allocation58_spill] sm:$0xff] }
  0xc5   :  { %v1428_v53 = vmax.f32 %v1300_v56, 0.0  ;;  %v4479_v44 = vadd.f32 %v4469_v38, %v1166_v32  ;;  %v4482_v45 = vadd.f32 %v4469_v38, %v1168_v30  ;;  %v4485_v14 = vadd.f32 %v4469_v38, %v1165_v19  ;;  %v6178_v30 = vld [vmem:[#allocation40_spill] sm:$0xff] }
  0xc6   :  { %v673_v35 = vadd.f32 %v6175_v21, %v241_v28  ;;  %v1310_v40 = vadd.f32 %v4476_v46, %v4283_v36  ;;  %v1312_v4 = vadd.f32 %v4476_v46, %v4298_v61  ;;  %v1309_v25 = vadd.f32 %v4476_v46, %v4303_v39  ;;  %v4502_v61 = vpop.permute.xlu1 %1254  ;;  %v6176_v39 = vld [vmem:[#allocation43_spill] sm:$0xff] }
  0xc7   :  { %v1311_v49 = vadd.f32 %v4476_v46, %v4313_v31  ;;  %v4500_v28 = vadd.f32 %v4469_v38, %v1167_v18  ;;  %v4504_v29 = vpack.c.bf16 %v1428_v53, %v1412_v52  ;;  %v689_v56 = vadd.f32 %v6176_v39, %v257_v17  ;;  %v6177_v31 = vld [vmem:[#allocation39_spill] sm:$0xff]  ;;  %v6179_v52 = vld [vmem:[#allocation57_spill] sm:$0xff] }
  0xc8   :  { %v1438_v13 = vmax.f32 %v1310_v40, 0.0  ;;  %v1440_v36 = vmax.f32 %v1312_v4, 0.0  ;;  %v1437_v24 = vmax.f32 %v1309_v25, 0.0  ;;  %v1105_v32 = vadd.f32 %v6177_v31, %v673_v35  ;;  %v6180_v4 = vld [vmem:[#allocation45_spill] sm:$0xff] }
  0xc9   :  { %v1439_v57 = vmax.f32 %v1311_v49, 0.0  ;;  %v675_v19 = vadd.f32 %v6178_v30, %v243_v59  ;;  %v1326_v47 = vadd.f32 %v4502_v61, %v4366_v12  ;;  %v1328_v18 = vadd.f32 %v4502_v61, %v4370_v26  ;;  %v6181_v25 = vld [vmem:[#allocation41_spill] sm:$0xff] }
  0xca   :  { %v1325_v21 = vadd.f32 %v4502_v61, %v4372_v22  ;;  %v1327_v40 = vadd.f32 %v4502_v61, %v4382_v34  ;;  %v1121_v53 = vadd.f32 %v6179_v52, %v689_v56  ;;  %v1281_v17 = vadd.f32 %v4348_v58, %v1105_v32  ;;  %v4521_v30 = vpop.permute.xlu1 %82 }
  0xcb   :  { %v691_v35 = vadd.f32 %v6180_v4, %v259_v20  ;;  %v1107_v59 = vadd.f32 %v6181_v25, %v675_v19  ;;  %v1454_v49 = vmax.f32 %v1326_v47, 0.0  ;;  %v1456_v39 = vmax.f32 %v1328_v18, 0.0  ;;  %6182 = vst [vmem:[#allocation33_spill] sm:$0xff] %v4521_v30  ;;  %v6189_v4 = vld [vmem:[#allocation82_spill] sm:$0xff] }
  0xcc   :  { %v1453_v12 = vmax.f32 %v1325_v21, 0.0  ;;  %v1455_v31 = vmax.f32 %v1327_v40, 0.0  ;;  %v1297_v26 = vadd.f32 %v4354_v33, %v1121_v53  ;;  %v1409_v22 = vmax.f32 %v1281_v17, 0.0  ;;  %v6186_v40 = vld [vmem:[#allocation78_spill] sm:$0xff]  ;;  %v6187_v53 = vld [vmem:[#allocation79_spill] sm:$0xff] }
  0xcd   :  { %v1123_v60 = vadd.f32 %v6183_v16, %v691_v35  ;;  %v1283_v34 = vadd.f32 %v4348_v58, %v1107_v59  ;;  %v3368_v56 = vpack.c.bf16 %v1454_v49, %v1438_v13  ;;  %v3384_v52 = vpack.c.bf16 %v1456_v39, %v1440_v36  ;;  %v6190_v59 = vld [vmem:[#allocation91_spill] sm:$0xff]  ;;  %v6191_v49 = vld [vmem:[#allocation13_spill] sm:$0xff] }
  0xce   :  { %v3370_v32 = vpack.c.bf16 %v1453_v12, %v1437_v24  ;;  %v3386_v15 = vpack.c.bf16 %v1455_v31, %v1439_v57  ;;  %v350_v20 = vmul.f32 %v3812_v62, %v4521_v30  ;;  %v352_v19 = vmul.f32 %v3821_v1, %v4521_v30  ;;  %v6184_v24 = vld [vmem:[#allocation95_spill] sm:$0xff]  ;;  %v6185_v1 = vld [vmem:[#allocation77_spill] sm:$0xff] }
  0xcf   :  { %v349_v47 = vmul.f32 %v3833_v5, %v4521_v30  ;;  %v351_v18 = vmul.f32 %v3842_v8, %v4521_v30  ;;  %3369 = vmatprep.subr.bf16.mxu0 %v3368_v56  ;;  %3385 = vmatprep.subr.bf16.mxu1 %v3384_v52  ;;  %v1425_v16 = vmax.f32 %v1297_v26, 0.0  ;;  %v1299_v13 = vadd.f32 %v4354_v33, %v1123_v60  ;;  %v4541_v8 = vpop.permute.xlu1 %390  ;;  %v6194_v56 = vld [vmem:[#allocation86_spill] sm:$0xff] }
  0xd0   :  { %v1411_v36 = vmax.f32 %v1283_v34, 0.0  ;;  %v290_v57 = vmul.f32 %v3851_v11, %v6184_v24  ;;  %3371 = vmatpush1.bf16.msra.mxu0 %v3370_v32  ;;  %3387 = vmatpush1.bf16.msra.mxu1 %v3386_v15  ;;  %v782_v21 = vadd.f32 %v6185_v1, %v350_v20  ;;  %v784_v5 = vadd.f32 %v6186_v40, %v352_v19  ;;  %v6195_v20 = vld [vmem:[#allocation94_spill] sm:$0xff]  ;;  %v6196_v19 = vld [vmem:[#allocation15_spill] sm:$0xff] }
  0xd1   :  { %v781_v17 = vadd.f32 %v6187_v53, %v349_v47  ;;  %6188 = vst [vmem:[#allocation55_spill] sm:$0xff] %v4541_v8  ;;  %v783_v35 = vadd.f32 %v6189_v4, %v351_v18  ;;  %v4544_v25 = vpack.c.bf16 %v1425_v16, %v1409_v22  ;;  %v1427_v60 = vmax.f32 %v1299_v13, 0.0  ;;  %v6193_v22 = vld [vmem:[#allocation69_spill] sm:$0xff]  ;;  %v6197_v16 = vld [vmem:[#allocation102_spill] sm:$0xff]  ;;  %v6200_v53 = vld [vmem:[#allocation16_spill] sm:$0xff] }
  0xd2   :  { %v594_v39 = vmul.f32 %v6191_v49, %v6190_v59  ;;  %v638_v15 = vmul.f32 %v3815_v63, %v4541_v8  ;;  %v640_v12 = vmul.f32 %v3824_v2, %v4541_v8  ;;  %v637_v31 = vmul.f32 %v3836_v6, %v4541_v8  ;;  %v6198_v13 = vld [vmem:[#allocation46_spill] sm:$0xff] }
  0xd3   :  { %v639_v26 = vmul.f32 %v3845_v9, %v4541_v8  ;;  %v4556_v34 = vpack.c.bf16 %v1427_v60, %v1411_v36  ;;  %v706_v52 = vadd.f32 %v6194_v56, %v6193_v22  ;;  %v1026_v47 = vmul.f32 %v6196_v19, %v6195_v20  ;;  %v6199_v36 = vld [vmem:[#allocation19_spill] sm:$0xff]  ;;  %v4571_v4 = vpop.permute.xlu1 %822  ;;  %v6202_v60 = vld [vmem:[#allocation70_spill] sm:$0xff] }
  0xd4   :  { %v722_v32 = vadd.f32 %v594_v39, %v290_v57  ;;  %v766_v63 = vadd.f32 %v638_v15, %v4393_v55  ;;  %v768_v18 = vadd.f32 %v640_v12, %v4406_v50  ;;  %v765_v2 = vadd.f32 %v637_v31, %v4410_v41  ;;  %6201 = vst [vmem:[#allocation42_spill] sm:$0xff] %v4571_v4  ;;  %v6203_v39 = vld [vmem:[#allocation87_spill] sm:$0xff]  ;;  %v6204_v50 = vld [vmem:[#allocation17_spill] sm:$0xff]  ;;  %v6205_v41 = vld [vmem:[#allocation20_spill] sm:$0xff] }
  0xd5   :  { %6192 = vst [vmem:[#allocation34_spill] sm:$0xff] %v4556_v34  ;;  %v767_v6 = vadd.f32 %v639_v26, %v6197_v16  ;;  %v1138_v1 = vadd.f32 %v6198_v13, %v706_v52  ;;  %v292_v40 = vmul.f32 %v6199_v36, %v6184_v24  ;;  %v596_v57 = vmul.f32 %v6200_v53, %v6190_v59  ;;  %v6206_v31 = vld [vmem:[#allocation18_spill] sm:$0xff] }
  0xd6   :  { %v1154_v9 = vadd.f32 %v1026_v47, %v722_v32  ;;  %v708_v55 = vadd.f32 %v6203_v39, %v6202_v60  ;;  %v1028_v15 = vmul.f32 %v6204_v50, %v6195_v20  ;;  %v289_v12 = vmul.f32 %v6205_v41, %v6184_v24  ;;  %v6207_v60 = vld [vmem:[#allocation47_spill] sm:$0xff] }
  0xd7   :  { %v593_v26 = vmul.f32 %v6206_v31, %v6190_v59  ;;  %v1070_v22 = vmul.f32 %v3818_v0, %v4571_v4  ;;  %v1072_v56 = vmul.f32 %v3827_v3, %v4571_v4  ;;  %v1069_v52 = vmul.f32 %v3839_v7, %v4571_v4  ;;  %v4592_v8 = vpop.permute.xlu1 %826 }
  0xd8   :  { %v1071_v32 = vmul.f32 %v3848_v10, %v4571_v4  ;;  %v1314_v47 = vadd.f32 %v4476_v46, %v1138_v1  ;;  %v1330_v16 = vadd.f32 %v4502_v61, %v1154_v9  ;;  %v724_v13 = vadd.f32 %v596_v57, %v292_v40  ;;  %6208 = vst [vmem:[#allocation37_spill] sm:$0xff] %v4592_v8  ;;  %v6209_v40 = vld [vmem:[#allocation71_spill] sm:$0xff]  ;;  %v6210_v57 = vld [vmem:[#allocation88_spill] sm:$0xff] }
  0xd9   :  { %v1140_v39 = vadd.f32 %v6207_v60, %v708_v55  ;;  %v1198_v62 = vadd.f32 %v1070_v22, %v766_v63  ;;  %v1200_v33 = vadd.f32 %v1072_v56, %v768_v18  ;;  %v1197_v58 = vadd.f32 %v1069_v52, %v765_v2  ;;  %v4608_v52 = vpop.permute.xlu0 %1274 }
  0xda   :  { %v1199_v23 = vadd.f32 %v1071_v32, %v767_v6  ;;  %v1442_v30 = vmax.f32 %v1314_v47, 0.0  ;;  %v1458_v31 = vmax.f32 %v1330_v16, 0.0  ;;  %v1156_v38 = vadd.f32 %v1028_v15, %v724_v13  ;;  %6211 = vst [vmem:[#allocation50_spill] sm:$0xff] %v4608_v52 }
  0xdb   :  { %v1316_v34 = vadd.f32 %v4476_v46, %v1140_v39  ;;  %v1086_v4 = vmul.f32 %v3818_v0, %v4592_v8  ;;  %v1088_v1 = vmul.f32 %v3827_v3, %v4592_v8  ;;  %v1085_v9 = vmul.f32 %v3839_v7, %v4592_v8  ;;  %v6212_v7 = vld [vmem:[#allocation21_spill] sm:$0xff] }
  0xdc   :  { %v1087_v63 = vmul.f32 %v3848_v10, %v4592_v8  ;;  %v4603_v18 = vpack.c.bf16 %v1458_v31, %v1442_v30  ;;  %v1332_v2 = vadd.f32 %v4502_v61, %v1156_v38  ;;  %v705_v55 = vadd.f32 %v6210_v57, %v6209_v40  ;;  %v6213_v10 = vld [vmem:[#allocation48_spill] sm:$0xff]  ;;  %v4613_v31 = vpop.permute.xlu1 %1264 }
  0xdd   :  { %v1444_v6 = vmax.f32 %v1316_v34, 0.0  ;;  %v1214_v15 = vadd.f32 %v1086_v4, %v782_v21  ;;  %v1216_v22 = vadd.f32 %v1088_v1, %v784_v5  ;;  %v1213_v0 = vadd.f32 %v1085_v9, %v781_v17 }
  0xde   :  { %v1215_v56 = vadd.f32 %v1087_v63, %v783_v35  ;;  %v1460_v3 = vmax.f32 %v1332_v2, 0.0  ;;  %v721_v32 = vadd.f32 %v593_v26, %v289_v12  ;;  %v1025_v47 = vmul.f32 %v6212_v7, %v6195_v20 }
  0xdf   :  { %v1137_v30 = vadd.f32 %v6213_v10, %v705_v55  ;;  %v1390_v38 = vadd.f32 %v4608_v52, %v1214_v15  ;;  %v1392_v34 = vadd.f32 %v4608_v52, %v1216_v22  ;;  %v1389_v21 = vadd.f32 %v4608_v52, %v1213_v0 }
  0xe0   :  { %v1391_v5 = vadd.f32 %v4608_v52, %v1215_v56  ;;  %v1358_v17 = vadd.f32 %v4613_v31, %v4450_v27  ;;  %v1360_v35 = vadd.f32 %v4613_v31, %v4453_v54  ;;  %v1357_v4 = vadd.f32 %v4613_v31, %v4456_v48  ;;  %v4627_v2 = vpop.permute.xlu1 %1269 }
  0xe1   :  { %v1359_v12 = vadd.f32 %v4613_v31, %v4472_v51  ;;  %v1518_v26 = vmax.f32 %v1390_v38, 0.0  ;;  %v1520_v16 = vmax.f32 %v1392_v34, 0.0  ;;  %v1517_v13 = vmax.f32 %v1389_v21, 0.0  ;;  %6214 = vst [vmem:[#allocation51_spill] sm:$0xff] %v4627_v2  ;;  %v6220_v38 = vld [vmem:[#allocation73_spill] sm:$0xff]  ;;  %v6221_v34 = vld [vmem:[#allocation92_spill] sm:$0xff] }
  0xe2   :  { %v1519_v60 = vmax.f32 %v1391_v5, 0.0  ;;  %v1486_v39 = vmax.f32 %v1358_v17, 0.0  ;;  %v1488_v1 = vmax.f32 %v1360_v35, 0.0  ;;  %v1485_v9 = vmax.f32 %v1357_v4, 0.0  ;;  %v6223_v4 = vld [vmem:[#allocation53_spill] sm:$0xff] }
  0xe3   :  { %v1487_v63 = vmax.f32 %v1359_v12, 0.0  ;;  %v4629_v27 = vpack.c.bf16 %v1460_v3, %v1444_v6  ;;  %v1153_v40 = vadd.f32 %v1025_v47, %v721_v32  ;;  %v1313_v54 = vadd.f32 %v4476_v46, %v1137_v30  ;;  %v6219_v30 = vld [vmem:[#allocation22_spill] sm:$0xff] }
  0xe4   :  { %v291_v48 = vmul.f32 %v6163_v37, %v6184_v24  ;;  %v6215_v51 = vmax.f32 %v4479_v44, 0.0  ;;  %v6216_v55 = vmax.f32 %v4482_v45, 0.0  ;;  %v6217_v22 = vmax.f32 %v4485_v14, 0.0 }
  0xe5   :  { %v6218_v56 = vmax.f32 %v4500_v28, 0.0  ;;  %v1374_v6 = vadd.f32 %v4627_v2, %v1198_v62  ;;  %v1376_v3 = vadd.f32 %v4627_v2, %v1200_v33  ;;  %v1373_v32 = vadd.f32 %v4627_v2, %v1197_v58 }
  0xe6   :  { %v3372_v57 = vpack.c.bf16 %v1486_v39, %v6215_v51  ;;  %v3388_v15 = vpack.c.bf16 %v1488_v1, %v6216_v55  ;;  %v3374_v0 = vpack.c.bf16 %v1485_v9, %v6217_v22  ;;  %v1375_v47 = vadd.f32 %v4627_v2, %v1199_v23  ;;  %v6222_v23 = vld [vmem:[#allocation24_spill] sm:$0xff]  ;;  %v6226_v22 = vld [vmem:[#allocation101_spill] sm:$0xff] }
  0xe7   :  { %v3390_v10 = vpack.c.bf16 %v1487_v63, %v6218_v56  ;;  %v1329_v44 = vadd.f32 %v4502_v61, %v1153_v40  ;;  %v1441_v45 = vmax.f32 %v1313_v54, 0.0  ;;  %v595_v14 = vmul.f32 %v6219_v30, %v6190_v59 }
  0xe8   :  { %3373 = vmatprep.subr.bf16.mxu0 %v3372_v57  ;;  %3389 = vmatprep.subr.bf16.mxu1 %v3388_v15  ;;  %v707_v28 = vadd.f32 %v6221_v34, %v6220_v38  ;;  %v1502_v62 = vmax.f32 %v1374_v6, 0.0  ;;  %v1504_v21 = vmax.f32 %v1376_v3, 0.0  ;;  %v1501_v33 = vmax.f32 %v1373_v32, 0.0  ;;  %v6224_v57 = vld [vmem:[#allocation98_spill] sm:$0xff]  ;;  %v6225_v15 = vld [vmem:[#allocation100_spill] sm:$0xff] }
  0xe9   :  { %3375 = vmatpush1.bf16.msra.mxu0 %v3374_v0  ;;  %3391 = vmatpush1.bf16.msra.mxu1 %v3390_v10  ;;  %v1503_v5 = vmax.f32 %v1375_v47, 0.0  ;;  %v1457_v58 = vmax.f32 %v1329_v44, 0.0  ;;  %v723_v17 = vadd.f32 %v595_v14, %v291_v48  ;;  %v1027_v35 = vmul.f32 %v6222_v23, %v6195_v20  ;;  %v6229_v14 = vld [vmem:[#allocation75_spill] sm:$0xff] }
  0xea   :  { %v1139_v12 = vadd.f32 %v6223_v4, %v707_v28  ;;  %v3376_v39 = vpack.c.bf16 %v1518_v26, %v1502_v62  ;;  %v3392_v1 = vpack.c.bf16 %v1520_v16, %v1504_v21  ;;  %v3378_v9 = vpack.c.bf16 %v1517_v13, %v1501_v33  ;;  %v4666_v16 = vld [vmem:[%s5939_s3] sm:$0xff]  ;;  %v6231_v21 = vld [vmem:[#allocation34_spill] sm:$0xff]  ;;  %v4693_v33 = vld [vmem:[%s5939_s3 + $0x8] sm:$0xff] }
  0xeb   :  { %v3394_v63 = vpack.c.bf16 %v1519_v60, %v1503_v5  ;;  %v3402_v40 = vpack.c.bf16 %v1457_v58, %v1441_v45  ;;  %v1155_v54 = vadd.f32 %v1027_v35, %v723_v17  ;;  %v306_v55 = vmul.f32 %v3851_v11, %v6224_v57  ;;  %6227 = vst [vmem:[#allocation52_spill] sm:$0xff] %v4666_v16  ;;  %v6228_v60 = vld [vmem:[#allocation74_spill] sm:$0xff]  ;;  %v6233_v58 = vld [vmem:[#allocation23_spill] sm:$0xff] }
  0xec   :  { %v1315_v51 = vadd.f32 %v4476_v46, %v1139_v12  ;;  %3377 = vmatprep.subr.bf16.mxu0 %v3376_v39  ;;  %3393 = vmatprep.subr.bf16.mxu1 %v3392_v1  ;;  %v322_v48 = vmul.f32 %v3851_v11, %v6225_v15  ;;  %v626_v0 = vmul.f32 %v6191_v49, %v6226_v22  ;;  %v6234_v12 = vld [vmem:[#allocation60_spill] sm:$0xff]  ;;  %v6235_v1 = vmov 0.0  }
  0xed   :  { %v1042_v26 = vmul.f32 %v6196_v19, %v4447_v43  ;;  %3379 = vmatpush1.bf16.msra.mxu0 %v3378_v9  ;;  %3395 = vmatpush1.bf16.msra.mxu1 %v3394_v63  ;;  %v1331_v13 = vadd.f32 %v4502_v61, %v1155_v54  ;;  %v738_v56 = vadd.f32 %v6228_v60, %v306_v55  ;;  %v6236_v54 = vld [vmem:[#allocation18_spill] sm:$0xff] }
  0xee   :  { %v308_v10 = vmul.f32 %v6199_v36, %v6224_v57  ;;  %3397 = vmatprep.subr.bf16.mxu0 %v4474_v42  ;;  %3413 = vmatprep.subr.bf16.mxu1 %v4504_v29  ;;  %v1443_v6 = vmax.f32 %v1315_v51, 0.0  ;;  %v754_v3 = vadd.f32 %v626_v0, %v322_v48  ;;  %v324_v32 = vmul.f32 %v6199_v36, %v6225_v15  ;;  %v6230_v42 = vld [vmem:[#allocation59_spill] sm:$0xff]  ;;  %v4720_v60 = vld [vmem:[%s5939_s3 + $0x10] sm:$0xff] }
  0xef   :  { %v628_v47 = vmul.f32 %v6200_v53, %v6226_v22  ;;  %v1459_v44 = vmax.f32 %v1331_v13, 0.0  ;;  %v1170_v45 = vadd.f32 %v1042_v26, %v738_v56  ;;  %v1044_v34 = vmul.f32 %v6204_v50, %v4447_v43  ;;  %6232 = vst [vmem:[#allocation56_spill] sm:$0xff] %v4693_v33 }
  0xf0   :  { %v740_v38 = vadd.f32 %v6229_v14, %v308_v10  ;;  %3284 = vmatmul.mubr.msk.f32.vlgmr.msra.gmra.mrb[0].mxu0 %vm1589_vm0, %v4666_v16  ;;  %3292 = vmatmul.mubr.msk.f32.vlgmr.msra.gmra.mrb[0].mxu1 %vm1589_vm0, %v4666_v16  ;;  %v1186_v29 = vadd.f32 %v6230_v42, %v754_v3  ;;  %v305_v62 = vmul.f32 %v6205_v41, %v6224_v57  ;;  %v6240_v42 = vld [vmem:[#allocation99_spill] sm:$0xff] }
  0xf1   :  { %v756_v28 = vadd.f32 %v628_v47, %v324_v32  ;;  %3399 = vmatpush1.bf16.msra.mxu0 %v4544_v25  ;;  %3415 = vmatpush1.bf16.msra.mxu1 %v6231_v21  ;;  %v3418_v5 = vpack.c.bf16 %v1459_v44, %v1443_v6  ;;  %v1346_v17 = vadd.f32 %v6233_v58, %v1170_v45  ;;  %v6238_v47 = vld [vmem:[#allocation80_spill] sm:$0xff]  ;;  %v6239_v45 = vld [vmem:[#allocation61_spill] sm:$0xff] }
  0xf2   :  { %v1172_v35 = vadd.f32 %v1044_v34, %v740_v38  ;;  %3401 = vmatprep.subr.bf16.mxu0 %v4603_v18  ;;  %3417 = vmatprep.subr.bf16.mxu1 %v4629_v27  ;;  %v1362_v4 = vadd.f32 %v4613_v31, %v1186_v29  ;;  %v321_v25 = vmul.f32 %v6205_v41, %v6225_v15  ;;  %v6237_v18 = vld [vmem:[#allocation76_spill] sm:$0xff]  ;;  %v6241_v21 = vld [vmem:[#allocation33_spill] sm:$0xff] }
  0xf3   :  { %v1188_v39 = vadd.f32 %v6234_v12, %v756_v28  ;;  %1684 = vmatprep.mubr.f32.mxu0 %v6235_v1  ;;  %1797 = vmatprep.mubr.f32.mxu1 %v6235_v1  ;;  %v1474_v9 = vmax.f32 %v1346_v17, 0.0  ;;  %v625_v51 = vmul.f32 %v6236_v54, %v6226_v22  ;;  %v737_v55 = vadd.f32 %v6237_v18, %v305_v62  ;;  %v6246_v18 = vld [vmem:[#allocation42_spill] sm:$0xff] }
  0xf4   :  { %v1348_v63 = vadd.f32 %v6233_v58, %v1172_v35  ;;  %3285 = vmatmul.mubr.msk.f32.gmra.mrb[2].mxu0 %vm1589_vm0, %v4693_v33  ;;  %3293 = vmatmul.mubr.msk.f32.gmra.mrb[2].mxu1 %vm1589_vm0, %v4693_v33  ;;  %v1490_v27 = vmax.f32 %v1362_v4, 0.0  ;;  %v1041_v0 = vmul.f32 %v6212_v7, %v4447_v43  ;;  %v307_v26 = vmul.f32 %v6163_v37, %v6224_v57  ;;  %v6242_v4 = vld [vmem:[#allocation63_spill] sm:$0xff] }
  0xf5   :  { %v1364_v48 = vadd.f32 %v4613_v31, %v1188_v39  ;;  %3403 = vmatpush1.bf16.msra.mxu0 %v3402_v40  ;;  %3419 = vmatpush1.bf16.msra.mxu1 %v3418_v5  ;;  %v753_v56 = vadd.f32 %v625_v51, %v321_v25  ;;  %v323_v10 = vmul.f32 %v6163_v37, %v6225_v15  ;;  %v6243_v39 = vld [vmem:[#allocation55_spill] sm:$0xff] }
  0xf6   :  { %v1476_v13 = vmax.f32 %v1348_v63, 0.0  ;;  %v627_v6 = vmul.f32 %v6219_v30, %v6226_v22  ;;  %v3404_v3 = vpack.c.bf16 %v1490_v27, %v1474_v9  ;;  %1690 = vmatprep.mubr.f32.mxu0 %v6235_v1  ;;  %1803 = vmatprep.mubr.f32.mxu1 %v6235_v1  ;;  %v1169_v40 = vadd.f32 %v1041_v0, %v737_v55  ;;  %v4748_v9 = vld [vmem:[%s5939_s3 + $0x18] sm:$0xff] }
  0xf7   :  { %v1492_v32 = vmax.f32 %v1364_v48, 0.0  ;;  %v739_v44 = vadd.f32 %v6238_v47, %v307_v26  ;;  %v1185_v14 = vadd.f32 %v6239_v45, %v753_v56  ;;  %v1043_v34 = vmul.f32 %v6222_v23, %v4447_v43  ;;  %6244 = vst [vmem:[#allocation54_spill] sm:$0xff] %v4748_v9  ;;  %v6245_v51 = vld [vmem:[#allocation83_spill] sm:$0xff] }
  0xf8   :  { %v755_v38 = vadd.f32 %v627_v6, %v323_v10  ;;  %v338_v29 = vmul.f32 %v3851_v11, %v6240_v42  ;;  %3405 = vmatprep.subr.bf16.mxu0 %v3404_v3  ;;  %3286 = vmatmul.mubr.msk.f32.gmra.mrb[4].mxu0 %vm1589_vm0, %v4720_v60  ;;  %v1345_v62 = vadd.f32 %v6233_v58, %v1169_v40  ;;  %v4773_v47 = vld [vmem:[%s5939_s3 + $0x20] sm:$0xff] }
  0xf9   :  { %v3420_v28 = vpack.c.bf16 %v1492_v32, %v1476_v13  ;;  %v354_v5 = vmul.f32 %v3851_v11, %v6241_v21  ;;  %3294 = vmatmul.mubr.msk.f32.gmra.mrb[4].mxu1 %vm1589_vm0, %v4720_v60  ;;  %v1361_v17 = vadd.f32 %v4613_v31, %v1185_v14  ;;  %v1171_v35 = vadd.f32 %v1043_v34, %v739_v44  ;;  %v6248_v44 = vld [vmem:[#allocation84_spill] sm:$0xff] }
  0xfa   :  { %v1187_v12 = vadd.f32 %v6242_v4, %v755_v38  ;;  %v642_v25 = vmul.f32 %v6191_v49, %v6243_v39  ;;  %v1473_v63 = vmax.f32 %v1345_v62, 0.0  ;;  %v1074_v55 = vmul.f32 %v6196_v19, %v6246_v18  ;;  %1696 = vmatprep.mubr.f32.mxu0 %v6235_v1  ;;  %1809 = vmatprep.mubr.f32.mxu1 %v6235_v1 }
  0xfb   :  { %3421 = vmatprep.subr.bf16.mxu1 %v3420_v28  ;;  %v786_v11 = vadd.f32 %v6245_v51, %v354_v5  ;;  %v1090_v27 = vmul.f32 %v6196_v19, %v4592_v8  ;;  %v1489_v48 = vmax.f32 %v1361_v17, 0.0  ;;  %v1347_v49 = vadd.f32 %v6233_v58, %v1171_v35  ;;  %6247 = vst [vmem:[#allocation38_spill] sm:$0xff] %v4773_v47  ;;  %v6249_v51 = vld [vmem:[#allocation85_spill] sm:$0xff] }
  0xfc   :  { %v1363_v0 = vadd.f32 %v4613_v31, %v1187_v12  ;;  %v770_v26 = vadd.f32 %v642_v25, %v338_v29  ;;  %v340_v56 = vmul.f32 %v6199_v36, %v6240_v42  ;;  %v356_v10 = vmul.f32 %v6199_v36, %v6241_v21  ;;  %3287 = vmatmul.mubr.msk.f32.gmra.mrb[6].mxu0 %vm1589_vm0, %v4748_v9 }
  0xfd   :  { %v1218_v13 = vadd.f32 %v1090_v27, %v786_v11  ;;  %v644_v19 = vmul.f32 %v6200_v53, %v6243_v39  ;;  %v3406_v6 = vpack.c.bf16 %v1489_v48, %v1473_v63  ;;  %v1475_v3 = vmax.f32 %v1347_v49, 0.0  ;;  %3295 = vmatmul.mubr.msk.f32.gmra.mrb[6].mxu1 %vm1589_vm0, %v4748_v9  ;;  %1702 = vmatprep.mubr.f32.mxu0 %v6235_v1 }
  0xfe   :  { %v1491_v32 = vmax.f32 %v1363_v0, 0.0  ;;  %v1202_v40 = vadd.f32 %v1074_v55, %v770_v26  ;;  %v788_v45 = vadd.f32 %v6248_v44, %v356_v10  ;;  %v1076_v14 = vmul.f32 %v6204_v50, %v6246_v18  ;;  %1815 = vmatprep.mubr.f32.mxu1 %v6235_v1 }
  0xff   :  { %v1394_v36 = vadd.f32 %v4608_v52, %v1218_v13  ;;  %v772_v53 = vadd.f32 %v644_v19, %v340_v56  ;;  %3407 = vmatpush1.bf16.msra.mxu0 %v3406_v6  ;;  %v1092_v29 = vmul.f32 %v6204_v50, %v4592_v8  ;;  %v337_v28 = vmul.f32 %v6205_v41, %v6240_v42  ;;  %v6250_v6 = vld [vmem:[#allocation89_spill] sm:$0xff] }
 0x100   :  { %v3422_v38 = vpack.c.bf16 %v1491_v32, %v1475_v3  ;;  %v1378_v34 = vadd.f32 %v4627_v2, %v1202_v40  ;;  %v353_v17 = vmul.f32 %v6205_v41, %v6241_v21  ;;  %v641_v35 = vmul.f32 %v6236_v54, %v6243_v39  ;;  %3288 = vmatmul.mubr.msk.f32.gmra.mrb[8].mxu0 %vm1589_vm0, %v4773_v47  ;;  %v4799_v41 = vld [vmem:[%s5939_s3 + $0x28] sm:$0xff] }
 0x101   :  { %v1522_v62 = vmax.f32 %v1394_v36, 0.0  ;;  %v1204_v5 = vadd.f32 %v1076_v14, %v772_v53  ;;  %v1220_v12 = vadd.f32 %v1092_v29, %v788_v45  ;;  %v1073_v50 = vmul.f32 %v6212_v7, %v6246_v18  ;;  %1708 = vmatprep.mubr.f32.mxu0 %v6235_v1  ;;  %3296 = vmatmul.mubr.msk.f32.gmra.mrb[8].mxu1 %vm1589_vm0, %v4773_v47  ;;  %v6251_v36 = vld [vmem:[#allocation90_spill] sm:$0xff]  ;;  %v6252_v53 = vld [vmem:[#allocation25_spill] sm:$0xff] }
 0x102   :  { %3423 = vmatpush1.bf16.msra.mxu1 %v3422_v38  ;;  %v1506_v4 = vmax.f32 %v1378_v34, 0.0  ;;  %v1089_v25 = vmul.f32 %v6212_v7, %v4592_v8  ;;  %v769_v63 = vadd.f32 %v641_v35, %v337_v28  ;;  %v785_v11 = vadd.f32 %v6249_v51, %v353_v17  ;;  %1821 = vmatprep.mubr.f32.mxu1 %v6235_v1  ;;  %v6253_v45 = vld [vmem:[#allocation93_spill] sm:$0xff]  ;;  %v6254_v29 = vld [vmem:[#allocation30_spill] sm:$0xff]  ;;  %v6255_v17 = vld [vmem:[#allocation64_spill] sm:$0xff] }
 0x103   :  { %v1380_v54 = vadd.f32 %v4627_v2, %v1204_v5  ;;  %v339_v55 = vmul.f32 %v6163_v37, %v6240_v42  ;;  %v1396_v7 = vadd.f32 %v4608_v52, %v1220_v12  ;;  %v355_v48 = vmul.f32 %v6163_v37, %v6241_v21  ;;  %v6258_v51 = vld [vmem:[#allocation31_spill] sm:$0xff] }
 0x104   :  { %v3408_v27 = vpack.c.bf16 %v1522_v62, %v1506_v4  ;;  %v643_v49 = vmul.f32 %v6219_v30, %v6243_v39  ;;  %v1201_v26 = vadd.f32 %v1073_v50, %v769_v63  ;;  %v1217_v13 = vadd.f32 %v1089_v25, %v785_v11  ;;  %3289 = vmatmul.mubr.msk.f32.gmra.mrb[10].mxu0 %vm1589_vm0, %v4799_v41  ;;  %v4824_v30 = vld [vmem:[%s5939_s3 + $0x30] sm:$0xff]  ;;  %v6257_v63 = vld [vmem:[#allocation27_spill] sm:$0xff] }
 0x105   :  { %v1508_v0 = vmax.f32 %v1380_v54, 0.0  ;;  %v1075_v56 = vmul.f32 %v6222_v23, %v6246_v18  ;;  %v1524_v10 = vmax.f32 %v1396_v7, 0.0  ;;  %v787_v3 = vadd.f32 %v6250_v6, %v355_v48  ;;  %1714 = vmatprep.mubr.f32.mxu0 %v6235_v1  ;;  %3297 = vmatmul.mubr.msk.f32.gmra.mrb[10].mxu1 %vm1589_vm0, %v4799_v41  ;;  %v6256_v4 = vld [vmem:[#allocation65_spill] sm:$0xff]  ;;  %v6260_v48 = vld [vmem:[#allocation68_spill] sm:$0xff] }
 0x106   :  { %3409 = vmatprep.subr.bf16.mxu0 %v3408_v27  ;;  %v771_v19 = vadd.f32 %v643_v49, %v339_v55  ;;  %v1091_v37 = vmul.f32 %v6222_v23, %v4592_v8  ;;  %v1377_v32 = vadd.f32 %v4627_v2, %v1201_v26  ;;  %v1393_v40 = vadd.f32 %v4608_v52, %v1217_v13  ;;  %v6259_v27 = vld [vmem:[#allocation66_spill] sm:$0xff]  ;;  %v6263_v6 = vld [vmem:[#allocation9_spill] sm:$0xff] }
 0x107   :  { %v246_v44 = vmul.f32 %v6252_v53, %v6251_v36  ;;  %v262_v14 = vmul.f32 %v6252_v53, %v6253_v45  ;;  %v3424_v23 = vpack.c.bf16 %v1524_v10, %v1508_v0  ;;  %v248_v28 = vmul.f32 %v6254_v29, %v6251_v36  ;;  %1827 = vmatprep.mubr.f32.mxu1 %v6235_v1  ;;  %v6261_v0 = vld [vmem:[#allocation35_spill] sm:$0xff] }
 0x108   :  { %v1203_v38 = vadd.f32 %v1075_v56, %v771_v19  ;;  %v1219_v34 = vadd.f32 %v1091_v37, %v787_v3  ;;  %v1505_v62 = vmax.f32 %v1377_v32, 0.0  ;;  %v1521_v5 = vmax.f32 %v1393_v40, 0.0  ;;  %3290 = vmatmul.mubr.msk.f32.gmra.mrb[12].mxu0 %vm1589_vm0, %v4824_v30  ;;  %v4856_v13 = vld [vmem:[%s5939_s3 + $0x38] sm:$0xff]  ;;  %v3577_v19 = vld [vmem:[%s5936_s0 + $0x28] sm:$0x77] }
 0x109   :  { %v678_v35 = vadd.f32 %v6255_v17, %v246_v44  ;;  %v694_v12 = vadd.f32 %v6256_v4, %v262_v14  ;;  %3425 = vmatprep.subr.bf16.mxu1 %v3424_v23  ;;  %v264_v54 = vmul.f32 %v6254_v29, %v6253_v45  ;;  %v552_v11 = vmul.f32 %v6258_v51, %v6257_v63  ;;  %v6264_v37 = vld [vmem:[#allocation11_spill] sm:$0xff]  ;;  %v6265_v32 = vld [vmem:[#allocation14_spill] sm:$0xff]  ;;  %v6267_v14 = vld [vmem:[#allocation96_spill] sm:$0xff] }
 0x10a   :  { %v1379_v50 = vadd.f32 %v4627_v2, %v1203_v38  ;;  %v1395_v25 = vadd.f32 %v4608_v52, %v1219_v34  ;;  %v3410_v55 = vpack.c.bf16 %v1521_v5, %v1505_v62  ;;  %v568_v26 = vmul.f32 %v6258_v51, %v6261_v0  ;;  %3298 = vmatmul.mubr.msk.f32.gmra.mrb[12].mxu1 %vm1589_vm0, %v4824_v30  ;;  %v6268_v38 = vld [vmem:[#allocation97_spill] sm:$0xff] }
 0x10b   :  { %v1110_v7 = vadd.f32 %v6259_v27, %v678_v35  ;;  %v1126_v49 = vadd.f32 %v6260_v48, %v694_v12  ;;  %6262 = vst [vmem:[#allocation43_spill] sm:$0xff] %v4856_v13  ;;  %v876_v3 = vrot.slane %v3577_v19, %v6263_v6  ;;  %1720 = vmatprep.mubr.f32.mxu0 %v6235_v1  ;;  %v6269_v35 = vld [vmem:[#allocation12_spill] sm:$0xff] }
 0x10c   :  { %v1507_v56 = vmax.f32 %v1379_v50, 0.0  ;;  %v1523_v10 = vmax.f32 %v1395_v25, 0.0  ;;  %1833 = vmatprep.mubr.f32.mxu1 %v6235_v1  ;;  %v6266_v40 = vrot.slane %v6265_v32, %v6264_v37  ;;  %3411 = vmatpush1.bf16.msra.mxu0 %v3410_v55  ;;  %v680_v62 = vadd.f32 %v552_v11, %v248_v28  ;;  %v3578_v12 = vld [vmem:[%s5936_s0 + $0x20] sm:$0x77]  ;;  %v6270_v50 = vld [vmem:[#allocation10_spill] sm:$0xff] }
 0x10d   :  { %v1286_v23 = vadd.f32 %v6267_v14, %v1110_v7  ;;  %v1302_v34 = vadd.f32 %v6268_v38, %v1126_v49  ;;  %v696_v5 = vadd.f32 %v568_v26, %v264_v54  ;;  %v4873_v4 = vrot.slane %v876_v3, %v6269_v35  ;;  %3291 = vmatmul.mubr.msk.f32.gmra.mrb[14].mxu0 %vm1589_vm0, %v4856_v13  ;;  %v6271_v55 = vld [vmem:[#allocation32_spill] sm:$0xff]  ;;  %v6273_v26 = vld [vmem:[#allocation49_spill] sm:$0xff] }
 0x10e   :  { %v4868_v44 = vrot.slane %v6266_v40, %v6264_v37  ;;  %v3426_v17 = vpack.c.bf16 %v1523_v10, %v1507_v56  ;;  %v128_v25 = vrot.slane %v3578_v12, %v6270_v50  ;;  %v549_v27 = vmul.f32 %v6271_v55, %v6257_v63  ;;  %3299 = vmatmul.mubr.msk.f32.gmra.mrb[14].mxu1 %vm1589_vm0, %v4856_v13  ;;  %v6272_v11 = vld [vmem:[#allocation28_spill] sm:$0xff] }
 0x10f   :  { %v1414_v7 = vmax.f32 %v1286_v23, 0.0  ;;  %v1430_v48 = vmax.f32 %v1302_v34, 0.0  ;;  %1904 = vmatprep.mubr.f32.mxu0 %v6235_v1  ;;  %v565_v28 = vmul.f32 %v6271_v55, %v6261_v0  ;;  %v864_v54 = vrot.slane %v3578_v12, %v6269_v35  ;;  %2017 = vmatprep.mubr.f32.mxu1 %v6235_v1 }
 0x110   :  { %3427 = vmatpush1.bf16.msra.mxu1 %v3426_v17  ;;  %v984_v49 = vmul.f32 %v4873_v4, %v6272_v11  ;;  %v1000_v56 = vmul.f32 %v4873_v4, %v6273_v26  ;;  %v4895_v10 = vrot.slane %v128_v25, %v6270_v50  ;;  %v136_v40 = vrot.slane %v3577_v19, %v6270_v50 }
 0x111   :  { %v3428_v3 = vpack.c.bf16 %v1430_v48, %v1414_v7  ;;  %v4898_v32 = vrot.slane %v864_v54, %v6269_v35  ;;  %v551_v23 = vmul.f32 %v4868_v44, %v6257_v63  ;;  %3300 = vmatmul.mubr.msk.f32.vlgmr.msra.gmra.mrb[16].mxu0 %vm1589_vm0, %v4666_v16  ;;  %v567_v63 = vmul.f32 %v4868_v44, %v6261_v0 }
 0x112   :  { %v1112_v34 = vadd.f32 %v984_v49, %v680_v62  ;;  %v1128_v17 = vadd.f32 %v1000_v56, %v696_v5  ;;  %v245_v12 = vmul.f32 %v4895_v10, %v6251_v36  ;;  %v261_v25 = vmul.f32 %v4895_v10, %v6253_v45  ;;  %1910 = vmatprep.mubr.f32.mxu0 %v6235_v1 }
 0x113   :  { %3429 = vmatprep.subr.bf16.mxu0 %v3428_v3  ;;  %3308 = vmatmul.mubr.msk.f32.vlgmr.msra.gmra.mrb[16].mxu1 %vm1589_vm0, %v4666_v16  ;;  %v981_v7 = vmul.f32 %v4898_v32, %v6272_v11  ;;  %v997_v62 = vmul.f32 %v4898_v32, %v6273_v26  ;;  %v4916_v5 = vrot.slane %v136_v40, %v6270_v50 }
 0x114   :  { %v1288_v48 = vadd.f32 %v6267_v14, %v1112_v34  ;;  %v1304_v54 = vadd.f32 %v6268_v38, %v1128_v17  ;;  %v677_v49 = vadd.f32 %v549_v27, %v245_v12  ;;  %v693_v56 = vadd.f32 %v565_v28, %v261_v25  ;;  %2023 = vmatprep.mubr.f32.mxu1 %v6235_v1 }
 0x115   :  { %v247_v3 = vmul.f32 %v4916_v5, %v6251_v36  ;;  %v263_v16 = vmul.f32 %v4916_v5, %v6253_v45  ;;  %v872_v40 = vrot.slane %v3577_v19, %v6269_v35  ;;  %3301 = vmatmul.mubr.msk.f32.gmra.mrb[18].mxu0 %vm1589_vm0, %v4693_v33  ;;  %v6274_v45 = vld [vmem:[#allocation67_spill] sm:$0xff] }
 0x116   :  { %v1416_v34 = vmax.f32 %v1288_v48, 0.0  ;;  %v1432_v37 = vmax.f32 %v1304_v54, 0.0  ;;  %v1109_v17 = vadd.f32 %v981_v7, %v677_v49  ;;  %v1125_v27 = vadd.f32 %v997_v62, %v693_v56  ;;  %1916 = vmatprep.mubr.f32.mxu0 %v6235_v1  ;;  %v6276_v54 = vld [vmem:[#allocation26_spill] sm:$0xff] }
 0x117   :  { %v679_v28 = vadd.f32 %v551_v23, %v247_v3  ;;  %v695_v12 = vadd.f32 %v567_v63, %v263_v16  ;;  %v4932_v25 = vrot.slane %v872_v40, %v6269_v35  ;;  %v278_v36 = vmul.f32 %v6252_v53, %v6274_v45  ;;  %3309 = vmatmul.mubr.msk.f32.gmra.mrb[18].mxu1 %vm1589_vm0, %v4693_v33  ;;  %v6275_v23 = vld [vmem:[#allocation81_spill] sm:$0xff]  ;;  %v6277_v40 = vld [vmem:[#allocation36_spill] sm:$0xff] }
 0x118   :  { %v3444_v19 = vpack.c.bf16 %v1432_v37, %v1416_v34  ;;  %v1285_v48 = vadd.f32 %v6267_v14, %v1109_v17  ;;  %v1301_v7 = vadd.f32 %v6268_v38, %v1125_v27  ;;  %v294_v62 = vmul.f32 %v6252_v53, %v6184_v24  ;;  %2029 = vmatprep.mubr.f32.mxu1 %v6235_v1  ;;  %v6278_v34 = vld [vmem:[#allocation29_spill] sm:$0xff] }
 0x119   :  { %v983_v16 = vmul.f32 %v4932_v25, %v6272_v11  ;;  %v999_v63 = vmul.f32 %v4932_v25, %v6273_v26  ;;  %v582_v49 = vmul.f32 %v6276_v54, %v6275_v23  ;;  %v598_v37 = vmul.f32 %v6276_v54, %v6190_v59  ;;  %3302 = vmatmul.mubr.msk.f32.gmra.mrb[20].mxu0 %vm1589_vm0, %v4720_v60 }
 0x11a   :  { %3445 = vmatprep.subr.bf16.mxu1 %v3444_v19  ;;  %v1413_v56 = vmax.f32 %v1285_v48, 0.0  ;;  %v1429_v3 = vmax.f32 %v1301_v7, 0.0  ;;  %v1014_v17 = vmul.f32 %v6278_v34, %v6277_v40  ;;  %v1030_v27 = vmul.f32 %v6278_v34, %v6195_v20  ;;  %1922 = vmatprep.mubr.f32.mxu0 %v6235_v1 }
 0x11b   :  { %v1111_v33 = vadd.f32 %v983_v16, %v679_v28  ;;  %v1127_v26 = vadd.f32 %v999_v63, %v695_v12  ;;  %v710_v11 = vadd.f32 %v582_v49, %v278_v36  ;;  %v726_v0 = vadd.f32 %v598_v37, %v294_v62  ;;  %3310 = vmatmul.mubr.msk.f32.gmra.mrb[20].mxu1 %vm1589_vm0, %v4720_v60 }
 0x11c   :  { %v3430_v35 = vpack.c.bf16 %v1429_v3, %v1413_v56  ;;  %v280_v19 = vmul.f32 %v6254_v29, %v6274_v45  ;;  %v296_v48 = vmul.f32 %v6254_v29, %v6184_v24  ;;  %v584_v7 = vmul.f32 %v6258_v51, %v6275_v23  ;;  %2035 = vmatprep.mubr.f32.mxu1 %v6235_v1 }
 0x11d   :  { %v1287_v28 = vadd.f32 %v6267_v14, %v1111_v33  ;;  %v1303_v36 = vadd.f32 %v6268_v38, %v1127_v26  ;;  %v1142_v12 = vadd.f32 %v1014_v17, %v710_v11  ;;  %v1158_v62 = vadd.f32 %v1030_v27, %v726_v0  ;;  %3303 = vmatmul.mubr.msk.f32.gmra.mrb[22].mxu0 %vm1589_vm0, %v4748_v9 }
 0x11e   :  { %3431 = vmatpush1.bf16.msra.mxu0 %v3430_v35  ;;  %v600_v16 = vmul.f32 %v6258_v51, %v6190_v59  ;;  %v712_v63 = vadd.f32 %v584_v7, %v280_v19  ;;  %v1016_v49 = vmul.f32 %v4873_v4, %v6277_v40  ;;  %v1032_v37 = vmul.f32 %v4873_v4, %v6195_v20 }
 0x11f   :  { %v1415_v56 = vmax.f32 %v1287_v28, 0.0  ;;  %v1431_v3 = vmax.f32 %v1303_v36, 0.0  ;;  %v1318_v33 = vadd.f32 %v4476_v46, %v1142_v12  ;;  %v1334_v11 = vadd.f32 %v4502_v61, %v1158_v62  ;;  %3311 = vmatmul.mubr.msk.f32.gmra.mrb[22].mxu1 %vm1589_vm0, %v4748_v9  ;;  %1928 = vmatprep.mubr.f32.mxu0 %v6235_v1 }
 0x120   :  { %v728_v0 = vadd.f32 %v600_v16, %v296_v48  ;;  %v1144_v35 = vadd.f32 %v1016_v49, %v712_v63  ;;  %v277_v26 = vmul.f32 %v4895_v10, %v6274_v45  ;;  %v293_v17 = vmul.f32 %v4895_v10, %v6184_v24  ;;  %2041 = vmatprep.mubr.f32.mxu1 %v6235_v1 }
 0x121   :  { %v3446_v27 = vpack.c.bf16 %v1431_v3, %v1415_v56  ;;  %v1446_v19 = vmax.f32 %v1318_v33, 0.0  ;;  %v1462_v7 = vmax.f32 %v1334_v11, 0.0  ;;  %v581_v28 = vmul.f32 %v6271_v55, %v6275_v23  ;;  %3304 = vmatmul.mubr.msk.f32.gmra.mrb[24].mxu0 %vm1589_vm0, %v4773_v47 }
 0x122   :  { %v1160_v36 = vadd.f32 %v1032_v37, %v728_v0  ;;  %v1320_v48 = vadd.f32 %v4476_v46, %v1144_v35  ;;  %v597_v12 = vmul.f32 %v6271_v55, %v6190_v59  ;;  %v1013_v62 = vmul.f32 %v4898_v32, %v6277_v40  ;;  %1934 = vmatprep.mubr.f32.mxu0 %v6235_v1 }
 0x123   :  { %3447 = vmatpush1.bf16.msra.mxu1 %v3446_v27  ;;  %v3432_v16 = vpack.c.bf16 %v1462_v7, %v1446_v19  ;;  %v709_v63 = vadd.f32 %v581_v28, %v277_v26  ;;  %v1029_v49 = vmul.f32 %v4898_v32, %v6195_v20  ;;  %v279_v56 = vmul.f32 %v4916_v5, %v6274_v45 }
 0x124   :  { %v1336_v3 = vadd.f32 %v4502_v61, %v1160_v36  ;;  %v1448_v37 = vmax.f32 %v1320_v48, 0.0  ;;  %v725_v33 = vadd.f32 %v597_v12, %v293_v17  ;;  %v295_v11 = vmul.f32 %v4916_v5, %v6184_v24  ;;  %3312 = vmatmul.mubr.msk.f32.gmra.mrb[24].mxu1 %vm1589_vm0, %v4773_v47 }
 0x125   :  { %3433 = vmatprep.subr.bf16.mxu0 %v3432_v16  ;;  %v1141_v0 = vadd.f32 %v1013_v62, %v709_v63  ;;  %v583_v35 = vmul.f32 %v4868_v44, %v6275_v23  ;;  %v599_v26 = vmul.f32 %v4868_v44, %v6190_v59  ;;  %v1015_v17 = vmul.f32 %v4932_v25, %v6277_v40 }
 0x126   :  { %v1464_v27 = vmax.f32 %v1336_v3, 0.0  ;;  %v1157_v19 = vadd.f32 %v1029_v49, %v725_v33  ;;  %v1031_v7 = vmul.f32 %v4932_v25, %v6195_v20  ;;  %v310_v28 = vmul.f32 %v6252_v53, %v6224_v57  ;;  %2047 = vmatprep.mubr.f32.mxu1 %v6235_v1  ;;  %v6279_v49 = vld [vmem:[#allocation62_spill] sm:$0xff]  ;;  %3305 = vmatmul.mubr.msk.f32.gmra.mrb[26].mxu0 %vm1589_vm0, %v4799_v41 }
 0x127   :  { %v1317_v36 = vadd.f32 %v4476_v46, %v1141_v0  ;;  %v711_v48 = vadd.f32 %v583_v35, %v279_v56  ;;  %v727_v12 = vadd.f32 %v599_v26, %v295_v11  ;;  %v326_v62 = vmul.f32 %v6252_v53, %v6225_v15  ;;  %1940 = vmatprep.mubr.f32.mxu0 %v6235_v1  ;;  %v6280_v26 = vld [vmem:[#allocation44_spill] sm:$0xff] }
 0x128   :  { %v3448_v16 = vpack.c.bf16 %v1464_v27, %v1448_v37  ;;  %v1333_v63 = vadd.f32 %v4502_v61, %v1157_v19  ;;  %v614_v3 = vmul.f32 %v6276_v54, %v6279_v49  ;;  %v630_v33 = vmul.f32 %v6276_v54, %v6226_v22  ;;  %3313 = vmatmul.mubr.msk.f32.gmra.mrb[26].mxu1 %vm1589_vm0, %v4799_v41 }
 0x129   :  { %v1445_v47 = vmax.f32 %v1317_v36, 0.0  ;;  %v1143_v9 = vadd.f32 %v1015_v17, %v711_v48  ;;  %v1159_v0 = vadd.f32 %v1031_v7, %v727_v12  ;;  %v1046_v56 = vmul.f32 %v6278_v34, %v4447_v43  ;;  %2053 = vmatprep.mubr.f32.mxu1 %v6235_v1 }
 0x12a   :  { %3449 = vmatprep.subr.bf16.mxu1 %v3448_v16  ;;  %v1461_v37 = vmax.f32 %v1333_v63, 0.0  ;;  %v742_v11 = vadd.f32 %v614_v3, %v310_v28  ;;  %v758_v35 = vadd.f32 %v630_v33, %v326_v62  ;;  %v1062_v27 = vmul.f32 %v6278_v34, %v6280_v26  ;;  %3306 = vmatmul.mubr.msk.f32.gmra.mrb[28].mxu0 %vm1589_vm0, %v4824_v30 }
 0x12b   :  { %v1319_v17 = vadd.f32 %v4476_v46, %v1143_v9  ;;  %v1335_v19 = vadd.f32 %v4502_v61, %v1159_v0  ;;  %v312_v7 = vmul.f32 %v6254_v29, %v6224_v57  ;;  %v328_v36 = vmul.f32 %v6254_v29, %v6225_v15  ;;  %1946 = vmatprep.mubr.f32.mxu0 %v6235_v1 }
 0x12c   :  { %v3434_v48 = vpack.c.bf16 %v1461_v37, %v1445_v47  ;;  %v1174_v12 = vadd.f32 %v1046_v56, %v742_v11  ;;  %v1190_v16 = vadd.f32 %v1062_v27, %v758_v35  ;;  %v616_v28 = vmul.f32 %v6258_v51, %v6279_v49  ;;  %3314 = vmatmul.mubr.msk.f32.gmra.mrb[28].mxu1 %vm1589_vm0, %v4824_v30 }
 0x12d   :  { %v1447_v62 = vmax.f32 %v1319_v17, 0.0  ;;  %v1463_v63 = vmax.f32 %v1335_v19, 0.0  ;;  %v632_v9 = vmul.f32 %v6258_v51, %v6226_v22  ;;  %v1048_v3 = vmul.f32 %v4873_v4, %v4447_v43  ;;  %2059 = vmatprep.mubr.f32.mxu1 %v6235_v1 }
 0x12e   :  { %3435 = vmatpush1.bf16.msra.mxu0 %v3434_v48  ;;  %v1350_v47 = vadd.f32 %v6233_v58, %v1174_v12  ;;  %v1366_v33 = vadd.f32 %v4613_v31, %v1190_v16  ;;  %v744_v0 = vadd.f32 %v616_v28, %v312_v7  ;;  %v1064_v56 = vmul.f32 %v4873_v4, %v6280_v26 }
 0x12f   :  { %v3450_v37 = vpack.c.bf16 %v1463_v63, %v1447_v62  ;;  %v760_v11 = vadd.f32 %v632_v9, %v328_v36  ;;  %v309_v35 = vmul.f32 %v4895_v10, %v6224_v57  ;;  %v325_v27 = vmul.f32 %v4895_v10, %v6225_v15  ;;  %3307 = vmatmul.mubr.msk.f32.gmra.mrb[30].mxu0 %vm1589_vm0, %v4856_v13 }
 0x130   :  { %v1478_v17 = vmax.f32 %v1350_v47, 0.0  ;;  %v1494_v19 = vmax.f32 %v1366_v33, 0.0  ;;  %v1176_v48 = vadd.f32 %v1048_v3, %v744_v0  ;;  %v613_v12 = vmul.f32 %v6271_v55, %v6279_v49  ;;  %3315 = vmatmul.mubr.msk.f32.gmra.mrb[30].mxu1 %vm1589_vm0, %v4856_v13  ;;  %2130 = vmatprep.mubr.f32.mxu0 %v6235_v1 }
 0x131   :  { %3451 = vmatpush1.bf16.msra.mxu1 %v3450_v37  ;;  %v1192_v7 = vadd.f32 %v1064_v56, %v760_v11  ;;  %v629_v36 = vmul.f32 %v6271_v55, %v6226_v22  ;;  %v1045_v16 = vmul.f32 %v4898_v32, %v4447_v43  ;;  %v1061_v28 = vmul.f32 %v4898_v32, %v6280_v26 }
 0x132   :  { %v3436_v62 = vpack.c.bf16 %v1494_v19, %v1478_v17  ;;  %v1352_v63 = vadd.f32 %v6233_v58, %v1176_v48  ;;  %v741_v9 = vadd.f32 %v613_v12, %v309_v35  ;;  %v311_v3 = vmul.f32 %v4916_v5, %v6224_v57  ;;  %2243 = vmatprep.mubr.f32.mxu1 %v6235_v1 }
 0x133   :  { %v1368_v47 = vadd.f32 %v4613_v31, %v1192_v7  ;;  %v757_v33 = vadd.f32 %v629_v36, %v325_v27  ;;  %v327_v0 = vmul.f32 %v4916_v5, %v6225_v15  ;;  %v615_v56 = vmul.f32 %v4868_v44, %v6279_v49 }
 0x134   :  { %3437 = vmatprep.subr.bf16.mxu0 %v3436_v62  ;;  %v1480_v37 = vmax.f32 %v1352_v63, 0.0  ;;  %v1173_v11 = vadd.f32 %v1045_v16, %v741_v9  ;;  %v631_v35 = vmul.f32 %v4868_v44, %v6226_v22  ;;  %v1047_v17 = vmul.f32 %v4932_v25, %v4447_v43 }
 0x135   :  { %v1496_v27 = vmax.f32 %v1368_v47, 0.0  ;;  %v1189_v19 = vadd.f32 %v1061_v28, %v757_v33  ;;  %v743_v48 = vadd.f32 %v615_v56, %v311_v3  ;;  %v1063_v12 = vmul.f32 %v4932_v25, %v6280_v26  ;;  %v6281_v33 = vld [vmem:[#allocation72_spill] sm:$0xff] }
 0x136   :  { %v1349_v7 = vadd.f32 %v6233_v58, %v1173_v11  ;;  %v759_v36 = vadd.f32 %v631_v35, %v327_v0  ;;  %v342_v16 = vmul.f32 %v6252_v53, %v6240_v42  ;;  %v358_v62 = vmul.f32 %v6252_v53, %v6241_v21 }
 0x137   :  { %v3452_v63 = vpack.c.bf16 %v1496_v27, %v1480_v37  ;;  %v1365_v9 = vadd.f32 %v4613_v31, %v1189_v19  ;;  %v1175_v13 = vadd.f32 %v1047_v17, %v743_v48  ;;  %v646_v28 = vmul.f32 %v6276_v54, %v6243_v39 }
 0x138   :  { %v1477_v3 = vmax.f32 %v1349_v7, 0.0  ;;  %v1191_v47 = vadd.f32 %v1063_v12, %v759_v36  ;;  %v662_v56 = vmul.f32 %v6276_v54, %v6281_v33  ;;  %v1078_v0 = vmul.f32 %v6278_v34, %v6246_v18 }
 0x139   :  { %3453 = vmatprep.subr.bf16.mxu1 %v3452_v63  ;;  %v1493_v11 = vmax.f32 %v1365_v9, 0.0  ;;  %v1351_v35 = vadd.f32 %v6233_v58, %v1175_v13  ;;  %v774_v53 = vadd.f32 %v646_v28, %v342_v16  ;;  %v1094_v37 = vmul.f32 %v6278_v34, %v4592_v8 }
 0x13a   :  { %v1367_v17 = vadd.f32 %v4613_v31, %v1191_v47  ;;  %v790_v27 = vadd.f32 %v662_v56, %v358_v62  ;;  %v344_v19 = vmul.f32 %v6254_v29, %v6240_v42  ;;  %v360_v54 = vmul.f32 %v6254_v29, %v6241_v21 }
 0x13b   :  { %v3438_v48 = vpack.c.bf16 %v1493_v11, %v1477_v3  ;;  %v1479_v12 = vmax.f32 %v1351_v35, 0.0  ;;  %v1206_v7 = vadd.f32 %v1078_v0, %v774_v53  ;;  %v648_v36 = vmul.f32 %v6258_v51, %v6243_v39 }
 0x13c   :  { %v1495_v13 = vmax.f32 %v1367_v17, 0.0  ;;  %v1222_v16 = vadd.f32 %v1094_v37, %v790_v27  ;;  %v664_v34 = vmul.f32 %v6258_v51, %v6281_v33  ;;  %v1080_v62 = vmul.f32 %v4873_v4, %v6246_v18 }
 0x13d   :  { %3439 = vmatpush1.bf16.msra.mxu0 %v3438_v48  ;;  %v1382_v63 = vadd.f32 %v4627_v2, %v1206_v7  ;;  %v776_v9 = vadd.f32 %v648_v36, %v344_v19  ;;  %v1096_v29 = vmul.f32 %v4873_v4, %v4592_v8  ;;  %v341_v28 = vmul.f32 %v4895_v10, %v6240_v42 }
 0x13e   :  { %v3454_v3 = vpack.c.bf16 %v1495_v13, %v1479_v12  ;;  %v1398_v47 = vadd.f32 %v4608_v52, %v1222_v16  ;;  %v792_v56 = vadd.f32 %v664_v34, %v360_v54  ;;  %v357_v51 = vmul.f32 %v4895_v10, %v6241_v21 }
 0x13f   :  { %v1510_v0 = vmax.f32 %v1382_v63, 0.0  ;;  %v1208_v11 = vadd.f32 %v1080_v62, %v776_v9  ;;  %v645_v35 = vmul.f32 %v6271_v55, %v6243_v39  ;;  %v661_v53 = vmul.f32 %v6271_v55, %v6281_v33  ;;  %v5145_v62 = vld [vmem:[%s5936_s0 + $0x30] sm:$0x77] }
 0x140   :  { %3455 = vmatpush1.bf16.msra.mxu1 %v3454_v3  ;;  %v1526_v4 = vmax.f32 %v1398_v47, 0.0  ;;  %v1224_v37 = vadd.f32 %v1096_v29, %v792_v56  ;;  %v1077_v17 = vmul.f32 %v4898_v32, %v6246_v18  ;;  %v1093_v27 = vmul.f32 %v4898_v32, %v4592_v8 }
 0x141   :  { %v1384_v19 = vadd.f32 %v4627_v2, %v1208_v11  ;;  %v773_v10 = vadd.f32 %v645_v35, %v341_v28  ;;  %v789_v54 = vadd.f32 %v661_v53, %v357_v51  ;;  %v343_v48 = vmul.f32 %v4916_v5, %v6240_v42  ;;  %v6283_v11 = vld [vmem:[#allocation8_spill] sm:$0xff] }
 0x142   :  { %v3440_v12 = vpack.c.bf16 %v1526_v4, %v1510_v0  ;;  %v1400_v7 = vadd.f32 %v4608_v52, %v1224_v37  ;;  %v359_v55 = vmul.f32 %v4916_v5, %v6241_v21  ;;  %v647_v36 = vmul.f32 %v4868_v44, %v6243_v39 }
 0x143   :  { %v1512_v13 = vmax.f32 %v1384_v19, 0.0  ;;  %v1205_v16 = vadd.f32 %v1077_v17, %v773_v10  ;;  %v1221_v34 = vadd.f32 %v1093_v27, %v789_v54  ;;  %v663_v32 = vmul.f32 %v4868_v44, %v6281_v33  ;;  %v6282_v44 = vld [vmem:[#allocation7_spill] sm:$0xff] }
 0x144   :  { %3441 = vmatprep.subr.bf16.mxu0 %v3440_v12  ;;  %v1528_v63 = vmax.f32 %v1400_v7, 0.0  ;;  %v775_v9 = vadd.f32 %v647_v36, %v343_v48  ;;  %v1079_v5 = vmul.f32 %v4932_v25, %v6246_v18  ;;  %v1095_v29 = vmul.f32 %v4932_v25, %v4592_v8  ;;  %v5165_v27 = vld [vmem:[%s5936_s0 + $0x38] sm:$0x77]  ;;  %v6285_v48 = vld [vmem:[#allocation12_spill] sm:$0xff] }
 0x145   :  { %v1381_v28 = vadd.f32 %v4627_v2, %v1205_v16  ;;  %v1397_v3 = vadd.f32 %v4608_v52, %v1221_v34  ;;  %v791_v47 = vadd.f32 %v663_v32, %v359_v55  ;;  %v148_v56 = vrot.slane %v5145_v62, %v6282_v44  ;;  %v6284_v10 = vld [vmem:[#allocation11_spill] sm:$0xff]  ;;  %v6287_v34 = vld [vmem:[#allocation93_spill] sm:$0xff]  ;;  %v6293_v8 = vld [vmem:[#allocation56_spill] sm:$0xff] }
 0x146   :  { %v3456_v51 = vpack.c.bf16 %v1528_v63, %v1512_v13  ;;  %v1207_v0 = vadd.f32 %v1079_v5, %v775_v9  ;;  %v452_v35 = vrot.slane %v5145_v62, %v6283_v11  ;;  %v884_v53 = vrot.slane %v5145_v62, %v6263_v6  ;;  %v6286_v13 = vld [vmem:[#allocation90_spill] sm:$0xff]  ;;  %v6288_v9 = vld [vmem:[#allocation27_spill] sm:$0xff] }
 0x147   :  { %v1509_v4 = vmax.f32 %v1381_v28, 0.0  ;;  %v1525_v37 = vmax.f32 %v1397_v3, 0.0  ;;  %v1223_v17 = vadd.f32 %v1095_v29, %v791_v47  ;;  %v5160_v25 = vrot.slane %v148_v56, %v6270_v50  ;;  %v6289_v29 = vld [vmem:[#allocation35_spill] sm:$0xff]  ;;  %v6290_v3 = vld [vmem:[#allocation28_spill] sm:$0xff]  ;;  %v6291_v56 = vld [vmem:[#allocation49_spill] sm:$0xff] }
 0x148   :  { %3457 = vmatprep.subr.bf16.mxu1 %v3456_v51  ;;  %v1383_v19 = vadd.f32 %v4627_v2, %v1207_v0  ;;  %v5169_v54 = vrot.slane %v452_v35, %v6284_v10  ;;  %v5172_v12 = vrot.slane %v884_v53, %v6285_v48  ;;  %v156_v7 = vrot.slane %v5165_v27, %v6282_v44 }
 0x149   :  { %v3442_v55 = vpack.c.bf16 %v1525_v37, %v1509_v4  ;;  %v1399_v36 = vadd.f32 %v4608_v52, %v1223_v17  ;;  %v250_v16 = vmul.f32 %v5160_v25, %v6286_v13  ;;  %v266_v32 = vmul.f32 %v5160_v25, %v6287_v34 }
 0x14a   :  { %v1511_v63 = vmax.f32 %v1383_v19, 0.0  ;;  %v554_v5 = vmul.f32 %v5169_v54, %v6288_v9  ;;  %v570_v28 = vmul.f32 %v5169_v54, %v6289_v29  ;;  %v986_v47 = vmul.f32 %v5172_v12, %v6290_v3 }
 0x14b   :  { %3443 = vmatpush1.bf16.msra.mxu0 %v3442_v55  ;;  %v1527_v44 = vmax.f32 %v1399_v36, 0.0  ;;  %v1002_v51 = vmul.f32 %v5172_v12, %v6291_v56  ;;  %v5190_v0 = vrot.slane %v156_v7, %v6270_v50  ;;  %v460_v35 = vrot.slane %v5165_v27, %v6283_v11 }
 0x14c   :  { %v682_v53 = vadd.f32 %v554_v5, %v250_v16  ;;  %v698_v4 = vadd.f32 %v570_v28, %v266_v32  ;;  %v892_v37 = vrot.slane %v5165_v27, %v6263_v6  ;;  %v144_v17 = vrot.slane %v5145_v62, %v6270_v50  ;;  %v6292_v32 = vld [vmem:[#allocation52_spill] sm:$0xff] }
 0x14d   :  { %v3458_v19 = vpack.c.bf16 %v1527_v44, %v1511_v63  ;;  %v252_v55 = vmul.f32 %v5190_v0, %v6286_v13  ;;  %v268_v36 = vmul.f32 %v5190_v0, %v6287_v34  ;;  %v5203_v7 = vrot.slane %v460_v35, %v6284_v10 }
 0x14e   :  { %v1114_v52 = vadd.f32 %v986_v47, %v682_v53  ;;  %v1130_v11 = vadd.f32 %v1002_v51, %v698_v4  ;;  %v5206_v16 = vrot.slane %v892_v37, %v6285_v48  ;;  %3316 = vmatmul.mubr.msk.f32.vlgmr.msra.gmra.mrb[32].mxu0 %vm1589_vm0, %v6292_v32  ;;  %v5211_v6 = vrot.slane %v144_v17, %v6270_v50 }
 0x14f   :  { %3459 = vmatpush1.bf16.msra.mxu1 %v3458_v19  ;;  %v556_v63 = vmul.f32 %v5203_v7, %v6288_v9  ;;  %v572_v5 = vmul.f32 %v5203_v7, %v6289_v29  ;;  %v448_v28 = vrot.slane %v5145_v62, %v6284_v10  ;;  %v880_v47 = vrot.slane %v5145_v62, %v6285_v48 }
 0x150   :  { %v1290_v44 = vadd.f32 %v6267_v14, %v1114_v52  ;;  %v1306_v51 = vadd.f32 %v6268_v38, %v1130_v11  ;;  %v988_v35 = vmul.f32 %v5206_v16, %v6290_v3  ;;  %v1004_v53 = vmul.f32 %v5206_v16, %v6291_v56  ;;  %2136 = vmatprep.mubr.f32.mxu0 %v6235_v1 }
 0x151   :  { %v684_v4 = vadd.f32 %v556_v63, %v252_v55  ;;  %v700_v37 = vadd.f32 %v572_v5, %v268_v36  ;;  %v249_v17 = vmul.f32 %v5211_v6, %v6286_v13  ;;  %v265_v62 = vmul.f32 %v5211_v6, %v6287_v34 }
 0x152   :  { %v1418_v19 = vmax.f32 %v1290_v44, 0.0  ;;  %v1434_v52 = vmax.f32 %v1306_v51, 0.0  ;;  %3324 = vmatmul.mubr.msk.f32.vlgmr.msra.gmra.mrb[32].mxu1 %vm1589_vm0, %v6292_v32  ;;  %v5235_v11 = vrot.slane %v448_v28, %v6284_v10  ;;  %v5238_v2 = vrot.slane %v880_v47, %v6285_v48  ;;  %3317 = vmatmul.mubr.msk.f32.gmra.mrb[34].mxu0 %vm1589_vm0, %v6293_v8 }
 0x153   :  { %v1116_v55 = vadd.f32 %v988_v35, %v684_v4  ;;  %v1132_v36 = vadd.f32 %v1004_v53, %v700_v37  ;;  %v152_v63 = vrot.slane %v5165_v27, %v6270_v50  ;;  %v456_v5 = vrot.slane %v5165_v27, %v6284_v10  ;;  %2249 = vmatprep.mubr.f32.mxu1 %v6235_v1 }
 0x154   :  { %v3460_v32 = vpack.c.bf16 %v1434_v52, %v1418_v19  ;;  %v553_v28 = vmul.f32 %v5235_v11, %v6288_v9  ;;  %v569_v47 = vmul.f32 %v5235_v11, %v6289_v29  ;;  %v985_v44 = vmul.f32 %v5238_v2, %v6290_v3  ;;  %2142 = vmatprep.mubr.f32.mxu0 %v6235_v1 }
 0x155   :  { %v1292_v51 = vadd.f32 %v6267_v14, %v1116_v55  ;;  %v1308_v35 = vadd.f32 %v6268_v38, %v1132_v36  ;;  %v1001_v53 = vmul.f32 %v5238_v2, %v6291_v56  ;;  %v5259_v4 = vrot.slane %v152_v63, %v6270_v50 }
 0x156   :  { %3461 = vmatprep.subr.bf16.mxu0 %v3460_v32  ;;  %v681_v37 = vadd.f32 %v553_v28, %v249_v17  ;;  %v697_v19 = vadd.f32 %v569_v47, %v265_v62  ;;  %v5262_v52 = vrot.slane %v456_v5, %v6284_v10  ;;  %v888_v18 = vrot.slane %v5165_v27, %v6285_v48 }
 0x157   :  { %v1420_v33 = vmax.f32 %v1292_v51, 0.0  ;;  %v1436_v39 = vmax.f32 %v1308_v35, 0.0  ;;  %v251_v55 = vmul.f32 %v5259_v4, %v6286_v13  ;;  %v267_v36 = vmul.f32 %v5259_v4, %v6287_v34  ;;  %3325 = vmatmul.mubr.msk.f32.gmra.mrb[34].mxu1 %vm1589_vm0, %v6293_v8  ;;  %3318 = vmatmul.mubr.msk.f32.gmra.mrb[36].mxu0 %vm1589_vm0, %v4720_v60 }
 0x158   :  { %v1113_v17 = vadd.f32 %v985_v44, %v681_v37  ;;  %v1129_v10 = vadd.f32 %v1001_v53, %v697_v19  ;;  %v555_v62 = vmul.f32 %v5262_v52, %v6288_v9  ;;  %v571_v27 = vmul.f32 %v5262_v52, %v6289_v29  ;;  %2255 = vmatprep.mubr.f32.mxu1 %v6235_v1 }
 0x159   :  { %v3476_v13 = vpack.c.bf16 %v1436_v39, %v1420_v33  ;;  %v5280_v63 = vrot.slane %v888_v18, %v6285_v48  ;;  %v282_v8 = vmul.f32 %v5160_v25, %v6274_v45  ;;  %v298_v34 = vmul.f32 %v5160_v25, %v6184_v24  ;;  %2148 = vmatprep.mubr.f32.mxu0 %v6235_v1 }
 0x15a   :  { %v1289_v5 = vadd.f32 %v6267_v14, %v1113_v17  ;;  %v1305_v9 = vadd.f32 %v6268_v38, %v1129_v10  ;;  %v683_v32 = vadd.f32 %v555_v62, %v251_v55  ;;  %v699_v29 = vadd.f32 %v571_v27, %v267_v36 }
 0x15b   :  { %3477 = vmatprep.subr.bf16.mxu1 %v3476_v13  ;;  %v987_v39 = vmul.f32 %v5280_v63, %v6290_v3  ;;  %v1003_v18 = vmul.f32 %v5280_v63, %v6291_v56  ;;  %v586_v33 = vmul.f32 %v5169_v54, %v6275_v23  ;;  %v602_v48 = vmul.f32 %v5169_v54, %v6190_v59  ;;  %v6294_v3 = vld [vmem:[#allocation54_spill] sm:$0xff] }
 0x15c   :  { %v1417_v28 = vmax.f32 %v1289_v5, 0.0  ;;  %v1433_v47 = vmax.f32 %v1305_v9, 0.0  ;;  %v1018_v44 = vmul.f32 %v5172_v12, %v6277_v40  ;;  %v1034_v51 = vmul.f32 %v5172_v12, %v6195_v20  ;;  %3326 = vmatmul.mubr.msk.f32.gmra.mrb[36].mxu1 %vm1589_vm0, %v4720_v60  ;;  %3319 = vmatmul.mubr.msk.f32.gmra.mrb[38].mxu0 %vm1589_vm0, %v6294_v3 }
 0x15d   :  { %v1115_v56 = vadd.f32 %v987_v39, %v683_v32  ;;  %v1131_v35 = vadd.f32 %v1003_v18, %v699_v29  ;;  %v714_v53 = vadd.f32 %v586_v33, %v282_v8  ;;  %v730_v37 = vadd.f32 %v602_v48, %v298_v34  ;;  %2261 = vmatprep.mubr.f32.mxu1 %v6235_v1 }
 0x15e   :  { %v3462_v19 = vpack.c.bf16 %v1433_v47, %v1417_v28  ;;  %v284_v55 = vmul.f32 %v5190_v0, %v6274_v45  ;;  %v300_v36 = vmul.f32 %v5190_v0, %v6184_v24  ;;  %v588_v17 = vmul.f32 %v5203_v7, %v6275_v23  ;;  %2154 = vmatprep.mubr.f32.mxu0 %v6235_v1 }
 0x15f   :  { %v1291_v60 = vadd.f32 %v6267_v14, %v1115_v56  ;;  %v1307_v10 = vadd.f32 %v6268_v38, %v1131_v35  ;;  %v1146_v62 = vadd.f32 %v1018_v44, %v714_v53  ;;  %v1162_v27 = vadd.f32 %v1034_v51, %v730_v37  ;;  %v6295_v38 = vld [vmem:[#allocation38_spill] sm:$0xff] }
 0x160   :  { %3463 = vmatpush1.bf16.msra.mxu0 %v3462_v19  ;;  %v604_v13 = vmul.f32 %v5203_v7, %v6190_v59  ;;  %v716_v8 = vadd.f32 %v588_v17, %v284_v55  ;;  %v1020_v34 = vmul.f32 %v5206_v16, %v6277_v40  ;;  %v1036_v5 = vmul.f32 %v5206_v16, %v6195_v20 }
 0x161   :  { %v1419_v9 = vmax.f32 %v1291_v60, 0.0  ;;  %v1435_v32 = vmax.f32 %v1307_v10, 0.0  ;;  %v1322_v29 = vadd.f32 %v4476_v46, %v1146_v62  ;;  %v1338_v14 = vadd.f32 %v4502_v61, %v1162_v27  ;;  %3327 = vmatmul.mubr.msk.f32.gmra.mrb[38].mxu1 %vm1589_vm0, %v6294_v3  ;;  %3320 = vmatmul.mubr.msk.f32.gmra.mrb[40].mxu0 %vm1589_vm0, %v6295_v38  ;;  %v5350_v27 = vld [vmem:[%s5939_s3 + $0x20] sm:$0xff] }
 0x162   :  { %v732_v39 = vadd.f32 %v604_v13, %v300_v36  ;;  %v1148_v18 = vadd.f32 %v1020_v34, %v716_v8  ;;  %v281_v33 = vmul.f32 %v5211_v6, %v6274_v45  ;;  %v297_v48 = vmul.f32 %v5211_v6, %v6184_v24  ;;  %2267 = vmatprep.mubr.f32.mxu1 %v6235_v1 }
 0x163   :  { %v3478_v28 = vpack.c.bf16 %v1435_v32, %v1419_v9  ;;  %v1450_v47 = vmax.f32 %v1322_v29, 0.0  ;;  %v1466_v44 = vmax.f32 %v1338_v14, 0.0  ;;  %v585_v51 = vmul.f32 %v5235_v11, %v6275_v23  ;;  %2160 = vmatprep.mubr.f32.mxu0 %v6235_v1 }
 0x164   :  { %v1164_v3 = vadd.f32 %v1036_v5, %v732_v39  ;;  %v1324_v56 = vadd.f32 %v4476_v46, %v1148_v18  ;;  %v601_v35 = vmul.f32 %v5235_v11, %v6190_v59  ;;  %v1017_v53 = vmul.f32 %v5238_v2, %v6277_v40  ;;  %v5379_v39 = vld [vmem:[%s5939_s3 + $0x28] sm:$0xff] }
 0x165   :  { %3479 = vmatpush1.bf16.msra.mxu1 %v3478_v28  ;;  %v3464_v37 = vpack.c.bf16 %v1466_v44, %v1450_v47  ;;  %v713_v19 = vadd.f32 %v585_v51, %v281_v33  ;;  %v1033_v55 = vmul.f32 %v5238_v2, %v6195_v20  ;;  %v283_v36 = vmul.f32 %v5259_v4, %v6274_v45 }
 0x166   :  { %v1340_v17 = vadd.f32 %v4502_v61, %v1164_v3  ;;  %v1452_v60 = vmax.f32 %v1324_v56, 0.0  ;;  %v729_v10 = vadd.f32 %v601_v35, %v297_v48  ;;  %v299_v62 = vmul.f32 %v5259_v4, %v6184_v24  ;;  %3328 = vmatmul.mubr.msk.f32.gmra.mrb[40].mxu1 %vm1589_vm0, %v5350_v27  ;;  %3321 = vmatmul.mubr.msk.f32.gmra.mrb[42].mxu0 %vm1589_vm0, %v4799_v41 }
 0x167   :  { %3465 = vmatprep.subr.bf16.mxu0 %v3464_v37  ;;  %v1145_v45 = vadd.f32 %v1017_v53, %v713_v19  ;;  %v587_v13 = vmul.f32 %v5262_v52, %v6275_v23  ;;  %v603_v8 = vmul.f32 %v5262_v52, %v6190_v59  ;;  %v1019_v24 = vmul.f32 %v5280_v63, %v6277_v40 }
 0x168   :  { %v1468_v34 = vmax.f32 %v1340_v17, 0.0  ;;  %v1161_v5 = vadd.f32 %v1033_v55, %v729_v10  ;;  %v1035_v9 = vmul.f32 %v5280_v63, %v6195_v20  ;;  %v314_v32 = vmul.f32 %v5160_v25, %v6224_v57  ;;  %2273 = vmatprep.mubr.f32.mxu1 %v6235_v1  ;;  %2166 = vmatprep.mubr.f32.mxu0 %v6235_v1 }
 0x169   :  { %v1321_v41 = vadd.f32 %v4476_v46, %v1145_v45  ;;  %v715_v23 = vadd.f32 %v587_v13, %v283_v36  ;;  %v731_v29 = vadd.f32 %v603_v8, %v299_v62  ;;  %v330_v59 = vmul.f32 %v5160_v25, %v6225_v15  ;;  %v6296_v62 = vld [vmem:[#allocation43_spill] sm:$0xff] }
 0x16a   :  { %v3480_v40 = vpack.c.bf16 %v1468_v34, %v1452_v60  ;;  %v1337_v14 = vadd.f32 %v4502_v61, %v1161_v5  ;;  %v618_v20 = vmul.f32 %v5169_v54, %v6279_v49  ;;  %v634_v38 = vmul.f32 %v5169_v54, %v6226_v22  ;;  %3329 = vmatmul.mubr.msk.f32.gmra.mrb[42].mxu1 %vm1589_vm0, %v5379_v39 }
 0x16b   :  { %v1449_v18 = vmax.f32 %v1321_v41, 0.0  ;;  %v1147_v33 = vadd.f32 %v1019_v24, %v715_v23  ;;  %v1163_v48 = vadd.f32 %v1035_v9, %v731_v29  ;;  %v1050_v28 = vmul.f32 %v5172_v12, %v4447_v43  ;;  %2279 = vmatprep.mubr.f32.mxu1 %v6235_v1  ;;  %3322 = vmatmul.mubr.msk.f32.gmra.mrb[44].mxu0 %vm1589_vm0, %v4824_v30 }
 0x16c   :  { %3481 = vmatprep.subr.bf16.mxu1 %v3480_v40  ;;  %v1465_v47 = vmax.f32 %v1337_v14, 0.0  ;;  %v746_v44 = vadd.f32 %v618_v20, %v314_v32  ;;  %v762_v51 = vadd.f32 %v634_v38, %v330_v59  ;;  %v1066_v3 = vmul.f32 %v5172_v12, %v6280_v26  ;;  %2172 = vmatprep.mubr.f32.mxu0 %v6235_v1 }
 0x16d   :  { %v1323_v56 = vadd.f32 %v4476_v46, %v1147_v33  ;;  %v1339_v35 = vadd.f32 %v4502_v61, %v1163_v48  ;;  %v316_v53 = vmul.f32 %v5190_v0, %v6224_v57  ;;  %v332_v37 = vmul.f32 %v5190_v0, %v6225_v15 }
 0x16e   :  { %v3466_v19 = vpack.c.bf16 %v1465_v47, %v1449_v18  ;;  %v1178_v55 = vadd.f32 %v1050_v28, %v746_v44  ;;  %v1194_v36 = vadd.f32 %v1066_v3, %v762_v51  ;;  %v620_v17 = vmul.f32 %v5203_v7, %v6279_v49  ;;  %3330 = vmatmul.mubr.msk.f32.gmra.mrb[44].mxu1 %vm1589_vm0, %v4824_v30 }
 0x16f   :  { %v1451_v60 = vmax.f32 %v1323_v56, 0.0  ;;  %v1467_v10 = vmax.f32 %v1339_v35, 0.0  ;;  %v636_v46 = vmul.f32 %v5203_v7, %v6226_v22  ;;  %v1052_v61 = vmul.f32 %v5206_v16, %v4447_v43  ;;  %2285 = vmatprep.mubr.f32.mxu1 %v6235_v1  ;;  %3323 = vmatmul.mubr.msk.f32.gmra.mrb[46].mxu0 %vm1589_vm0, %v6296_v62 }
 0x170   :  { %3467 = vmatpush1.bf16.msra.mxu0 %v3466_v19  ;;  %v1354_v45 = vadd.f32 %v6233_v58, %v1178_v55  ;;  %v1370_v13 = vadd.f32 %v4613_v31, %v1194_v36  ;;  %v748_v8 = vadd.f32 %v620_v17, %v316_v53  ;;  %v1068_v30 = vmul.f32 %v5206_v16, %v6280_v26 }
 0x171   :  { %v3482_v24 = vpack.c.bf16 %v1467_v10, %v1451_v60  ;;  %v764_v34 = vadd.f32 %v636_v46, %v332_v37  ;;  %v313_v5 = vmul.f32 %v5211_v6, %v6224_v57  ;;  %v329_v9 = vmul.f32 %v5211_v6, %v6225_v15  ;;  %2356 = vmatprep.mubr.f32.mxu0 %v6235_v1 }
 0x172   :  { %v1482_v32 = vmax.f32 %v1354_v45, 0.0  ;;  %v1498_v41 = vmax.f32 %v1370_v13, 0.0  ;;  %v1180_v23 = vadd.f32 %v1052_v61, %v748_v8  ;;  %v617_v29 = vmul.f32 %v5235_v11, %v6279_v49  ;;  %3331 = vmatmul.mubr.msk.f32.gmra.mrb[46].mxu1 %vm1589_vm0, %v6296_v62  ;;  %v6298_v45 = vld [vmem:[#allocation72_spill] sm:$0xff]  ;;  %v6299_v13 = vld [vmem:[#allocation42_spill] sm:$0xff] }
 0x173   :  { %3483 = vmatpush1.bf16.msra.mxu1 %v3482_v24  ;;  %v1196_v59 = vadd.f32 %v1068_v30, %v764_v34  ;;  %v633_v40 = vmul.f32 %v5235_v11, %v6226_v22  ;;  %v1049_v14 = vmul.f32 %v5238_v2, %v4447_v43  ;;  %v1065_v20 = vmul.f32 %v5238_v2, %v6280_v26  ;;  %v6300_v34 = vld [vmem:[#allocation37_spill] sm:$0xff] }
 0x174   :  { %v3468_v38 = vpack.c.bf16 %v1498_v41, %v1482_v32  ;;  %v1356_v18 = vadd.f32 %v6233_v58, %v1180_v23  ;;  %v745_v33 = vadd.f32 %v617_v29, %v313_v5  ;;  %v315_v48 = vmul.f32 %v5259_v4, %v6224_v57  ;;  %2469 = vmatprep.mubr.f32.mxu1 %v6235_v1 }
 0x175   :  { %v1372_v28 = vadd.f32 %v4613_v31, %v1196_v59  ;;  %v761_v47 = vadd.f32 %v633_v40, %v329_v9  ;;  %v331_v44 = vmul.f32 %v5259_v4, %v6225_v15  ;;  %v619_v51 = vmul.f32 %v5262_v52, %v6279_v49 }
 0x176   :  { %3469 = vmatprep.subr.bf16.mxu0 %v3468_v38  ;;  %v1484_v3 = vmax.f32 %v1356_v18, 0.0  ;;  %v1177_v56 = vadd.f32 %v1049_v14, %v745_v33  ;;  %v635_v35 = vmul.f32 %v5262_v52, %v6226_v22  ;;  %v1051_v57 = vmul.f32 %v5280_v63, %v4447_v43  ;;  %v6297_v43 = vld [vmem:[#allocation55_spill] sm:$0xff] }
 0x177   :  { %v1500_v53 = vmax.f32 %v1372_v28, 0.0  ;;  %v1193_v37 = vadd.f32 %v1065_v20, %v761_v47  ;;  %v747_v19 = vadd.f32 %v619_v51, %v315_v48  ;;  %v1067_v55 = vmul.f32 %v5280_v63, %v6280_v26  ;;  %v6301_v20 = vld [vmem:[#allocation51_spill] sm:$0xff]  ;;  %v6302_v28 = vld [vmem:[#allocation50_spill] sm:$0xff] }
 0x178   :  { %v1353_v15 = vadd.f32 %v6233_v58, %v1177_v56  ;;  %v763_v36 = vadd.f32 %v635_v35, %v331_v44  ;;  %v346_v49 = vmul.f32 %v5160_v25, %v6240_v42  ;;  %v362_v17 = vmul.f32 %v5160_v25, %v6241_v21 }
 0x179   :  { %v3484_v60 = vpack.c.bf16 %v1500_v53, %v1484_v3  ;;  %v1369_v22 = vadd.f32 %v4613_v31, %v1193_v37  ;;  %v1179_v10 = vadd.f32 %v1051_v57, %v747_v19  ;;  %v650_v46 = vmul.f32 %v5169_v54, %v6297_v43 }
 0x17a   :  { %v1481_v61 = vmax.f32 %v1353_v15, 0.0  ;;  %v1195_v62 = vadd.f32 %v1067_v55, %v763_v36  ;;  %v666_v26 = vmul.f32 %v5169_v54, %v6298_v45  ;;  %v1082_v8 = vmul.f32 %v5172_v12, %v6299_v13 }
 0x17b   :  { %3485 = vmatprep.subr.bf16.mxu1 %v3484_v60  ;;  %v1497_v30 = vmax.f32 %v1369_v22, 0.0  ;;  %v1355_v24 = vadd.f32 %v6233_v58, %v1179_v10  ;;  %v778_v25 = vadd.f32 %v650_v46, %v346_v49  ;;  %v1098_v5 = vmul.f32 %v5172_v12, %v6300_v34 }
 0x17c   :  { %v1371_v9 = vadd.f32 %v4613_v31, %v1195_v62  ;;  %v794_v32 = vadd.f32 %v666_v26, %v362_v17  ;;  %v348_v41 = vmul.f32 %v5190_v0, %v6240_v42  ;;  %v364_v54 = vmul.f32 %v5190_v0, %v6241_v21 }
 0x17d   :  { %v3470_v23 = vpack.c.bf16 %v1497_v30, %v1481_v61  ;;  %v1483_v29 = vmax.f32 %v1355_v24, 0.0  ;;  %v1210_v59 = vadd.f32 %v1082_v8, %v778_v25  ;;  %v652_v40 = vmul.f32 %v5203_v7, %v6297_v43 }
 0x17e   :  { %v1499_v58 = vmax.f32 %v1371_v9, 0.0  ;;  %v1226_v14 = vadd.f32 %v1098_v5, %v794_v32  ;;  %v668_v12 = vmul.f32 %v5203_v7, %v6298_v45  ;;  %v1084_v31 = vmul.f32 %v5206_v16, %v6299_v13  ;;  %v3582_v32 = vld [vmem:[%s5939_s3 + $0x8] sm:$0xff] }
 0x17f   :  { %3471 = vmatpush1.bf16.msra.mxu0 %v3470_v23  ;;  %v1386_v38 = vadd.f32 %v6301_v20, %v1210_v59  ;;  %v780_v18 = vadd.f32 %v652_v40, %v348_v41  ;;  %v1100_v0 = vmul.f32 %v5206_v16, %v6300_v34  ;;  %v345_v33 = vmul.f32 %v5211_v6, %v6240_v42  ;;  %v3583_v41 = vld [vmem:[%s5939_s3 + $0x10] sm:$0xff] }
 0x180   :  { %v3486_v48 = vpack.c.bf16 %v1499_v58, %v1483_v29  ;;  %v1402_v47 = vadd.f32 %v6302_v28, %v1226_v14  ;;  %v796_v44 = vadd.f32 %v668_v12, %v364_v54  ;;  %v361_v7 = vmul.f32 %v5211_v6, %v6241_v21  ;;  %v3584_v54 = vld [vmem:[%s5939_s3 + $0x18] sm:$0xff]  ;;  %v3585_v23 = vld [vmem:[%s5939_s3 + $0x30] sm:$0xff]  ;;  %v5556_v29 = vpop.permute.xlu0 %1556 }
 0x181   :  { %v1514_v51 = vmax.f32 %v1386_v38, 0.0  ;;  %v1212_v3 = vadd.f32 %v1084_v31, %v780_v18  ;;  %v649_v56 = vmul.f32 %v5235_v11, %v6297_v43  ;;  %v665_v35 = vmul.f32 %v5235_v11, %v6298_v45 }
 0x182   :  { %3487 = vmatpush1.bf16.msra.mxu1 %v3486_v48  ;;  %v1530_v16 = vmax.f32 %v1402_v47, 0.0  ;;  %v1228_v57 = vadd.f32 %v1100_v0, %v796_v44  ;;  %v1081_v53 = vmul.f32 %v5238_v2, %v6299_v13  ;;  %v1097_v37 = vmul.f32 %v5238_v2, %v6300_v34 }
 0x183   :  { %v1388_v19 = vadd.f32 %v6301_v20, %v1212_v3  ;;  %v777_v6 = vadd.f32 %v649_v56, %v345_v33  ;;  %v793_v55 = vadd.f32 %v665_v35, %v361_v7  ;;  %v347_v15 = vmul.f32 %v5259_v4, %v6240_v42 }
 0x184   :  { %v3472_v36 = vpack.c.bf16 %v1530_v16, %v1514_v51  ;;  %v1404_v49 = vadd.f32 %v6302_v28, %v1228_v57  ;;  %v363_v11 = vmul.f32 %v5259_v4, %v6241_v21  ;;  %v651_v17 = vmul.f32 %v5262_v52, %v6297_v43  ;;  %v5560_v40 = vpop.permute.xlu0 %1566 }
 0x185   :  { %v1516_v60 = vmax.f32 %v1388_v19, 0.0  ;;  %v1209_v22 = vadd.f32 %v1081_v53, %v777_v6  ;;  %v1225_v10 = vadd.f32 %v1097_v37, %v793_v55  ;;  %v667_v2 = vmul.f32 %v5262_v52, %v6298_v45 }
 0x186   :  { %3473 = vmatprep.subr.bf16.mxu0 %v3472_v36  ;;  %v1532_v46 = vmax.f32 %v1404_v49, 0.0  ;;  %v779_v61 = vadd.f32 %v651_v17, %v347_v15  ;;  %v1083_v42 = vmul.f32 %v5280_v63, %v6299_v13  ;;  %v1099_v62 = vmul.f32 %v5280_v63, %v6300_v34  ;;  %v3581_v34 = vld [vmem:[%s5939_s3] sm:$0xff] }
 0x187   :  { %v1385_v21 = vadd.f32 %v6301_v20, %v1209_v22  ;;  %v1401_v4 = vadd.f32 %v6302_v28, %v1225_v10  ;;  %v795_v43 = vadd.f32 %v667_v2, %v363_v11 }
 0x188   :  { %v3488_v26 = vpack.c.bf16 %v1532_v46, %v1516_v60  ;;  %v1211_v8 = vadd.f32 %v1083_v42, %v779_v61  ;;  %v5564_v14 = vpop.permute.xlu0 %2661 }
 0x189   :  { %v1513_v30 = vmax.f32 %v1385_v21, 0.0  ;;  %v1529_v24 = vmax.f32 %v1401_v4, 0.0  ;;  %v1227_v25 = vadd.f32 %v1099_v62, %v795_v43 }
 0x18a   :  { %3489 = vmatprep.subr.bf16.mxu1 %v3488_v26  ;;  %v1387_v52 = vadd.f32 %v6301_v20, %v1211_v8 }
 0x18b   :  { %v3474_v45 = vpack.c.bf16 %v1529_v24, %v1513_v30  ;;  %v1403_v5 = vadd.f32 %v6302_v28, %v1227_v25 }
 0x18c   :  { %v1515_v13 = vmax.f32 %v1387_v52, 0.0  ;;  %v5574_v53 = vpop.permute.xlu0 %2666 }
 0x18d   :  { %3475 = vmatpush1.bf16.msra.mxu0 %v3474_v45  ;;  %v1531_v9 = vmax.f32 %v1403_v5, 0.0 }
 0x18f   :  { %v3490_v63 = vpack.c.bf16 %v1531_v9, %v1515_v13 }
 0x190   :  { %3332 = vmatmul.mubr.msk.f32.vlgmr.msra.gmra.mrb[48].mxu0 %vm1589_vm0, %v3581_v34  ;;  %v5592_v45 = vpop.permute.xlu0 %2671 }
 0x191   :  { %3491 = vmatpush1.bf16.msra.mxu1 %v3490_v63  ;;  %2362 = vmatprep.mubr.f32.mxu0 %v6235_v1 }
 0x194   :  { %3340 = vmatmul.mubr.msk.f32.vlgmr.msra.gmra.mrb[48].mxu1 %vm1589_vm0, %v3581_v34  ;;  %3333 = vmatmul.mubr.msk.f32.gmra.mrb[50].mxu0 %vm1589_vm0, %v3582_v32 }
 0x195   :  { %2475 = vmatprep.mubr.f32.mxu1 %v6235_v1  ;;  %2368 = vmatprep.mubr.f32.mxu0 %v6235_v1 }
 0x198   :  { %3341 = vmatmul.mubr.msk.f32.gmra.mrb[50].mxu1 %vm1589_vm0, %v3582_v32  ;;  %3334 = vmatmul.mubr.msk.f32.gmra.mrb[52].mxu0 %vm1589_vm0, %v3583_v41 }
 0x199   :  { %2481 = vmatprep.mubr.f32.mxu1 %v6235_v1  ;;  %2374 = vmatprep.mubr.f32.mxu0 %v6235_v1 }
 0x19c   :  { %3342 = vmatmul.mubr.msk.f32.gmra.mrb[52].mxu1 %vm1589_vm0, %v3583_v41  ;;  %3335 = vmatmul.mubr.msk.f32.gmra.mrb[54].mxu0 %vm1589_vm0, %v3584_v54 }
 0x19d   :  { %2487 = vmatprep.mubr.f32.mxu1 %v6235_v1  ;;  %2380 = vmatprep.mubr.f32.mxu0 %v6235_v1 }
 0x1a0   :  { %3343 = vmatmul.mubr.msk.f32.gmra.mrb[54].mxu1 %vm1589_vm0, %v3584_v54  ;;  %3336 = vmatmul.mubr.msk.f32.gmra.mrb[56].mxu0 %vm1589_vm0, %v5350_v27 }
 0x1a1   :  { %2493 = vmatprep.mubr.f32.mxu1 %v6235_v1  ;;  %2386 = vmatprep.mubr.f32.mxu0 %v6235_v1 }
 0x1a4   :  { %3344 = vmatmul.mubr.msk.f32.gmra.mrb[56].mxu1 %vm1589_vm0, %v5350_v27  ;;  %3337 = vmatmul.mubr.msk.f32.gmra.mrb[58].mxu0 %vm1589_vm0, %v5379_v39  ;;  %v3586_v27 = vld [vmem:[%s5939_s3 + $0x38] sm:$0xff]  ;;  %s3616_s3 = smov [#allocation3]  }
 0x1a5   :  { %2499 = vmatprep.mubr.f32.mxu1 %v6235_v1  ;;  %2392 = vmatprep.mubr.f32.mxu0 %v6235_v1  ;;  %s3276_s10 = sshll.u32 %s3616_s3, 4  ;;  %s3277_s10 = int_to_ptr.vmem [resolvable:$true] %s3276_s10 }
 0x1a6   :  { %s3587_s11 = scalar_lea.vmem %s3277_s10, 256  ;;  %p3592_p1 = scmp.lt.s32.totalorder %s3277_s10, %s3277_s10 }
 0x1a7   :  { %p3588_p0 = scmp.ne.s32.totalorder %s3277_s10, %s3587_s11  ;;  %p3593_p2 = scmp.lt.s32.totalorder %s3587_s11, %s3587_s11 }
 0x1a8   :  { %3345 = vmatmul.mubr.msk.f32.gmra.mrb[58].mxu1 %vm1589_vm0, %v5379_v39  ;;  %3338 = vmatmul.mubr.msk.f32.gmra.mrb[60].mxu0 %vm1589_vm0, %v3585_v23  ;;  %v5554_v39 = vpop.permute.xlu1 %1551 }
 0x1a9   :  { %2505 = vmatprep.mubr.f32.mxu1 %v6235_v1  ;;  %2398 = vmatprep.mubr.f32.mxu0 %v6235_v1  ;;  %p3594_p3 = por %p3593_p2, %p3592_p1 }
 0x1ab   :  { %p3595_p4 = pnand %p3594_p3, %p3588_p0 }
 0x1ac   :  { %3346 = vmatmul.mubr.msk.f32.gmra.mrb[60].mxu1 %vm1589_vm0, %v3585_v23  ;;  %3339 = vmatmul.mubr.msk.f32.gmra.mrb[62].mxu0 %vm1589_vm0, %v3586_v27  ;;  %v5558_v59 = vpop.permute.xlu1 %1561 }
 0x1ad   :  { %2511 = vmatprep.mubr.f32.mxu1 %v6235_v1 }
 0x1b0   :  { %3347 = vmatmul.mubr.msk.f32.gmra.mrb[62].mxu1 %vm1589_vm0, %v3586_v27  ;;  %v5562_v58 = vpop.permute.xlu1 %2656 }
 0x1b4   :  { %v5570_v48 = vpop.permute.xlu1 %1571 }
 0x1b8   :  { %v5585_v62 = vpop.permute.xlu1 %1576 }
 0x1c3   :  { %v1680_v12 = vpop.f32.mrb[0].mxu0  ;;  %v1793_v31 = vpop.f32.mrb[0].mxu1 }
 0x1c4   :  { %v1681_v20 = vadd.f32 %v1680_v12, %v5554_v39  ;;  %v1794_v1 = vadd.f32 %v1793_v31, %v5554_v39  ;;  %v1682_v38 = vpop.f32.mrb[1].mxu0  ;;  %v1795_v18 = vpop.f32.mrb[1].mxu1 }
 0x1c5   :  { %v1683_v0 = vadd.f32 %v1682_v38, %v5554_v39  ;;  %v1796_v33 = vadd.f32 %v1795_v18, %v5554_v39 }
 0x1c6   :  { %v2518_v28 = vmax.f32 %v1681_v20, 0.0  ;;  %v2520_v47 = vmax.f32 %v1794_v1, 0.0 }
 0x1c7   :  { %v2519_v44 = vmax.f32 %v1683_v0, 0.0  ;;  %v1686_v7 = vpop.f32.mrb[2].mxu0  ;;  %v1799_v51 = vpop.f32.mrb[2].mxu1  ;;  %v2521_v3 = vmax.f32 %v1796_v33, 0.0 }
 0x1c8   :  { %v1687_v56 = vadd.f32 %v1686_v7, %v5556_v29  ;;  %v1800_v35 = vadd.f32 %v1799_v51, %v5556_v29  ;;  %v1688_v16 = vpop.f32.mrb[3].mxu0  ;;  %v1801_v57 = vpop.f32.mrb[3].mxu1  ;;  %v2694_v6 = vmul.f32 %v5562_v58, %v2518_v28  ;;  %v2696_v36 = vmul.f32 %v5562_v58, %v2520_v47 }
 0x1c9   :  { %v1689_v37 = vadd.f32 %v1688_v16, %v5556_v29  ;;  %v1802_v19 = vadd.f32 %v1801_v57, %v5556_v29  ;;  %v2695_v49 = vmul.f32 %v5562_v58, %v2519_v44  ;;  %v2697_v22 = vmul.f32 %v5562_v58, %v2521_v3  ;;  %v5602_v47 = vpop.permute.xlu1 %1581 }
 0x1ca   :  { %v2534_v55 = vmax.f32 %v1687_v56, 0.0  ;;  %v2536_v15 = vmax.f32 %v1800_v35, 0.0 }
 0x1cb   :  { %v2535_v11 = vmax.f32 %v1689_v37, 0.0  ;;  %v2537_v17 = vmax.f32 %v1802_v19, 0.0  ;;  %v1692_v60 = vpop.f32.mrb[4].mxu0 }
 0x1cc   :  { %v2710_v10 = vmul.f32 %v5564_v14, %v2534_v55  ;;  %v2712_v2 = vmul.f32 %v5564_v14, %v2536_v15  ;;  %v1693_v46 = vadd.f32 %v1692_v60, %v5558_v59  ;;  %v1805_v61 = vpop.f32.mrb[4].mxu1  ;;  %v1694_v42 = vpop.f32.mrb[5].mxu0 }
 0x1cd   :  { %v2711_v21 = vmul.f32 %v5564_v14, %v2535_v11  ;;  %v2713_v4 = vmul.f32 %v5564_v14, %v2537_v17  ;;  %v1806_v43 = vadd.f32 %v1805_v61, %v5558_v59  ;;  %v1695_v26 = vadd.f32 %v1694_v42, %v5558_v59  ;;  %v1807_v8 = vpop.f32.mrb[5].mxu1 }
 0x1ce   :  { %v2822_v30 = vadd.f32 %v2710_v10, %v2694_v6  ;;  %v2848_v24 = vadd.f32 %v2712_v2, %v2696_v36  ;;  %v2550_v25 = vmax.f32 %v1693_v46, 0.0  ;;  %v1808_v52 = vadd.f32 %v1807_v8, %v5558_v59  ;;  %v5606_v6 = vpop.permute.xlu0 %2676 }
 0x1cf   :  { %v2835_v5 = vadd.f32 %v2711_v21, %v2695_v49  ;;  %v2861_v13 = vadd.f32 %v2713_v4, %v2697_v22  ;;  %v2552_v9 = vmax.f32 %v1806_v43, 0.0  ;;  %v2551_v63 = vmax.f32 %v1695_v26, 0.0  ;;  %v1698_v34 = vpop.f32.mrb[6].mxu0 }
 0x1d0   :  { %v2726_v32 = vmul.f32 %v5574_v53, %v2550_v25  ;;  %v2553_v41 = vmax.f32 %v1808_v52, 0.0  ;;  %v1699_v54 = vadd.f32 %v1698_v34, %v5560_v40  ;;  %v1811_v23 = vpop.f32.mrb[6].mxu1  ;;  %v1700_v27 = vpop.f32.mrb[7].mxu0 }
 0x1d1   :  { %v2728_v12 = vmul.f32 %v5574_v53, %v2552_v9  ;;  %v2727_v31 = vmul.f32 %v5574_v53, %v2551_v63  ;;  %v1812_v20 = vadd.f32 %v1811_v23, %v5560_v40  ;;  %v1701_v1 = vadd.f32 %v1700_v27, %v5560_v40  ;;  %v1813_v38 = vpop.f32.mrb[7].mxu1 }
 0x1d2   :  { %v2823_v18 = vadd.f32 %v2822_v30, %v2726_v32  ;;  %v2729_v0 = vmul.f32 %v5574_v53, %v2553_v41  ;;  %v2566_v33 = vmax.f32 %v1699_v54, 0.0  ;;  %v1814_v28 = vadd.f32 %v1813_v38, %v5560_v40  ;;  %v5622_v54 = vpop.permute.xlu0 %2681 }
 0x1d3   :  { %v2849_v44 = vadd.f32 %v2848_v24, %v2728_v12  ;;  %v2836_v7 = vadd.f32 %v2835_v5, %v2727_v31  ;;  %v2568_v51 = vmax.f32 %v1812_v20, 0.0  ;;  %v2567_v3 = vmax.f32 %v1701_v1, 0.0  ;;  %v1704_v56 = vpop.f32.mrb[8].mxu0  ;;  %v5616_v24 = vpop.permute.xlu1 %1586 }
 0x1d4   :  { %v2862_v35 = vadd.f32 %v2861_v13, %v2729_v0  ;;  %v2742_v16 = vmul.f32 %v5592_v45, %v2566_v33  ;;  %v2569_v57 = vmax.f32 %v1814_v28, 0.0  ;;  %v1705_v37 = vadd.f32 %v1704_v56, %v5570_v48  ;;  %v1706_v19 = vpop.f32.mrb[9].mxu0  ;;  %v1817_v36 = vpop.f32.mrb[8].mxu1 }
 0x1d5   :  { %v2744_v55 = vmul.f32 %v5592_v45, %v2568_v51  ;;  %v2743_v15 = vmul.f32 %v5592_v45, %v2567_v3  ;;  %v1707_v49 = vadd.f32 %v1706_v19, %v5570_v48  ;;  %v1818_v22 = vadd.f32 %v1817_v36, %v5570_v48  ;;  %v1819_v10 = vpop.f32.mrb[9].mxu1 }
 0x1d6   :  { %v2824_v11 = vadd.f32 %v2823_v18, %v2742_v16  ;;  %v2745_v17 = vmul.f32 %v5592_v45, %v2569_v57  ;;  %v2582_v60 = vmax.f32 %v1705_v37, 0.0  ;;  %v1820_v42 = vadd.f32 %v1819_v10, %v5570_v48 }
 0x1d7   :  { %v2850_v2 = vadd.f32 %v2849_v44, %v2744_v55  ;;  %v2837_v46 = vadd.f32 %v2836_v7, %v2743_v15  ;;  %v2583_v61 = vmax.f32 %v1707_v49, 0.0  ;;  %v1710_v21 = vpop.f32.mrb[10].mxu0  ;;  %v2584_v26 = vmax.f32 %v1818_v22, 0.0  ;;  %v5632_v19 = vpop.permute.xlu1 %2686 }
 0x1d8   :  { %v2863_v4 = vadd.f32 %v2862_v35, %v2745_v17  ;;  %v2758_v43 = vmul.f32 %v5606_v6, %v2582_v60  ;;  %v1711_v8 = vadd.f32 %v1710_v21, %v5585_v62  ;;  %v1712_v30 = vpop.f32.mrb[11].mxu0  ;;  %v2585_v52 = vmax.f32 %v1820_v42, 0.0  ;;  %v1823_v5 = vpop.f32.mrb[10].mxu1 }
 0x1d9   :  { %v2759_v25 = vmul.f32 %v5606_v6, %v2583_v61  ;;  %v1713_v13 = vadd.f32 %v1712_v30, %v5585_v62  ;;  %v2760_v63 = vmul.f32 %v5606_v6, %v2584_v26  ;;  %v1824_v32 = vadd.f32 %v1823_v5, %v5585_v62  ;;  %v1825_v41 = vpop.f32.mrb[11].mxu1 }
 0x1da   :  { %v2825_v9 = vadd.f32 %v2824_v11, %v2758_v43  ;;  %v2598_v34 = vmax.f32 %v1711_v8, 0.0  ;;  %v2761_v27 = vmul.f32 %v5606_v6, %v2585_v52  ;;  %v1826_v31 = vadd.f32 %v1825_v41, %v5585_v62 }
 0x1db   :  { %v2838_v23 = vadd.f32 %v2837_v46, %v2759_v25  ;;  %v2599_v12 = vmax.f32 %v1713_v13, 0.0  ;;  %v1716_v20 = vpop.f32.mrb[12].mxu0  ;;  %v2851_v1 = vadd.f32 %v2850_v2, %v2760_v63  ;;  %v2600_v18 = vmax.f32 %v1824_v32, 0.0 }
 0x1dc   :  { %v2774_v38 = vmul.f32 %v5622_v54, %v2598_v34  ;;  %v1717_v0 = vadd.f32 %v1716_v20, %v5602_v47  ;;  %v1718_v33 = vpop.f32.mrb[13].mxu0  ;;  %v2864_v28 = vadd.f32 %v2863_v4, %v2761_v27  ;;  %v2601_v7 = vmax.f32 %v1826_v31, 0.0 }
 0x1dd   :  { %v2775_v44 = vmul.f32 %v5622_v54, %v2599_v12  ;;  %v1829_v51 = vpop.f32.mrb[12].mxu1  ;;  %v1719_v3 = vadd.f32 %v1718_v33, %v5602_v47  ;;  %v2776_v35 = vmul.f32 %v5622_v54, %v2600_v18 }
 0x1de   :  { %v2826_v56 = vadd.f32 %v2825_v9, %v2774_v38  ;;  %v2614_v16 = vmax.f32 %v1717_v0, 0.0  ;;  %v1830_v57 = vadd.f32 %v1829_v51, %v5602_v47  ;;  %v1831_v37 = vpop.f32.mrb[13].mxu1  ;;  %v2777_v15 = vmul.f32 %v5622_v54, %v2601_v7  ;;  %v5644_v9 = vpop.permute.xlu0 %2691 }
 0x1df   :  { %v2839_v55 = vadd.f32 %v2838_v23, %v2775_v44  ;;  %v2615_v36 = vmax.f32 %v1719_v3, 0.0  ;;  %v1832_v49 = vadd.f32 %v1831_v37, %v5602_v47  ;;  %v2852_v11 = vadd.f32 %v2851_v1, %v2776_v35 }
 0x1e0   :  { %v2790_v17 = vmul.f32 %v5632_v19, %v2614_v16  ;;  %v2616_v60 = vmax.f32 %v1830_v57, 0.0  ;;  %v1722_v22 = vpop.f32.mrb[14].mxu0  ;;  %v2865_v10 = vadd.f32 %v2864_v28, %v2777_v15 }
 0x1e1   :  { %v2791_v2 = vmul.f32 %v5632_v19, %v2615_v36  ;;  %v2617_v46 = vmax.f32 %v1832_v49, 0.0  ;;  %v1723_v61 = vadd.f32 %v1722_v22, %v5616_v24  ;;  %v1835_v42 = vpop.f32.mrb[14].mxu1  ;;  %v1724_v21 = vpop.f32.mrb[15].mxu0 }
 0x1e2   :  { %v2827_v4 = vadd.f32 %v2826_v56, %v2790_v17  ;;  %v2792_v43 = vmul.f32 %v5632_v19, %v2616_v60  ;;  %v1836_v26 = vadd.f32 %v1835_v42, %v5616_v24  ;;  %v1725_v8 = vadd.f32 %v1724_v21, %v5616_v24  ;;  %v1837_v30 = vpop.f32.mrb[15].mxu1 }
 0x1e3   :  { %v2840_v25 = vadd.f32 %v2839_v55, %v2791_v2  ;;  %v2793_v52 = vmul.f32 %v5632_v19, %v2617_v46  ;;  %v2630_v5 = vmax.f32 %v1723_v61, 0.0  ;;  %v1838_v13 = vadd.f32 %v1837_v30, %v5616_v24 }
 0x1e4   :  { %v2853_v63 = vadd.f32 %v2852_v11, %v2792_v43  ;;  %v2632_v34 = vmax.f32 %v1836_v26, 0.0  ;;  %v2631_v32 = vmax.f32 %v1725_v8, 0.0  ;;  %v1906_v41 = vpop.f32.mrb[16].mxu0 }
 0x1e5   :  { %v2866_v23 = vadd.f32 %v2865_v10, %v2793_v52  ;;  %v2806_v27 = vmul.f32 %v5644_v9, %v2630_v5  ;;  %v2633_v12 = vmax.f32 %v1838_v13, 0.0  ;;  %v1907_v31 = vadd.f32 %v1906_v41, %v5554_v39  ;;  %v1908_v1 = vpop.f32.mrb[17].mxu0 }
 0x1e6   :  { %v2019_v20 = vpop.f32.mrb[16].mxu1  ;;  %v2808_v38 = vmul.f32 %v5644_v9, %v2632_v34  ;;  %v2807_v18 = vmul.f32 %v5644_v9, %v2631_v32  ;;  %v1909_v33 = vadd.f32 %v1908_v1, %v5554_v39 }
 0x1e7   :  { %v2020_v0 = vadd.f32 %v2019_v20, %v5554_v39  ;;  %v2021_v28 = vpop.f32.mrb[17].mxu1  ;;  %v2828_v44 = vadd.f32 %v2827_v4, %v2806_v27  ;;  %v2809_v7 = vmul.f32 %v5644_v9, %v2633_v12  ;;  %v2522_v51 = vmax.f32 %v1907_v31, 0.0 }
 0x1e8   :  { %v2022_v3 = vadd.f32 %v2021_v28, %v5554_v39  ;;  %v2854_v56 = vadd.f32 %v2853_v63, %v2808_v38  ;;  %v2841_v35 = vadd.f32 %v2840_v25, %v2807_v18  ;;  %v2523_v57 = vmax.f32 %v1909_v33, 0.0  ;;  %v1912_v37 = vpop.f32.mrb[18].mxu0 }
 0x1e9   :  { %v2524_v16 = vmax.f32 %v2020_v0, 0.0  ;;  %v2829_v55 = vrot.slane %v2828_v44, 4  ;;  %v2867_v15 = vadd.f32 %v2866_v23, %v2809_v7  ;;  %v2698_v36 = vmul.f32 %v5562_v58, %v2522_v51  ;;  %v1914_v17 = vpop.f32.mrb[19].mxu0  ;;  %v3034_v0 = vpop.permute.xlu1 %3033 }
 0x1ea   :  { %v2525_v49 = vmax.f32 %v2022_v3, 0.0  ;;  %v2025_v11 = vpop.f32.mrb[18].mxu1  ;;  %v2855_v60 = vrot.slane %v2854_v56, 4  ;;  %v2842_v22 = vrot.slane %v2841_v35, 4  ;;  %v2699_v2 = vmul.f32 %v5562_v58, %v2523_v57 }
 0x1eb   :  { %v2700_v10 = vmul.f32 %v5562_v58, %v2524_v16  ;;  %v2027_v46 = vpop.f32.mrb[19].mxu1  ;;  %v2830_v61 = vadd.f32 %v2829_v55, %v2828_v44  ;;  %v2868_v42 = vrot.slane %v2867_v15, 4  ;;  %v1913_v4 = vadd.f32 %v1912_v37, %v5556_v29 }
 0x1ec   :  { %v2701_v21 = vmul.f32 %v5562_v58, %v2525_v49  ;;  %v2856_v43 = vadd.f32 %v2855_v60, %v2854_v56  ;;  %v2843_v26 = vadd.f32 %v2842_v22, %v2841_v35  ;;  %v2026_v8 = vadd.f32 %v2025_v11, %v5556_v29  ;;  %v1918_v25 = vpop.f32.mrb[20].mxu0 }
 0x1ed   :  { %v1915_v30 = vadd.f32 %v1914_v17, %v5556_v29  ;;  %v2831_v52 = vrot.slane %v2830_v61, 2  ;;  %v2869_v5 = vadd.f32 %v2868_v42, %v2867_v15  ;;  %v2538_v13 = vmax.f32 %v1913_v4, 0.0  ;;  %v1920_v32 = vpop.f32.mrb[21].mxu0 }
 0x1ee   :  { %v2028_v63 = vadd.f32 %v2027_v46, %v5556_v29  ;;  %v2031_v34 = vpop.f32.mrb[20].mxu1  ;;  %v2857_v41 = vrot.slane %v2856_v43, 2  ;;  %v2844_v23 = vrot.slane %v2843_v26, 2  ;;  %v2540_v27 = vmax.f32 %v2026_v8, 0.0 }
 0x1ef   :  { %v2539_v12 = vmax.f32 %v1915_v30, 0.0  ;;  %v2033_v31 = vpop.f32.mrb[21].mxu1  ;;  %v2832_v20 = vadd.f32 %v2831_v52, %v2830_v61  ;;  %v2870_v1 = vrot.slane %v2869_v5, 2  ;;  %v2714_v38 = vmul.f32 %v5564_v14, %v2538_v13 }
 0x1f0   :  { %v2541_v18 = vmax.f32 %v2028_v63, 0.0  ;;  %v2858_v33 = vadd.f32 %v2857_v41, %v2856_v43  ;;  %v2845_v28 = vadd.f32 %v2844_v23, %v2843_v26  ;;  %v2716_v44 = vmul.f32 %v5564_v14, %v2540_v27  ;;  %v1924_v16 = vpop.f32.mrb[22].mxu0 }
 0x1f1   :  { %v2715_v7 = vmul.f32 %v5564_v14, %v2539_v12  ;;  %v2833_v51 = vrot.slane %v2832_v20, 1  ;;  %v2871_v3 = vadd.f32 %v2870_v1, %v2869_v5  ;;  %v2874_v56 = vadd.f32 %v2714_v38, %v2698_v36  ;;  %v1926_v11 = vpop.f32.mrb[23].mxu0 }
 0x1f2   :  { %v2717_v35 = vmul.f32 %v5564_v14, %v2541_v18  ;;  %v2037_v57 = vpop.f32.mrb[22].mxu1  ;;  %v2859_v37 = vrot.slane %v2858_v33, 1  ;;  %v2846_v55 = vrot.slane %v2845_v28, 1  ;;  %v2900_v15 = vadd.f32 %v2716_v44, %v2700_v10 }
 0x1f3   :  { %v2887_v49 = vadd.f32 %v2715_v7, %v2699_v2  ;;  %v2039_v17 = vpop.f32.mrb[23].mxu1  ;;  %v2834_v60 = vadd.f32 %v2833_v51, %v2832_v20  ;;  %v2872_v22 = vrot.slane %v2871_v3, 1  ;;  %v1919_v61 = vadd.f32 %v1918_v25, %v5558_v59 }
 0x1f4   :  { %v2913_v46 = vadd.f32 %v2717_v35, %v2701_v21  ;;  %v5668_v42 = vrot.slane %v3034_v0, %v6270_v50  ;;  %v2860_v4 = vadd.f32 %v2859_v37, %v2858_v33  ;;  %v2032_v36 = vadd.f32 %v2031_v34, %v5558_v59  ;;  %v1930_v5 = vpop.f32.mrb[24].mxu0 }
 0x1f5   :  { %v1921_v43 = vadd.f32 %v1920_v32, %v5558_v59  ;;  %v2847_v26 = vadd.f32 %v2846_v55, %v2845_v28  ;;  %v2554_v8 = vmax.f32 %v1919_v61, 0.0  ;;  %v2034_v10 = vadd.f32 %v2033_v31, %v5558_v59  ;;  %v1932_v63 = vpop.f32.mrb[25].mxu0 }
 0x1f6   :  { %v3040_v2 = vadd.f32 %v5668_v42, %v2834_v60  ;;  %v2556_v30 = vmax.f32 %v2032_v36, 0.0  ;;  %v2873_v13 = vadd.f32 %v2872_v22, %v2871_v3  ;;  %v3042_v34 = vadd.f32 %v5668_v42, %v2860_v4 }
 0x1f7   :  { %v2555_v52 = vmax.f32 %v1921_v43, 0.0  ;;  %v2043_v21 = vpop.f32.mrb[24].mxu1  ;;  %v2730_v25 = vmul.f32 %v5574_v53, %v2554_v8  ;;  %v2557_v50 = vmax.f32 %v2034_v10, 0.0  ;;  %v3041_v27 = vadd.f32 %v5668_v42, %v2847_v26 }
 0x1f8   :  { %v2045_v41 = vpop.f32.mrb[25].mxu1  ;;  %v2732_v32 = vmul.f32 %v5574_v53, %v2556_v30  ;;  %v3348_v20 = vmul.f32 -1.442695, %v3040_v2  ;;  %v1925_v18 = vadd.f32 %v1924_v16, %v5560_v40  ;;  %v3043_v33 = vadd.f32 %v5668_v42, %v2873_v13 }
 0x1f9   :  { %v2731_v23 = vmul.f32 %v5574_v53, %v2555_v52  ;;  %v2875_v12 = vadd.f32 %v2874_v56, %v2730_v25  ;;  %v2733_v31 = vmul.f32 %v5574_v53, %v2557_v50  ;;  %v1936_v0 = vpop.f32.mrb[26].mxu0  ;;  %v2038_v44 = vadd.f32 %v2037_v57, %v5560_v40 }
 0x1fa   :  { %v2901_v1 = vadd.f32 %v2900_v15, %v2732_v32  ;;  %v1927_v7 = vadd.f32 %v1926_v11, %v5560_v40  ;;  %v1938_v3 = vpop.f32.mrb[27].mxu0  ;;  %v3350_v35 = vmul.f32 -1.442695, %v3042_v34  ;;  %v2570_v37 = vmax.f32 %v1925_v18, 0.0 }
 0x1fb   :  { %v2888_v38 = vadd.f32 %v2887_v49, %v2731_v23  ;;  %v2914_v28 = vadd.f32 %v2913_v46, %v2733_v31  ;;  %v2049_v51 = vpop.f32.mrb[26].mxu1  ;;  %v2040_v56 = vadd.f32 %v2039_v17, %v5560_v40  ;;  %v1931_v55 = vadd.f32 %v1930_v5, %v5570_v48 }
 0x1fc   :  { %v2051_v15 = vpop.f32.mrb[27].mxu1  ;;  %v2572_v49 = vmax.f32 %v2038_v44, 0.0  ;;  %v2571_v60 = vmax.f32 %v1927_v7, 0.0  ;;  %v2044_v16 = vadd.f32 %v2043_v21, %v5570_v48  ;;  %v1933_v22 = vadd.f32 %v1932_v63, %v5570_v48 }
 0x1fd   :  { %v2746_v46 = vmul.f32 %v5592_v45, %v2570_v37  ;;  %v2573_v57 = vmax.f32 %v2040_v56, 0.0  ;;  %v2586_v61 = vmax.f32 %v1931_v55, 0.0  ;;  %v2046_v11 = vadd.f32 %v2045_v41, %v5570_v48  ;;  %v1942_v4 = vpop.f32.mrb[28].mxu0 }
 0x1fe   :  { %v2748_v36 = vmul.f32 %v5592_v45, %v2572_v49  ;;  %v2747_v17 = vmul.f32 %v5592_v45, %v2571_v60  ;;  %v2588_v43 = vmax.f32 %v2044_v16, 0.0  ;;  %v2587_v26 = vmax.f32 %v1933_v22, 0.0  ;;  %v1944_v10 = vpop.f32.mrb[29].mxu0 }
 0x1ff   :  { %v2055_v8 = vpop.f32.mrb[28].mxu1  ;;  %v2876_v2 = vadd.f32 %v2875_v12, %v2746_v46  ;;  %v2749_v30 = vmul.f32 %v5592_v45, %v2573_v57  ;;  %v2762_v52 = vmul.f32 %v5606_v6, %v2586_v61  ;;  %v2589_v5 = vmax.f32 %v2046_v11, 0.0 }
 0x200   :  { %v2057_v21 = vpop.f32.mrb[29].mxu1  ;;  %v2902_v13 = vadd.f32 %v2901_v1, %v2748_v36  ;;  %v2889_v25 = vadd.f32 %v2888_v38, %v2747_v17  ;;  %v2764_v50 = vmul.f32 %v5606_v6, %v2588_v43  ;;  %v2763_v63 = vmul.f32 %v5606_v6, %v2587_v26 }
 0x201   :  { %v2915_v41 = vadd.f32 %v2914_v28, %v2749_v30  ;;  %v2877_v34 = vadd.f32 %v2876_v2, %v2762_v52  ;;  %v2765_v32 = vmul.f32 %v5606_v6, %v2589_v5  ;;  %v1937_v23 = vadd.f32 %v1936_v0, %v5585_v62 }
 0x202   :  { %v1948_v31 = vpop.f32.mrb[30].mxu0  ;;  %v2903_v12 = vadd.f32 %v2902_v13, %v2764_v50  ;;  %v2890_v18 = vadd.f32 %v2889_v25, %v2763_v63  ;;  %v2050_v44 = vadd.f32 %v2049_v51, %v5585_v62  ;;  %v1939_v7 = vadd.f32 %v1938_v3, %v5585_v62 }
 0x203   :  { %v1950_v37 = vpop.f32.mrb[31].mxu0  ;;  %v3349_v1 = vmul.f32 -1.442695, %v3041_v27  ;;  %v2916_v38 = vadd.f32 %v2915_v41, %v2765_v32  ;;  %v2602_v56 = vmax.f32 %v1937_v23, 0.0  ;;  %v2052_v55 = vadd.f32 %v2051_v15, %v5585_v62  ;;  %v2061_v49 = vpop.f32.mrb[30].mxu1 }
 0x204   :  { %v3351_v28 = vmul.f32 -1.442695, %v3043_v33  ;;  %v2604_v60 = vmax.f32 %v2050_v44, 0.0  ;;  %v2603_v16 = vmax.f32 %v1939_v7, 0.0  ;;  %v1943_v22 = vadd.f32 %v1942_v4, %v5602_v47  ;;  %v2063_v0 = vpop.f32.mrb[31].mxu1 }
 0x205   :  { %3513 = vpow2.f32 %v3348_v20  ;;  %v2778_v46 = vmul.f32 %v5622_v54, %v2602_v56  ;;  %v2605_v57 = vmax.f32 %v2052_v55, 0.0  ;;  %v2056_v4 = vadd.f32 %v2055_v8, %v5602_v47 }
 0x206   :  { %3515 = vpow2.f32 %v3350_v35  ;;  %v2780_v51 = vmul.f32 %v5622_v54, %v2604_v60  ;;  %v2779_v27 = vmul.f32 %v5622_v54, %v2603_v16  ;;  %v2618_v61 = vmax.f32 %v1943_v22, 0.0 }
 0x207   :  { %3517 = vpow2.f32 %v3349_v1  ;;  %v2878_v3 = vadd.f32 %v2877_v34, %v2778_v46  ;;  %v2781_v15 = vmul.f32 %v5622_v54, %v2605_v57  ;;  %v1945_v17 = vadd.f32 %v1944_v10, %v5602_v47 }
 0x208   :  { %3519 = vpow2.f32 %v3351_v28  ;;  %v2904_v33 = vadd.f32 %v2903_v12, %v2780_v51  ;;  %v2891_v11 = vadd.f32 %v2890_v18, %v2779_v27  ;;  %v2794_v20 = vmul.f32 %v5632_v19, %v2618_v61 }
 0x209   :  { %v2917_v36 = vadd.f32 %v2916_v38, %v2781_v15  ;;  %v2058_v35 = vadd.f32 %v2057_v21, %v5602_v47  ;;  %v2620_v43 = vmax.f32 %v2056_v4, 0.0  ;;  %v1949_v26 = vadd.f32 %v1948_v31, %v5616_v24 }
 0x20a   :  { %v2062_v2 = vadd.f32 %v2061_v49, %v5616_v24  ;;  %v1951_v30 = vadd.f32 %v1950_v37, %v5616_v24  ;;  %v2879_v52 = vadd.f32 %v2878_v3, %v2794_v20  ;;  %v2619_v5 = vmax.f32 %v1945_v17, 0.0 }
 0x20b   :  { %v2621_v13 = vmax.f32 %v2058_v35, 0.0  ;;  %v2064_v25 = vadd.f32 %v2063_v0, %v5616_v24  ;;  %v2796_v8 = vmul.f32 %v5632_v19, %v2620_v43  ;;  %v2634_v50 = vmax.f32 %v1949_v26, 0.0 }
 0x20c   :  { %v2636_v63 = vmax.f32 %v2062_v2, 0.0  ;;  %v2635_v41 = vmax.f32 %v1951_v30, 0.0  ;;  %v2795_v10 = vmul.f32 %v5632_v19, %v2619_v5 }
 0x20d   :  { %v2797_v21 = vmul.f32 %v5632_v19, %v2621_v13  ;;  %v2637_v34 = vmax.f32 %v2064_v25, 0.0  ;;  %v2905_v32 = vadd.f32 %v2904_v33, %v2796_v8  ;;  %v2810_v23 = vmul.f32 %v5644_v9, %v2634_v50 }
 0x20e   :  { %v2812_v31 = vmul.f32 %v5644_v9, %v2636_v63  ;;  %v2811_v12 = vmul.f32 %v5644_v9, %v2635_v41  ;;  %v2892_v44 = vadd.f32 %v2891_v11, %v2795_v10 }
 0x20f   :  { %v3514_v18 = vpop.eup %3513  ;;  %v2918_v7 = vadd.f32 %v2917_v36, %v2797_v21  ;;  %v2813_v37 = vmul.f32 %v5644_v9, %v2637_v34  ;;  %v2880_v38 = vadd.f32 %v2879_v52, %v2810_v23 }
 0x210   :  { %v3516_v1 = vpop.eup %3515  ;;  %v2906_v56 = vadd.f32 %v2905_v32, %v2812_v31  ;;  %v2893_v49 = vadd.f32 %v2892_v44, %v2811_v12  ;;  %v3104_v57 = vadd.f32 1.0, %v3514_v18 }
 0x211   :  { %v3518_v55 = vpop.eup %3517  ;;  %v2919_v28 = vadd.f32 %v2918_v7, %v2813_v37  ;;  %v2881_v16 = vrot.slane %v2880_v38, 4  ;;  %v3106_v3 = vadd.f32 1.0, %v3516_v1 }
 0x212   :  { %v3520_v60 = vpop.eup %3519  ;;  %v2907_v22 = vrot.slane %v2906_v56, 4  ;;  %v2894_v0 = vrot.slane %v2893_v49, 4  ;;  %v3105_v33 = vadd.f32 1.0, %v3518_v55  ;;  %3521 = vrcp.f32 %v3104_v57 }
 0x213   :  { %v2920_v46 = vrot.slane %v2919_v28, 4  ;;  %v2882_v51 = vadd.f32 %v2881_v16, %v2880_v38  ;;  %v3107_v36 = vadd.f32 1.0, %v3520_v60  ;;  %3523 = vrcp.f32 %v3106_v3 }
 0x214   :  { %v2908_v27 = vadd.f32 %v2907_v22, %v2906_v56  ;;  %v2895_v15 = vadd.f32 %v2894_v0, %v2893_v49  ;;  %3525 = vrcp.f32 %v3105_v33 }
 0x215   :  { %v2921_v61 = vadd.f32 %v2920_v46, %v2919_v28  ;;  %v2883_v11 = vrot.slane %v2882_v51, 2  ;;  %3527 = vrcp.f32 %v3107_v36 }
 0x216   :  { %v2909_v4 = vrot.slane %v2908_v27, 2  ;;  %v2896_v20 = vrot.slane %v2895_v15, 2 }
 0x217   :  { %v2922_v17 = vrot.slane %v2921_v61, 2  ;;  %v2884_v35 = vadd.f32 %v2883_v11, %v2882_v51 }
 0x218   :  { %v2910_v43 = vadd.f32 %v2909_v4, %v2908_v27  ;;  %v2897_v26 = vadd.f32 %v2896_v20, %v2895_v15 }
 0x219   :  { %v2923_v2 = vadd.f32 %v2922_v17, %v2921_v61  ;;  %v2885_v30 = vrot.slane %v2884_v35, 1 }
 0x21a   :  { %v2911_v52 = vrot.slane %v2910_v43, 1  ;;  %v2898_v5 = vrot.slane %v2897_v26, 1 }
 0x21b   :  { %v2924_v13 = vrot.slane %v2923_v2, 1  ;;  %v2886_v25 = vadd.f32 %v2885_v30, %v2884_v35 }
 0x21c   :  { %v2912_v8 = vadd.f32 %v2911_v52, %v2910_v43  ;;  %v2899_v50 = vadd.f32 %v2898_v5, %v2897_v26  ;;  %v5727_v1 = vpop.eup %3521 }
 0x21d   :  { %v2925_v63 = vadd.f32 %v2924_v13, %v2923_v2  ;;  %v3044_v41 = vadd.f32 %v5668_v42, %v2886_v25  ;;  %v5729_v38 = vpop.eup %3523 }
 0x21e   :  { %v3046_v10 = vadd.f32 %v5668_v42, %v2912_v8  ;;  %v3045_v21 = vadd.f32 %v5668_v42, %v2899_v50  ;;  %v5731_v28 = vpop.eup %3525 }
 0x21f   :  { %v3047_v34 = vadd.f32 %v5668_v42, %v2925_v63  ;;  %v3352_v23 = vmul.f32 -1.442695, %v3044_v41  ;;  %v5735_v46 = vpop.eup %3527  ;;  %v3168_v17 = vcombine.low %v5727_v1, %v5731_v28 }
 0x220   :  { %v3354_v31 = vmul.f32 -1.442695, %v3046_v10  ;;  %v3353_v44 = vmul.f32 -1.442695, %v3045_v21  ;;  %v3169_v35 = vcombine.low %v5729_v38, %v5735_v46 }
 0x221   :  { %v2132_v32 = vpop.f32.mrb[32].mxu0  ;;  %v3355_v7 = vmul.f32 -1.442695, %v3047_v34  ;;  %3529 = vpow2.f32 %v3352_v23 }
 0x222   :  { %v2133_v12 = vadd.f32 %v2132_v32, %v5554_v39  ;;  %v2134_v18 = vpop.f32.mrb[33].mxu0  ;;  %3531 = vpow2.f32 %v3354_v31 }
 0x223   :  { %v2135_v37 = vadd.f32 %v2134_v18, %v5554_v39  ;;  %3533 = vpow2.f32 %v3353_v44 }
 0x224   :  { %v2526_v56 = vmax.f32 %v2133_v12, 0.0  ;;  %3535 = vpow2.f32 %v3355_v7 }
 0x225   :  { %v2245_v55 = vpop.f32.mrb[32].mxu1  ;;  %v2138_v49 = vpop.f32.mrb[34].mxu0  ;;  %v2527_v57 = vmax.f32 %v2135_v37, 0.0 }
 0x226   :  { %v2246_v60 = vadd.f32 %v2245_v55, %v5554_v39  ;;  %v2247_v16 = vpop.f32.mrb[33].mxu1  ;;  %v2139_v22 = vadd.f32 %v2138_v49, %v5556_v29  ;;  %v2140_v0 = vpop.f32.mrb[35].mxu0  ;;  %v2702_v15 = vmul.f32 %v5562_v58, %v2526_v56  ;;  %v3615_v56 = vmov 1966171168  }
 0x227   :  { %v2248_v51 = vadd.f32 %v2247_v16, %v5554_v39  ;;  %v2141_v27 = vadd.f32 %v2140_v0, %v5556_v29  ;;  %v2703_v43 = vmul.f32 %v5562_v58, %v2527_v57  ;;  %v3173_v55 = vunpack.c.l.s4 %v3615_v56  ;;  %v6303_v56 = vld [vmem:[#allocation6_spill] sm:$0xff] }
 0x228   :  { %v2542_v3 = vmax.f32 %v2139_v22, 0.0  ;;  %v2528_v61 = vmax.f32 %v2246_v60, 0.0 }
 0x229   :  { %v2543_v33 = vmax.f32 %v2141_v27, 0.0  ;;  %v2529_v11 = vmax.f32 %v2248_v51, 0.0 }
 0x22a   :  { %v2718_v4 = vmul.f32 %v5564_v14, %v2542_v3  ;;  %v2251_v36 = vpop.f32.mrb[34].mxu1  ;;  %v2144_v20 = vpop.f32.mrb[36].mxu0  ;;  %v2704_v21 = vmul.f32 %v5562_v58, %v2528_v61 }
 0x22b   :  { %v2252_v26 = vadd.f32 %v2251_v36, %v5556_v29  ;;  %v2719_v2 = vmul.f32 %v5564_v14, %v2543_v33  ;;  %v2253_v30 = vpop.f32.mrb[35].mxu1  ;;  %v2145_v52 = vadd.f32 %v2144_v20, %v5558_v59  ;;  %v2146_v5 = vpop.f32.mrb[37].mxu0  ;;  %v2705_v34 = vmul.f32 %v5562_v58, %v2529_v11 }
 0x22c   :  { %v2926_v13 = vadd.f32 %v2718_v4, %v2702_v15  ;;  %v2254_v25 = vadd.f32 %v2253_v30, %v5556_v29  ;;  %v2147_v8 = vadd.f32 %v2146_v5, %v5558_v59  ;;  %v3530_v10 = vpop.eup %3529  ;;  %v3174_v5 = vunpack.c.0.s8 %v3173_v55 }
 0x22d   :  { %v2544_v50 = vmax.f32 %v2252_v26, 0.0  ;;  %v2939_v63 = vadd.f32 %v2719_v2, %v2703_v43  ;;  %v2558_v41 = vmax.f32 %v2145_v52, 0.0  ;;  %v3532_v31 = vpop.eup %3531  ;;  %v3108_v12 = vadd.f32 1.0, %v3530_v10 }
 0x22e   :  { %v2545_v32 = vmax.f32 %v2254_v25, 0.0  ;;  %v2559_v23 = vmax.f32 %v2147_v8, 0.0  ;;  %v3534_v49 = vpop.eup %3533  ;;  %v3110_v60 = vadd.f32 1.0, %v3532_v31  ;;  %v5770_v55 = vsub.s32 %v3174_v5, %v6303_v56 }
 0x22f   :  { %v2720_v18 = vmul.f32 %v5564_v14, %v2544_v50  ;;  %v2734_v44 = vmul.f32 %v5574_v53, %v2558_v41  ;;  %v2257_v7 = vpop.f32.mrb[36].mxu1  ;;  %v2150_v37 = vpop.f32.mrb[38].mxu0  ;;  %3537 = vrcp.f32 %v3108_v12  ;;  %v3109_v3 = vadd.f32 1.0, %v3534_v49 }
 0x230   :  { %v2721_v16 = vmul.f32 %v5564_v14, %v2545_v32  ;;  %v2258_v22 = vadd.f32 %v2257_v7, %v5558_v59  ;;  %v2735_v0 = vmul.f32 %v5574_v53, %v2559_v23  ;;  %v2259_v57 = vpop.f32.mrb[37].mxu1  ;;  %v2152_v51 = vpop.f32.mrb[39].mxu0  ;;  %3539 = vrcp.f32 %v3110_v60 }
 0x231   :  { %v3536_v27 = vpop.eup %3535  ;;  %v2952_v15 = vadd.f32 %v2720_v18, %v2704_v21  ;;  %v2927_v61 = vadd.f32 %v2926_v13, %v2734_v44  ;;  %3541 = vrcp.f32 %v3109_v3  ;;  %v2260_v20 = vadd.f32 %v2259_v57, %v5558_v59 }
 0x232   :  { %v3111_v33 = vadd.f32 1.0, %v3536_v27  ;;  %v2965_v11 = vadd.f32 %v2721_v16, %v2705_v34  ;;  %v2560_v4 = vmax.f32 %v2258_v22, 0.0  ;;  %v2940_v36 = vadd.f32 %v2939_v63, %v2735_v0 }
 0x233   :  { %v2151_v43 = vadd.f32 %v2150_v37, %v5560_v40  ;;  %v2153_v30 = vadd.f32 %v2152_v51, %v5560_v40  ;;  %v2561_v25 = vmax.f32 %v2260_v20, 0.0 }
 0x234   :  { %3543 = vrcp.f32 %v3111_v33  ;;  %v2736_v26 = vmul.f32 %v5574_v53, %v2560_v4  ;;  %v2263_v2 = vpop.f32.mrb[38].mxu1  ;;  %v2156_v52 = vpop.f32.mrb[40].mxu0 }
 0x235   :  { %v2574_v13 = vmax.f32 %v2151_v43, 0.0  ;;  %v2264_v8 = vadd.f32 %v2263_v2, %v5560_v40  ;;  %v2265_v50 = vpop.f32.mrb[39].mxu1  ;;  %v2157_v41 = vadd.f32 %v2156_v52, %v5570_v48  ;;  %v2158_v63 = vpop.f32.mrb[41].mxu0  ;;  %v2575_v21 = vmax.f32 %v2153_v30, 0.0 }
 0x236   :  { %v2953_v10 = vadd.f32 %v2952_v15, %v2736_v26  ;;  %v2266_v34 = vadd.f32 %v2265_v50, %v5560_v40  ;;  %v2159_v32 = vadd.f32 %v2158_v63, %v5570_v48  ;;  %v2737_v23 = vmul.f32 %v5574_v53, %v2561_v25 }
 0x237   :  { %v2750_v31 = vmul.f32 %v5592_v45, %v2574_v13  ;;  %v2576_v12 = vmax.f32 %v2264_v8, 0.0  ;;  %v2590_v18 = vmax.f32 %v2157_v41, 0.0  ;;  %v2751_v44 = vmul.f32 %v5592_v45, %v2575_v21 }
 0x238   :  { %v2577_v7 = vmax.f32 %v2266_v34, 0.0  ;;  %v2591_v37 = vmax.f32 %v2159_v32, 0.0  ;;  %v2966_v49 = vadd.f32 %v2965_v11, %v2737_v23  ;;  %v5788_v41 = vrot.slane %v3168_v17, %v5770_v55 }
 0x239   :  { %v2928_v60 = vadd.f32 %v2927_v61, %v2750_v31  ;;  %v2752_v16 = vmul.f32 %v5592_v45, %v2576_v12  ;;  %v2766_v22 = vmul.f32 %v5606_v6, %v2590_v18  ;;  %v2269_v0 = vpop.f32.mrb[40].mxu1  ;;  %v2162_v57 = vpop.f32.mrb[42].mxu0  ;;  %v2941_v51 = vadd.f32 %v2940_v36, %v2751_v44 }
 0x23a   :  { %v2753_v27 = vmul.f32 %v5592_v45, %v2577_v7  ;;  %v2270_v3 = vadd.f32 %v2269_v0, %v5570_v48  ;;  %v2767_v15 = vmul.f32 %v5606_v6, %v2591_v37  ;;  %v2271_v33 = vpop.f32.mrb[41].mxu1  ;;  %v2164_v4 = vpop.f32.mrb[43].mxu0  ;;  %v2163_v26 = vadd.f32 %v2162_v57, %v5585_v62 }
 0x23b   :  { %v5777_v20 = vpop.eup %3537  ;;  %v2954_v43 = vadd.f32 %v2953_v10, %v2752_v16  ;;  %v2929_v11 = vadd.f32 %v2928_v60, %v2766_v22  ;;  %v2272_v61 = vadd.f32 %v2271_v33, %v5570_v48  ;;  %v2165_v5 = vadd.f32 %v2164_v4, %v5585_v62 }
 0x23c   :  { %v5781_v2 = vpop.eup %3539  ;;  %v2967_v30 = vadd.f32 %v2966_v49, %v2753_v27  ;;  %v2592_v36 = vmax.f32 %v2270_v3, 0.0  ;;  %v2942_v52 = vadd.f32 %v2941_v51, %v2767_v15  ;;  %v2606_v8 = vmax.f32 %v2163_v26, 0.0 }
 0x23d   :  { %v3542_v25 = vpop.eup %3541  ;;  %v2593_v13 = vmax.f32 %v2272_v61, 0.0  ;;  %v2275_v50 = vpop.f32.mrb[42].mxu1  ;;  %v5794_v63 = vrot.slane %v3169_v35, %v5770_v55  ;;  %v2607_v32 = vmax.f32 %v2165_v5, 0.0 }
 0x23e   :  { %v3544_v10 = vpop.eup %3543  ;;  %v2768_v21 = vmul.f32 %v5606_v6, %v2592_v36  ;;  %v2276_v34 = vadd.f32 %v2275_v50, %v5585_v62  ;;  %v2277_v23 = vpop.f32.mrb[43].mxu1  ;;  %v3170_v12 = vcombine.low %v5777_v20, %v3542_v25  ;;  %v2782_v28 = vmul.f32 %v5622_v54, %v2606_v8 }
 0x23f   :  { %v2168_v31 = vpop.f32.mrb[44].mxu0  ;;  %v2769_v1 = vmul.f32 %v5606_v6, %v2593_v13  ;;  %v2278_v17 = vadd.f32 %v2277_v23, %v5585_v62  ;;  %v2783_v44 = vmul.f32 %v5622_v54, %v2607_v32 }
 0x240   :  { %v2169_v38 = vadd.f32 %v2168_v31, %v5602_v47  ;;  %v2170_v46 = vpop.f32.mrb[45].mxu0  ;;  %v2955_v35 = vadd.f32 %v2954_v43, %v2768_v21  ;;  %v2608_v18 = vmax.f32 %v2276_v34, 0.0  ;;  %v2930_v56 = vadd.f32 %v2929_v11, %v2782_v28 }
 0x241   :  { %v2171_v7 = vadd.f32 %v2170_v46, %v5602_v47  ;;  %v2968_v37 = vadd.f32 %v2967_v30, %v2769_v1  ;;  %v2609_v49 = vmax.f32 %v2278_v17, 0.0  ;;  %v2281_v16 = vpop.f32.mrb[44].mxu1  ;;  %v2943_v0 = vadd.f32 %v2942_v52, %v2783_v44 }
 0x242   :  { %v2622_v60 = vmax.f32 %v2169_v38, 0.0  ;;  %v2784_v22 = vmul.f32 %v5622_v54, %v2608_v18  ;;  %v2282_v57 = vadd.f32 %v2281_v16, %v5602_v47  ;;  %v2283_v27 = vpop.f32.mrb[45].mxu1  ;;  %v2174_v3 = vpop.f32.mrb[46].mxu0  ;;  %v3171_v28 = vcombine.low %v5781_v2, %v3544_v10 }
 0x243   :  { %v2623_v51 = vmax.f32 %v2171_v7, 0.0  ;;  %v2785_v15 = vmul.f32 %v5622_v54, %v2609_v49  ;;  %v2284_v4 = vadd.f32 %v2283_v27, %v5602_v47  ;;  %v2175_v20 = vadd.f32 %v2174_v3, %v5616_v24  ;;  %v2176_v43 = vpop.f32.mrb[47].mxu0 }
 0x244   :  { %v2798_v33 = vmul.f32 %v5632_v19, %v2622_v60  ;;  %v2956_v11 = vadd.f32 %v2955_v35, %v2784_v22  ;;  %v2624_v61 = vmax.f32 %v2282_v57, 0.0  ;;  %v2177_v30 = vadd.f32 %v2176_v43, %v5616_v24 }
 0x245   :  { %v2799_v26 = vmul.f32 %v5632_v19, %v2623_v51  ;;  %v2969_v36 = vadd.f32 %v2968_v37, %v2785_v15  ;;  %v2625_v5 = vmax.f32 %v2284_v4, 0.0  ;;  %v2638_v25 = vmax.f32 %v2175_v20, 0.0  ;;  %v2287_v13 = vpop.f32.mrb[46].mxu1 }
 0x246   :  { %v2931_v52 = vadd.f32 %v2930_v56, %v2798_v33  ;;  %v2800_v8 = vmul.f32 %v5632_v19, %v2624_v61  ;;  %v2288_v21 = vadd.f32 %v2287_v13, %v5616_v24  ;;  %v2639_v34 = vmax.f32 %v2177_v30, 0.0  ;;  %v2289_v32 = vpop.f32.mrb[47].mxu1 }
 0x247   :  { %v2944_v50 = vadd.f32 %v2943_v0, %v2799_v26  ;;  %v2801_v23 = vmul.f32 %v5632_v19, %v2625_v5  ;;  %v2814_v31 = vmul.f32 %v5644_v9, %v2638_v25  ;;  %v2290_v1 = vadd.f32 %v2289_v32, %v5616_v24 }
 0x248   :  { %v2957_v17 = vadd.f32 %v2956_v11, %v2800_v8  ;;  %v2640_v38 = vmax.f32 %v2288_v21, 0.0  ;;  %v2815_v46 = vmul.f32 %v5644_v9, %v2639_v34  ;;  %v3192_v35 = vrot.slane %v3170_v12, %v5770_v55 }
 0x249   :  { %v2970_v18 = vadd.f32 %v2969_v36, %v2801_v23  ;;  %v2932_v44 = vadd.f32 %v2931_v52, %v2814_v31  ;;  %v2641_v7 = vmax.f32 %v2290_v1, 0.0  ;;  %v3199_v37 = vrot.slane %v3171_v28, %v5770_v55 }
 0x24a   :  { %v2816_v56 = vmul.f32 %v5644_v9, %v2640_v38  ;;  %v2945_v49 = vadd.f32 %v2944_v50, %v2815_v46  ;;  %v3200_v60 = vcombine.low %v5788_v41, %v5794_v63 }
 0x24b   :  { %v2933_v16 = vrot.slane %v2932_v44, 4  ;;  %v2817_v2 = vmul.f32 %v5644_v9, %v2641_v7  ;;  %v3201_v10 = vcombine.low %v3192_v35, %v3199_v37 }
 0x24c   :  { %v2958_v22 = vadd.f32 %v2957_v17, %v2816_v56  ;;  %v2946_v0 = vrot.slane %v2945_v49, 4  ;;  %v3208_v12 = vrot.slane %v3200_v60, %v5770_v55 }
 0x24d   :  { %v2934_v57 = vadd.f32 %v2933_v16, %v2932_v44  ;;  %v2971_v51 = vadd.f32 %v2970_v18, %v2817_v2  ;;  %v3215_v27 = vrot.slane %v3201_v10, %v5770_v55 }
 0x24e   :  { %v2959_v3 = vrot.slane %v2958_v22, 4  ;;  %v2947_v15 = vadd.f32 %v2946_v0, %v2945_v49 }
 0x24f   :  { %v2935_v33 = vrot.slane %v2934_v57, 2  ;;  %v2972_v4 = vrot.slane %v2971_v51, 4  ;;  %v3216_v20 = vcombine.low %v3208_v12, %v3215_v27 }
 0x250   :  { %v2960_v43 = vadd.f32 %v2959_v3, %v2958_v22  ;;  %v2948_v11 = vrot.slane %v2947_v15, 2 }
 0x251   :  { %v2936_v41 = vadd.f32 %v2935_v33, %v2934_v57  ;;  %v2973_v63 = vadd.f32 %v2972_v4, %v2971_v51  ;;  %3268 = vst [vmem:[#allocation3] sm:$0xff] %v3216_v20 }
 0x252   :  { %v2961_v61 = vrot.slane %v2960_v43, 2  ;;  %v2949_v26 = vadd.f32 %v2948_v11, %v2947_v15 }
 0x253   :  { %v2937_v30 = vrot.slane %v2936_v41, 1  ;;  %v2974_v36 = vrot.slane %v2973_v63, 2 }
 0x254   :  { %v2962_v52 = vadd.f32 %v2961_v61, %v2960_v43  ;;  %v2950_v5 = vrot.slane %v2949_v26, 1 }
 0x255   :  { %v2938_v25 = vadd.f32 %v2937_v30, %v2936_v41  ;;  %v2975_v13 = vadd.f32 %v2974_v36, %v2973_v63 }
 0x256   :  { %v2963_v8 = vrot.slane %v2962_v52, 1  ;;  %v2951_v50 = vadd.f32 %v2950_v5, %v2949_v26 }
 0x257   :  { %v3048_v21 = vadd.f32 %v5668_v42, %v2938_v25  ;;  %v2976_v34 = vrot.slane %v2975_v13, 1 }
 0x258   :  { %v2964_v32 = vadd.f32 %v2963_v8, %v2962_v52  ;;  %v3049_v23 = vadd.f32 %v5668_v42, %v2951_v50 }
 0x259   :  { %v3356_v31 = vmul.f32 -1.442695, %v3048_v21  ;;  %v2977_v1 = vadd.f32 %v2976_v34, %v2975_v13 }
 0x25a   :  { %v3050_v28 = vadd.f32 %v5668_v42, %v2964_v32  ;;  %v3357_v17 = vmul.f32 -1.442695, %v3049_v23 }
 0x25b   :  { %3545 = vpow2.f32 %v3356_v31  ;;  %v3051_v38 = vadd.f32 %v5668_v42, %v2977_v1 }
 0x25c   :  { %v3358_v46 = vmul.f32 -1.442695, %v3050_v28  ;;  %3547 = vpow2.f32 %v3357_v17 }
 0x25d   :  { %v3359_v35 = vmul.f32 -1.442695, %v3051_v38 }
 0x25e   :  { %3549 = vpow2.f32 %v3358_v46 }
 0x25f   :  { %3551 = vpow2.f32 %v3359_v35 }
 0x263   :  { %v2358_v18 = vpop.f32.mrb[48].mxu0 }
 0x264   :  { %v2359_v44 = vadd.f32 %v2358_v18, %v5554_v39  ;;  %v2360_v7 = vpop.f32.mrb[49].mxu0 }
 0x265   :  { %v3546_v37 = vpop.eup %3545  ;;  %v2361_v56 = vadd.f32 %v2360_v7, %v5554_v39 }
 0x266   :  { %v3548_v49 = vpop.eup %3547  ;;  %v3112_v60 = vadd.f32 1.0, %v3546_v37  ;;  %v2530_v2 = vmax.f32 %v2359_v44, 0.0 }
 0x267   :  { %v3113_v16 = vadd.f32 1.0, %v3548_v49  ;;  %v2471_v10 = vpop.f32.mrb[48].mxu1  ;;  %v2364_v22 = vpop.f32.mrb[50].mxu0  ;;  %v2531_v51 = vmax.f32 %v2361_v56, 0.0 }
 0x268   :  { %v3550_v0 = vpop.eup %3549  ;;  %v2472_v57 = vadd.f32 %v2471_v10, %v5554_v39  ;;  %v2473_v12 = vpop.f32.mrb[49].mxu1  ;;  %v2365_v27 = vadd.f32 %v2364_v22, %v5556_v29  ;;  %3553 = vrcp.f32 %v3112_v60  ;;  %v2706_v63 = vmul.f32 %v5562_v58, %v2530_v2 }
 0x269   :  { %v2366_v3 = vpop.f32.mrb[51].mxu0  ;;  %v3552_v15 = vpop.eup %3551  ;;  %v3114_v33 = vadd.f32 1.0, %v3550_v0  ;;  %v2474_v4 = vadd.f32 %v2473_v12, %v5554_v39  ;;  %3555 = vrcp.f32 %v3113_v16  ;;  %v2707_v36 = vmul.f32 %v5562_v58, %v2531_v51 }
 0x26a   :  { %v3115_v20 = vadd.f32 1.0, %v3552_v15  ;;  %v2532_v43 = vmax.f32 %v2472_v57, 0.0  ;;  %v2546_v11 = vmax.f32 %v2365_v27, 0.0  ;;  %v2367_v41 = vadd.f32 %v2366_v3, %v5556_v29 }
 0x26b   :  { %v2533_v61 = vmax.f32 %v2474_v4, 0.0  ;;  %v2477_v26 = vpop.f32.mrb[50].mxu1  ;;  %v2370_v30 = vpop.f32.mrb[52].mxu0  ;;  %3557 = vrcp.f32 %v3114_v33 }
 0x26c   :  { %v2722_v52 = vmul.f32 %v5564_v14, %v2546_v11  ;;  %v2478_v5 = vadd.f32 %v2477_v26, %v5556_v29  ;;  %v2479_v25 = vpop.f32.mrb[51].mxu1  ;;  %v2372_v39 = vpop.f32.mrb[53].mxu0  ;;  %3559 = vrcp.f32 %v3115_v20  ;;  %v2547_v13 = vmax.f32 %v2367_v41, 0.0 }
 0x26d   :  { %v2480_v8 = vadd.f32 %v2479_v25, %v5556_v29  ;;  %v2371_v50 = vadd.f32 %v2370_v30, %v5558_v59  ;;  %v2708_v21 = vmul.f32 %v5562_v58, %v2532_v43  ;;  %v2373_v23 = vadd.f32 %v2372_v39, %v5558_v59 }
 0x26e   :  { %v2978_v34 = vadd.f32 %v2722_v52, %v2706_v63  ;;  %v2548_v32 = vmax.f32 %v2478_v5, 0.0  ;;  %v2709_v31 = vmul.f32 %v5562_v58, %v2533_v61  ;;  %v2723_v1 = vmul.f32 %v5564_v14, %v2547_v13 }
 0x26f   :  { %v2549_v28 = vmax.f32 %v2480_v8, 0.0  ;;  %v2562_v17 = vmax.f32 %v2371_v50, 0.0  ;;  %v2483_v38 = vpop.f32.mrb[52].mxu1  ;;  %v2376_v46 = vpop.f32.mrb[54].mxu0  ;;  %v2563_v18 = vmax.f32 %v2373_v23, 0.0 }
 0x270   :  { %v2724_v35 = vmul.f32 %v5564_v14, %v2548_v32  ;;  %v2484_v29 = vadd.f32 %v2483_v38, %v5558_v59  ;;  %v2485_v44 = vpop.f32.mrb[53].mxu1  ;;  %v2377_v7 = vadd.f32 %v2376_v46, %v5560_v40  ;;  %v2378_v37 = vpop.f32.mrb[55].mxu0  ;;  %v2991_v56 = vadd.f32 %v2723_v1, %v2707_v36 }
 0x271   :  { %v2725_v49 = vmul.f32 %v5564_v14, %v2549_v28  ;;  %v2738_v58 = vmul.f32 %v5574_v53, %v2562_v17  ;;  %v2486_v60 = vadd.f32 %v2485_v44, %v5558_v59  ;;  %v2739_v10 = vmul.f32 %v5574_v53, %v2563_v18 }
 0x272   :  { %v3004_v16 = vadd.f32 %v2724_v35, %v2708_v21  ;;  %v2564_v2 = vmax.f32 %v2484_v29, 0.0  ;;  %v2578_v22 = vmax.f32 %v2377_v7, 0.0  ;;  %v5855_v0 = vpop.eup %3553  ;;  %v2379_v3 = vadd.f32 %v2378_v37, %v5560_v40 }
 0x273   :  { %v3017_v57 = vadd.f32 %v2725_v49, %v2709_v31  ;;  %v2979_v51 = vadd.f32 %v2978_v34, %v2738_v58  ;;  %v2565_v12 = vmax.f32 %v2486_v60, 0.0  ;;  %v2489_v27 = vpop.f32.mrb[54].mxu1  ;;  %v2382_v15 = vpop.f32.mrb[56].mxu0  ;;  %v2992_v33 = vadd.f32 %v2991_v56, %v2739_v10 }
 0x274   :  { %v2740_v14 = vmul.f32 %v5574_v53, %v2564_v2  ;;  %v2754_v4 = vmul.f32 %v5592_v45, %v2578_v22  ;;  %v2490_v59 = vadd.f32 %v2489_v27, %v5560_v40  ;;  %v2491_v20 = vpop.f32.mrb[55].mxu1  ;;  %v2384_v43 = vpop.f32.mrb[57].mxu0  ;;  %v2579_v63 = vmax.f32 %v2379_v3, 0.0 }
 0x275   :  { %v5861_v11 = vpop.eup %3555  ;;  %v2741_v41 = vmul.f32 %v5574_v53, %v2565_v12  ;;  %v2492_v61 = vadd.f32 %v2491_v20, %v5560_v40  ;;  %v2383_v26 = vadd.f32 %v2382_v15, %v5570_v48  ;;  %v2385_v25 = vadd.f32 %v2384_v43, %v5570_v48 }
 0x276   :  { %v5866_v30 = vpop.eup %3557  ;;  %v3005_v36 = vadd.f32 %v3004_v16, %v2740_v14  ;;  %v2980_v52 = vadd.f32 %v2979_v51, %v2754_v4  ;;  %v2580_v5 = vmax.f32 %v2490_v59, 0.0  ;;  %v2755_v8 = vmul.f32 %v5592_v45, %v2579_v63 }
 0x277   :  { %v5869_v39 = vpop.eup %3559  ;;  %v3018_v13 = vadd.f32 %v3017_v57, %v2741_v41  ;;  %v2581_v50 = vmax.f32 %v2492_v61, 0.0  ;;  %v2594_v21 = vmax.f32 %v2383_v26, 0.0  ;;  %v2495_v53 = vpop.f32.mrb[56].mxu1  ;;  %v2595_v23 = vmax.f32 %v2385_v25, 0.0 }
 0x278   :  { %v2388_v34 = vpop.f32.mrb[58].mxu0  ;;  %v2756_v40 = vmul.f32 %v5592_v45, %v2580_v5  ;;  %v2496_v32 = vadd.f32 %v2495_v53, %v5570_v48  ;;  %v2497_v31 = vpop.f32.mrb[57].mxu1  ;;  %v2993_v17 = vadd.f32 %v2992_v33, %v2755_v8 }
 0x279   :  { %v2389_v1 = vadd.f32 %v2388_v34, %v5585_v62  ;;  %v2390_v28 = vpop.f32.mrb[59].mxu0  ;;  %v2757_v38 = vmul.f32 %v5592_v45, %v2581_v50  ;;  %v2770_v46 = vmul.f32 %v5606_v6, %v2594_v21  ;;  %v2498_v35 = vadd.f32 %v2497_v31, %v5570_v48 }
 0x27a   :  { %v3006_v29 = vadd.f32 %v3005_v36, %v2756_v40  ;;  %v2596_v18 = vmax.f32 %v2496_v32, 0.0  ;;  %v2771_v44 = vmul.f32 %v5606_v6, %v2595_v23  ;;  %v2391_v60 = vadd.f32 %v2390_v28, %v5585_v62 }
 0x27b   :  { %v2610_v7 = vmax.f32 %v2389_v1, 0.0  ;;  %v3019_v37 = vadd.f32 %v3018_v13, %v2757_v38  ;;  %v2981_v56 = vadd.f32 %v2980_v52, %v2770_v46  ;;  %v2597_v49 = vmax.f32 %v2498_v35, 0.0  ;;  %v2501_v58 = vpop.f32.mrb[58].mxu1  ;;  %v2394_v16 = vpop.f32.mrb[60].mxu0 }
 0x27c   :  { %v2772_v2 = vmul.f32 %v5606_v6, %v2596_v18  ;;  %v2994_v10 = vadd.f32 %v2993_v17, %v2771_v44  ;;  %v2502_v22 = vadd.f32 %v2501_v58, %v5585_v62  ;;  %v2503_v48 = vpop.f32.mrb[59].mxu1  ;;  %v2396_v57 = vpop.f32.mrb[61].mxu0  ;;  %v2611_v12 = vmax.f32 %v2391_v60, 0.0 }
 0x27d   :  { %v2786_v45 = vmul.f32 %v5622_v54, %v2610_v7  ;;  %v2773_v51 = vmul.f32 %v5606_v6, %v2597_v49  ;;  %v2504_v27 = vadd.f32 %v2503_v48, %v5585_v62  ;;  %v2395_v3 = vadd.f32 %v2394_v16, %v5602_v47 }
 0x27e   :  { %v3007_v15 = vadd.f32 %v3006_v29, %v2772_v2  ;;  %v2612_v33 = vmax.f32 %v2502_v22, 0.0  ;;  %v2397_v4 = vadd.f32 %v2396_v57, %v5602_v47  ;;  %v2787_v20 = vmul.f32 %v5622_v54, %v2611_v12 }
 0x27f   :  { %v2982_v14 = vadd.f32 %v2981_v56, %v2786_v45  ;;  %v3020_v59 = vadd.f32 %v3019_v37, %v2773_v51  ;;  %v2613_v43 = vmax.f32 %v2504_v27, 0.0  ;;  %v2626_v41 = vmax.f32 %v2395_v3, 0.0  ;;  %v2507_v63 = vpop.f32.mrb[60].mxu1  ;;  %v2400_v61 = vpop.f32.mrb[62].mxu0 }
 0x280   :  { %v2788_v26 = vmul.f32 %v5622_v54, %v2612_v33  ;;  %v2508_v6 = vadd.f32 %v2507_v63, %v5602_v47  ;;  %v2627_v36 = vmax.f32 %v2397_v4, 0.0  ;;  %v2509_v62 = vpop.f32.mrb[61].mxu1  ;;  %v2401_v52 = vadd.f32 %v2400_v61, %v5616_v24  ;;  %v2402_v5 = vpop.f32.mrb[63].mxu0 }
 0x281   :  { %v2995_v25 = vadd.f32 %v2994_v10, %v2787_v20  ;;  %v2789_v13 = vmul.f32 %v5622_v54, %v2613_v43  ;;  %v2802_v8 = vmul.f32 %v5632_v19, %v2626_v41  ;;  %v2510_v50 = vadd.f32 %v2509_v62, %v5602_v47 }
 0x282   :  { %v3008_v21 = vadd.f32 %v3007_v15, %v2788_v26  ;;  %v2628_v53 = vmax.f32 %v2508_v6, 0.0  ;;  %v2803_v34 = vmul.f32 %v5632_v19, %v2627_v36  ;;  %v2642_v40 = vmax.f32 %v2401_v52, 0.0 }
 0x283   :  { %v3021_v32 = vadd.f32 %v3020_v59, %v2789_v13  ;;  %v2983_v23 = vadd.f32 %v2982_v14, %v2802_v8  ;;  %v2629_v31 = vmax.f32 %v2510_v50, 0.0  ;;  %v2513_v1 = vpop.f32.mrb[62].mxu1  ;;  %v2403_v28 = vadd.f32 %v2402_v5, %v5616_v24 }
 0x284   :  { %v2804_v17 = vmul.f32 %v5632_v19, %v2628_v53  ;;  %v2996_v38 = vadd.f32 %v2995_v25, %v2803_v34  ;;  %v2818_v54 = vmul.f32 %v5644_v9, %v2642_v40  ;;  %v2514_v46 = vadd.f32 %v2513_v1, %v5616_v24  ;;  %v2515_v35 = vpop.f32.mrb[63].mxu1 }
 0x285   :  { %v2805_v47 = vmul.f32 %v5632_v19, %v2629_v31  ;;  %v2643_v29 = vmax.f32 %v2403_v28, 0.0  ;;  %v2516_v18 = vadd.f32 %v2515_v35, %v5616_v24  ;;  %v3217_v44 = vcombine.low %v5855_v0, %v5861_v11 }
 0x286   :  { %v3009_v7 = vadd.f32 %v3008_v21, %v2804_v17  ;;  %v2984_v37 = vadd.f32 %v2983_v23, %v2818_v54  ;;  %v2644_v56 = vmax.f32 %v2514_v46, 0.0  ;;  %v3218_v49 = vcombine.low %v5866_v30, %v5869_v39 }
 0x287   :  { %v3022_v58 = vadd.f32 %v3021_v32, %v2805_v47  ;;  %v2819_v60 = vmul.f32 %v5644_v9, %v2643_v29  ;;  %v2645_v16 = vmax.f32 %v2516_v18, 0.0  ;;  %v5907_v2 = vrot.slane %v3217_v44, %v5770_v55 }
 0x288   :  { %v2985_v19 = vrot.slane %v2984_v37, 4  ;;  %v2820_v10 = vmul.f32 %v5644_v9, %v2644_v56  ;;  %v5911_v24 = vrot.slane %v3218_v49, %v5770_v55 }
 0x289   :  { %v2997_v0 = vadd.f32 %v2996_v38, %v2819_v60  ;;  %v2821_v11 = vmul.f32 %v5644_v9, %v2645_v16 }
 0x28a   :  { %v2986_v45 = vadd.f32 %v2985_v19, %v2984_v37  ;;  %v3010_v22 = vadd.f32 %v3009_v7, %v2820_v10  ;;  %v3249_v30 = vcombine.low %v5907_v2, %v5911_v24 }
 0x28b   :  { %v2998_v39 = vrot.slane %v2997_v0, 4  ;;  %v3023_v48 = vadd.f32 %v3022_v58, %v2821_v11 }
 0x28c   :  { %v2987_v57 = vrot.slane %v2986_v45, 2  ;;  %v3011_v51 = vrot.slane %v3010_v22, 4  ;;  %v3257_v37 = vrot.slane %v3249_v30, %v5770_v55 }
 0x28d   :  { %v2999_v12 = vadd.f32 %v2998_v39, %v2997_v0  ;;  %v3024_v27 = vrot.slane %v3023_v48, 4 }
 0x28e   :  { %v2988_v3 = vadd.f32 %v2987_v57, %v2986_v45  ;;  %v3012_v15 = vadd.f32 %v3011_v51, %v3010_v22 }
 0x28f   :  { %v3000_v14 = vrot.slane %v2999_v12, 2  ;;  %v3025_v33 = vadd.f32 %v3024_v27, %v3023_v48 }
 0x290   :  { %v2989_v4 = vrot.slane %v2988_v3, 1  ;;  %v3013_v59 = vrot.slane %v3012_v15, 2 }
 0x291   :  { %v3001_v20 = vadd.f32 %v3000_v14, %v2999_v12  ;;  %v3026_v43 = vrot.slane %v3025_v33, 2 }
 0x292   :  { %v2990_v9 = vadd.f32 %v2989_v4, %v2988_v3  ;;  %v3014_v41 = vadd.f32 %v3013_v59, %v3012_v15 }
 0x293   :  { %v3002_v63 = vrot.slane %v3001_v20, 1  ;;  %v3027_v61 = vadd.f32 %v3026_v43, %v3025_v33 }
 0x294   :  { %v3052_v26 = vadd.f32 %v5668_v42, %v2990_v9  ;;  %v3015_v6 = vrot.slane %v3014_v41, 1 }
 0x295   :  { %v3003_v36 = vadd.f32 %v3002_v63, %v3001_v20  ;;  %v3028_v62 = vrot.slane %v3027_v61, 1 }
 0x296   :  { %v3360_v52 = vmul.f32 -1.442695, %v3052_v26  ;;  %v3016_v5 = vadd.f32 %v3015_v6, %v3014_v41 }
 0x297   :  { %v3053_v25 = vadd.f32 %v5668_v42, %v3003_v36  ;;  %v3029_v13 = vadd.f32 %v3028_v62, %v3027_v61 }
 0x298   :  { %3561 = vpow2.f32 %v3360_v52  ;;  %v3054_v8 = vadd.f32 %v5668_v42, %v3016_v5 }
 0x299   :  { %v3361_v50 = vmul.f32 -1.442695, %v3053_v25  ;;  %v3055_v21 = vadd.f32 %v5668_v42, %v3029_v13 }
 0x29a   :  { %v3362_v53 = vmul.f32 -1.442695, %v3054_v8 }
 0x29b   :  { %3563 = vpow2.f32 %v3361_v50  ;;  %v3363_v34 = vmul.f32 -1.442695, %v3055_v21 }
 0x29c   :  { %3565 = vpow2.f32 %v3362_v53 }
 0x29d   :  { %3567 = vpow2.f32 %v3363_v34 }
 0x2a2   :  { %v3562_v40 = vpop.eup %3561 }
 0x2a3   :  { %v3116_v32 = vadd.f32 1.0, %v3562_v40 }
 0x2a5   :  { %v3564_v23 = vpop.eup %3563  ;;  %3569 = vrcp.f32 %v3116_v32 }
 0x2a6   :  { %v3566_v31 = vpop.eup %3565  ;;  %v3117_v1 = vadd.f32 1.0, %v3564_v23 }
 0x2a7   :  { %v3568_v28 = vpop.eup %3567  ;;  %v3118_v17 = vadd.f32 1.0, %v3566_v31 }
 0x2a8   :  { %3571 = vrcp.f32 %v3117_v1  ;;  %v3119_v38 = vadd.f32 1.0, %v3568_v28 }
 0x2a9   :  { %3573 = vrcp.f32 %v3118_v17 }
 0x2aa   :  { %3575 = vrcp.f32 %v3119_v38 }
 0x2af   :  { %v3570_v54 = vpop.eup %3569 }
 0x2b2   :  { %v3572_v46 = vpop.eup %3571 }
 0x2b3   :  { %v3574_v42 = vpop.eup %3573  ;;  %v3219_v35 = vcombine.low %v3570_v54, %v3572_v46 }
 0x2b4   :  { %v3576_v47 = vpop.eup %3575 }
 0x2b5   :  { %v3220_v29 = vcombine.low %v3574_v42, %v3576_v47  ;;  %v3241_v18 = vrot.slane %v3219_v35, %v5770_v55 }
 0x2b7   :  { %v3248_v44 = vrot.slane %v3220_v29, %v5770_v55 }
 0x2b9   :  { %v3250_v7 = vcombine.low %v3241_v18, %v3248_v44 }
 0x2bb   :  { %v3264_v56 = vrot.slane %v3250_v7, %v5770_v55 }
 0x2bd   :  { %v3265_v49 = vcombine.low %v3257_v37, %v3264_v56 }
 0x2bf   :  { %3269 = vst [vmem:[#allocation3 + $0x8] sm:$0xff] %v3265_v49 }
 0x2c0   :  { %3598 = shalt.err (!%p3595_p4)
}
 0x2c1   :  { %s3599_s14 = scalar_lea.hbm %s5943_s7, 256 }
 0x2c2   :  { %p3600_p5 = scmp.ne.s32.totalorder %s5943_s7, %s3599_s14  ;;  %p3603_p6 = scmp.lt.u32.totalorder %s3599_s14, %s5943_s7 }
 0x2c4   :  { %p3605_p7 = pnand %p3603_p6, %p3600_p5 }
 0x2c6   :  { %3608 = shalt.err (!%p3605_p7)
}
 0x2c7   :  { %3279 = dma.vmem_to_hbm [thread:$0]  %s3277_s10, 256, %s5943_s7, [#allocation4]  }
 0x2c8   :  { %3609 = dma.done.wait [#allocation4], 256  }
 0x2c9   :  { %3610 = vsyncadd [#allocation4], 4294967040 }
 0x2ca   :  { %3283 = vsyncpa [#allocation4], 1 }

</bundles_post_ra>
